<compile_context>
chip_gen: v7x
topology: tpu7x:2x2x1
jax: 0.10.0
libtpu: 0.0.40
codegen_flags: <defaults>
</compile_context>

<pallas_src>
import jax
import jax.numpy as jnp
from jax import lax
from jax.experimental import pallas as pl
from jax.experimental.pallas import tpu as pltpu

N_ATOMS = 16   # atoms per frame
N_MOL = 2      # molecules ("batch" index values) per frame
HIDDEN = 32
N_RBF = 16
N_TYPES = 8
CUTOFF = 5.0

F_TILE = 8     # frames per grid step
N_PAIRS = 128  # compacted ordered pairs per frame (112 valid + zero padding)
LANES = 128
N_FRAMES = 32  # demo frames -> grid of 4 steps (even, splits on v7x's 2 TCs)

D2_EPS = 1e-4  # clamp on squared distances; bounds the 1/d force factor
               # (real TorchMD-Net relies on a neighbor list to avoid contacts)

# ----- constant-slab row offsets (slab width = LANES = 128) -----
R_DIFFSELT = 0                                # (N, 128): (sel_i - sel_j)^T
R_SELIBIG  = R_DIFFSELT + N_ATOMS             # (F*NP, 128): block-diag sel_i
R_HJPT     = R_SELIBIG + F_TILE * N_PAIRS     # (H, 128): hj_pair^T (frame-invariant)
R_H0T      = R_HJPT + HIDDEN                  # (H, 128): h0^T tiled over frames
R_W2T      = R_H0T + HIDDEN                   # (H, 128): w2^T (cols 0:H)
R_W3T      = R_W2T + HIDDEN                   # (H, 128): w3^T
R_WFT      = R_W3T + HIDDEN                   # (H, 128): wf^T (cols 0:K)
R_BLK3     = R_WFT + HIDDEN                   # (3*NP, 128): block force selector
R_MOLFM    = R_BLK3 + 3 * N_PAIRS             # (F*N, 128): per-frame molecule scatter
R_COLS     = R_MOLFM + F_TILE * N_ATOMS       # (H, 128): col0=mu, col1=bf, col2=b2, col3=b3
R_VEC      = R_COLS + HIDDEN                  # (8, 128): row0=w4, row1[0]=b4
SLAB_ROWS  = R_VEC + 8                        # 1752


def _tmdnet_kernel(pos_ref, slab_ref, forces_ref, energy_ref):
    f32 = jnp.float32
    F, N, NP, H, K = F_TILE, N_ATOMS, N_PAIRS, HIDDEN, N_RBF

    # positions, coordinate-major rows: row c*F + f = pos[f, :, c]
    P = pos_ref[0]                                               # (3F, N)

    # ---- frame-invariant constants (fetched once; constant index_map) ----
    diff_selT = slab_ref[R_DIFFSELT:R_DIFFSELT + N, :]           # (N, NP)
    sel_i_big = slab_ref[R_SELIBIG:R_SELIBIG + F * NP, :]        # (F*NP, F*N)
    hjpT      = slab_ref[R_HJPT:R_HJPT + H, :]                   # (H, NP)
    h0T_t     = slab_ref[R_H0T:R_H0T + H, :]                     # (H, F*N)
    w2T       = slab_ref[R_W2T:R_W2T + H, 0:H]                   # (H, H)
    w3T       = slab_ref[R_W3T:R_W3T + H, 0:H]                   # (H, H)
    wfT       = slab_ref[R_WFT:R_WFT + H, 0:K]                   # (H, K)
    blk3      = slab_ref[R_BLK3:R_BLK3 + 3 * NP, :]              # (3*NP, 128)
    molfm     = slab_ref[R_MOLFM:R_MOLFM + F * N, :]             # (F*N, 128)
    colsb     = slab_ref[R_COLS:R_COLS + H, :]                   # (H, 128)
    vecb      = slab_ref[R_VEC:R_VEC + 8, :]                     # (8, 128)

    mu_col = colsb[0:K, 0:1]                                     # (K, 1)
    bf_col = colsb[:, 1:2]                                       # (H, 1)
    b2_col = colsb[:, 2:3]
    b3_col = colsb[:, 3:4]
    w4_row = vecb[0:1, 0:H]                                      # (1, H)
    b4_val = vecb[1:2, 0:1]                                      # (1, 1)

    # ---- pair displacements: frames on sublanes, compact pairs on lanes ----
    D = jnp.dot(P, diff_selT, preferred_element_type=f32)        # (3F, NP)
    dx = D[0:F, :]
    dy = D[F:2 * F, :]
    dz = D[2 * F:3 * F, :]
    d2 = dx * dx + dy * dy + dz * dz                             # (F, NP) = 1 vreg

    spacing = CUTOFF / (N_RBF - 1)
    gamma = 0.5 / (spacing * spacing)

    # Energy as a function of squared pair distances ONLY; everything that does
    # not depend on pos is closed over so the traced backward stays small.
    def energy_from_d2(d2v):
        d2c = jnp.maximum(d2v, D2_EPS)
        d = jnp.sqrt(d2c)                                        # (F, NP)
        x = jnp.minimum(d * (1.0 / CUTOFF), 1.0)
        env = (1.0 - x * x) ** 2                                 # (F, NP)
        # TODO(synk): torchmd-net uses an ExpNormal RBF + cosine cutoff; a
        # gaussian RBF + polynomial envelope is kept for Mosaic-friendly math.
        wh_parts = []
        for f in range(F):                                       # static unroll (8)
            d_f = d[f:f + 1, :]                                  # (1, NP)
            rbf_f = jnp.exp(-gamma * (d_f - mu_col) ** 2)        # (K, NP) lane-dense
            pre_f = jnp.dot(wfT, rbf_f,
                            preferred_element_type=f32) + bf_col  # (H, NP)
            wpair_f = pre_f * env[f:f + 1, :]
            wh_parts.append(wpair_f * hjpT)                      # (H, NP)
        wh_all = jnp.concatenate(wh_parts, axis=1)               # (H, F*NP)
        # CFConv message sum: one MXU matmul vs. block-diag selector
        msgT = jnp.dot(wh_all, sel_i_big,
                       preferred_element_type=f32)               # (H, F*N) = (32, 128)
        hT = h0T_t + jnp.tanh(
            jnp.dot(w2T, msgT, preferred_element_type=f32) + b2_col)
        a3T = jnp.tanh(jnp.dot(w3T, hT, preferred_element_type=f32) + b3_col)
        e_row = jnp.dot(w4_row, a3T,
                        preferred_element_type=f32) + b4_val     # (1, F*N)
        e_fm = jnp.dot(e_row, molfm,
                       preferred_element_type=f32)               # (1, 128): lane f*N_MOL+m
        return jnp.sum(e_row), e_fm

    # derivative=True: forces = -dE/dpos.  Autodiff only through d2, then the
    # exact chain rule through disp = (sel_i - sel_j) @ pos via one matmul.
    (_, e_fm), g = jax.value_and_grad(energy_from_d2, has_aux=True)(d2)

    g3 = jnp.concatenate([g * dx, g * dy, g * dz], axis=1)       # (F, 3*NP)
    forces_row = -2.0 * jnp.dot(g3, blk3,
                                preferred_element_type=f32)      # (F, 128): lane c*N+a

    forces_ref[0] = forces_row                                   # unmasked full-vreg vst
    energy_ref[0] = e_fm


def init_params(key):
    ks = jax.random.split(key, 6)

    def w(k_, shape, fan_in):
        return jax.random.normal(k_, shape, jnp.float32) / jnp.sqrt(
            jnp.float32(fan_in))

    return dict(
        embed=w(ks[0], (N_TYPES, HIDDEN), 1.0),
        mu=jnp.linspace(0.0, CUTOFF, N_RBF, dtype=jnp.float32).reshape(1, N_RBF),
        wf=w(ks[1], (N_RBF, HIDDEN), N_RBF),
        bf=jnp.zeros((1, HIDDEN), jnp.float32),
        w1=w(ks[2], (HIDDEN, HIDDEN), HIDDEN),
        w2=w(ks[3], (HIDDEN, HIDDEN), HIDDEN),
        b2=jnp.zeros((1, HIDDEN), jnp.float32),
        w3=w(ks[4], (HIDDEN, HIDDEN), HIDDEN),
        b3=jnp.zeros((1, HIDDEN), jnp.float32),
        w4=w(ks[5], (HIDDEN, 1), HIDDEN),
        b4=jnp.zeros((1, 1), jnp.float32),
    )


def _pack_const_slab(params, z, batch):
    """Pack every parameter plus all frame-invariant selector/feature tensors
    into one (SLAB_ROWS, 128) slab so the kernel has a single constant input."""
    f32 = jnp.float32
    F, N, NP, H, K = F_TILE, N_ATOMS, N_PAIRS, HIDDEN, N_RBF

    z_oh = jax.nn.one_hot(z, N_TYPES, dtype=f32)                 # (N, T)
    b_oh = jax.nn.one_hot(batch, N_MOL, dtype=f32)               # (N, M)

    # Compact ordered pair list (same molecule, i != j), padded to NP slots.
    # TODO(synk): assumes <= N_PAIRS valid ordered pairs (true for the demo's
    # equal-size molecules); real TorchMD-Net uses a dynamic neighbor list.
    ai = jnp.arange(N)
    valid = (batch[:, None] == batch[None, :]) & (ai[:, None] != ai[None, :])
    flat = jnp.nonzero(valid.reshape(-1), size=NP, fill_value=N * N)[0]
    pi = flat // N
    pj = flat % N
    vmask = (flat < N * N).astype(f32)[:, None]
    oh_i = jax.nn.one_hot(pi, N, dtype=f32) * vmask              # (NP, N)
    oh_j = jax.nn.one_hot(pj, N, dtype=f32) * vmask
    diffsel = oh_i - oh_j                                        # (NP, N)

    h0 = jnp.dot(z_oh, params['embed'],
                 precision=lax.Precision.HIGHEST)                # (N, H)
    hj = jnp.dot(h0, params['w1'],
                 precision=lax.Precision.HIGHEST)                # (N, H) = embed @ w1 folded
    hjpT = jnp.dot(oh_j, hj).T                                   # (H, NP); 0 for padding pairs
    h0T_tiled = jnp.tile(h0.T, (1, F))                           # (H, F*N) = (32, 128)

    sel_i_big = jnp.kron(jnp.eye(F, dtype=f32), oh_i)            # (F*NP, F*N)
    molfm = jnp.kron(jnp.eye(F, dtype=f32), b_oh)                # (F*N, F*N_MOL)

    blk3 = jnp.zeros((3 * NP, LANES), f32)
    for c in range(3):
        blk3 = blk3.at[c * NP:(c + 1) * NP, c * N:(c + 1) * N].set(diffsel)

    cols = jnp.zeros((HIDDEN, LANES), f32)
    cols = cols.at[0:K, 0].set(params['mu'].reshape(-1))
    cols = cols.at[:, 1].set(params['bf'].reshape(-1))
    cols = cols.at[:, 2].set(params['b2'].reshape(-1))
    cols = cols.at[:, 3].set(params['b3'].reshape(-1))
    vec = jnp.zeros((8, LANES), f32)
    vec = vec.at[0, 0:H].set(params['w4'].reshape(-1))
    vec = vec.at[1, 0].set(params['b4'].reshape(-1)[0])

    def pad(a, rows):
        out = jnp.zeros((rows, LANES), f32)
        return out.at[:a.shape[0], :a.shape[1]].set(a.astype(f32))

    slab = jnp.concatenate([
        pad(diffsel.T, N),                 # R_DIFFSELT
        pad(sel_i_big, F * NP),            # R_SELIBIG
        pad(hjpT, H),                      # R_HJPT
        pad(h0T_tiled, H),                 # R_H0T
        pad(params['w2'].T, H),            # R_W2T
        pad(params['w3'].T, H),            # R_W3T
        pad(params['wf'].T, H),            # R_WFT
        pad(blk3, 3 * NP),                 # R_BLK3
        pad(molfm, F * N),                 # R_MOLFM
        cols,                              # R_COLS
        vec,                               # R_VEC
    ], axis=0)
    assert slab.shape == (SLAB_ROWS, LANES)
    return slab


def torchmdnet_interface_forward(z, pos, batch, params):
    """Equivalent of TorchMDNetInterface.forward (data2ndata is identity).

    `pos` may be (N, 3) for a single configuration (matching the PyTorch
    module) or (F, N, 3) for a batch of frames; F_TILE frames are processed
    per grid step and grid steps are sharded across TensorCores."""
    single = pos.ndim == 2
    pos_f = pos[None] if single else pos
    nf = pos_f.shape[0]
    n_tiles = max(1, -(-nf // F_TILE))
    n_pad = n_tiles * F_TILE

    pos_p = jnp.zeros((n_pad, N_ATOMS, 3), jnp.float32)
    pos_p = pos_p.at[:nf].set(pos_f.astype(jnp.float32))
    # per-tile coordinate-major layout: (n_tiles, 3*F_TILE, N_ATOMS)
    pos_t = pos_p.reshape(n_tiles, F_TILE, N_ATOMS, 3)
    pos_t = pos_t.transpose(0, 3, 1, 2).reshape(n_tiles, 3 * F_TILE, N_ATOMS)

    slab = _pack_const_slab(params, z, batch)

    cost = pl.CostEstimate(
        flops=22_000_000 * n_tiles,              # ~2.7 MFLOP / frame incl. backward
        transcendentals=25_000 * n_tiles,        # exp (F*K*NP) + tanh (2*F*N*H)
        bytes_accessed=(SLAB_ROWS * LANES * 4
                        + n_tiles * (3 * F_TILE * N_ATOMS * 4     # pos
                                     + F_TILE * LANES * 4         # forces rows
                                     + LANES * 4)),               # energy row
    )

    forces_pad, energy_pad = pl.pallas_call(
        _tmdnet_kernel,
        out_shape=(
            jax.ShapeDtypeStruct((n_tiles, F_TILE, LANES), jnp.float32),
            jax.ShapeDtypeStruct((n_tiles, 1, LANES), jnp.float32),
        ),
        grid=(n_tiles,),
        in_specs=[
            pl.BlockSpec((1, 3 * F_TILE, N_ATOMS), lambda t: (t, 0, 0)),
            pl.BlockSpec((SLAB_ROWS, LANES), lambda t: (0, 0)),   # fetched once
        ],
        out_specs=(
            pl.BlockSpec((1, F_TILE, LANES), lambda t: (t, 0, 0)),
            pl.BlockSpec((1, 1, LANES), lambda t: (t, 0, 0)),
        ),
        compiler_params=pltpu.CompilerParams(
            dimension_semantics=("parallel",)),
        cost_estimate=cost,
    )(pos_t, slab)

    forces = forces_pad.reshape(n_pad, LANES)[:, :3 * N_ATOMS]    # lanes c*N + a
    forces = forces.reshape(n_pad, 3, N_ATOMS).transpose(0, 2, 1)[:nf]
    energy = energy_pad.reshape(n_tiles, LANES)[:, :F_TILE * N_MOL]
    energy = energy.reshape(n_pad, N_MOL)[:nf]
    if single:
        return {'energy': energy[0], 'forces': forces[0]}
    return {'energy': energy, 'forces': forces}


if __name__ == "__main__":
    key = jax.random.PRNGKey(0)
    kz, kp, kw = jax.random.split(key, 3)

    z = jax.random.randint(kz, (N_ATOMS,), 0, N_TYPES)                 # atom types
    pos = 2.0 * jax.random.normal(kp, (N_FRAMES, N_ATOMS, 3),
                                  jnp.float32)                         # positions (frames)
    batch = jnp.repeat(jnp.arange(N_MOL, dtype=jnp.int32),
                       N_ATOMS // N_MOL)                               # molecule ids
    params = init_params(kw)

    fwd = jax.jit(torchmdnet_interface_forward)

    out = fwd(z, pos, batch, params)
    jax.block_until_ready(out)
    assert out['energy'].shape == (N_FRAMES, N_MOL)
    assert out['forces'].shape == (N_FRAMES, N_ATOMS, 3)
    assert bool(jnp.all(jnp.isfinite(out['energy'])))
    assert bool(jnp.all(jnp.isfinite(out['forces'])))

    # single-configuration path matches the PyTorch module's call signature
    out1 = fwd(z, pos[0], batch, params)
    jax.block_until_ready(out1)
    assert out1['energy'].shape == (N_MOL,)
    assert out1['forces'].shape == (N_ATOMS, 3)
    assert bool(jnp.all(jnp.isfinite(out1['energy'])))
    assert bool(jnp.all(jnp.isfinite(out1['forces'])))

    print("KERNEL_OK")
</pallas_src>

<mosaic_0001>
module attributes {stable_mosaic.version = 11 : i64} {
  func.func private @main(%arg0: i32) attributes {dimension_semantics = [#tpu.dimension_semantics<core_parallel>], iteration_bounds = array<i64: 2>, tpu.core_type = #tpu.core_type<sc_scalar_subcore>, window_params = []} {
    return
  }
}

module attributes {stable_mosaic.version = 11 : i64} {
  func.func private @main(%arg0: i32) attributes {dimension_semantics = [#tpu.dimension_semantics<core_parallel>], iteration_bounds = array<i64: 2>, tpu.core_type = #tpu.core_type<sc_scalar_subcore>, window_params = []} {
    return
  }
}

module attributes {stable_mosaic.version = 11 : i64} {
  func.func @_tmdnet_kernel(%arg0: i32, %arg1: memref<1x24x16xf32, #tpu.memory_space<vmem>>, %arg2: memref<1752x128xf32, #tpu.memory_space<vmem>>, %arg3: memref<1x8x128xf32, #tpu.memory_space<vmem>>, %arg4: memref<1x1x128xf32, #tpu.memory_space<vmem>>) attributes {dimension_semantics = [#tpu.dimension_semantics<parallel>], iteration_bounds = array<i64: 4>, scalar_prefetch = 0 : i64, scratch_operands = 0 : i64, tpu.core_type = #tpu.core_type<tc>, window_params = [{transform_indices = @transform_0, window_bounds = array<i64: 1, 24, 16>}, {pipeline_mode = #tpu.pipeline_mode<synchronous>, transform_indices = @transform_1, window_bounds = array<i64: 1752, 128>}, {transform_indices = @transform_2, window_bounds = array<i64: 1, 8, 128>}, {transform_indices = @transform_3, window_bounds = array<i64: 1, 1, 128>}]} {
    %c0 = arith.constant 0 : index
    %c0_0 = arith.constant 0 : index
    %c0_1 = arith.constant 0 : index
    %0 = vector.load %arg1[%c0, %c0_0, %c0_1] : memref<1x24x16xf32, #tpu.memory_space<vmem>>, vector<1x24x16xf32>
    %1 = vector.shape_cast %0 : vector<1x24x16xf32> to vector<24x16xf32>
    %c0_2 = arith.constant 0 : index
    %c0_3 = arith.constant 0 : index
    %2 = vector.load %arg2[%c0_2, %c0_3] : memref<1752x128xf32, #tpu.memory_space<vmem>>, vector<16x128xf32>
    %c16 = arith.constant 16 : index
    %c0_4 = arith.constant 0 : index
    %3 = vector.load %arg2[%c16, %c0_4] : memref<1752x128xf32, #tpu.memory_space<vmem>>, vector<1024x128xf32>
    %c1040 = arith.constant 1040 : index
    %c0_5 = arith.constant 0 : index
    %4 = vector.load %arg2[%c1040, %c0_5] : memref<1752x128xf32, #tpu.memory_space<vmem>>, vector<32x128xf32>
    %c1072 = arith.constant 1072 : index
    %c0_6 = arith.constant 0 : index
    %5 = vector.load %arg2[%c1072, %c0_6] : memref<1752x128xf32, #tpu.memory_space<vmem>>, vector<32x128xf32>
    %c1104 = arith.constant 1104 : index
    %c0_7 = arith.constant 0 : index
    %6 = vector.load %arg2[%c1104, %c0_7] : memref<1752x128xf32, #tpu.memory_space<vmem>>, vector<32x32xf32>
    %c1136 = arith.constant 1136 : index
    %c0_8 = arith.constant 0 : index
    %7 = vector.load %arg2[%c1136, %c0_8] : memref<1752x128xf32, #tpu.memory_space<vmem>>, vector<32x32xf32>
    %c1168 = arith.constant 1168 : index
    %c0_9 = arith.constant 0 : index
    %8 = vector.load %arg2[%c1168, %c0_9] : memref<1752x128xf32, #tpu.memory_space<vmem>>, vector<32x16xf32>
    %c1200 = arith.constant 1200 : index
    %c0_10 = arith.constant 0 : index
    %9 = vector.load %arg2[%c1200, %c0_10] : memref<1752x128xf32, #tpu.memory_space<vmem>>, vector<384x128xf32>
    %c1584 = arith.constant 1584 : index
    %c0_11 = arith.constant 0 : index
    %10 = vector.load %arg2[%c1584, %c0_11] : memref<1752x128xf32, #tpu.memory_space<vmem>>, vector<128x128xf32>
    %c1712 = arith.constant 1712 : index
    %c0_12 = arith.constant 0 : index
    %11 = vector.load %arg2[%c1712, %c0_12] : memref<1752x128xf32, #tpu.memory_space<vmem>>, vector<32x128xf32>
    %c1744 = arith.constant 1744 : index
    %c0_13 = arith.constant 0 : index
    %12 = vector.load %arg2[%c1744, %c0_13] : memref<1752x128xf32, #tpu.memory_space<vmem>>, vector<8x128xf32>
    %13 = vector.extract_strided_slice %11 {offsets = [0, 0], sizes = [16, 1], strides = [1, 1]} : vector<32x128xf32> to vector<16x1xf32>
    %14 = vector.extract_strided_slice %11 {offsets = [0, 1], sizes = [32, 1], strides = [1, 1]} : vector<32x128xf32> to vector<32x1xf32>
    %15 = vector.extract_strided_slice %11 {offsets = [0, 2], sizes = [32, 1], strides = [1, 1]} : vector<32x128xf32> to vector<32x1xf32>
    %16 = vector.extract_strided_slice %11 {offsets = [0, 3], sizes = [32, 1], strides = [1, 1]} : vector<32x128xf32> to vector<32x1xf32>
    %17 = vector.extract_strided_slice %12 {offsets = [0, 0], sizes = [1, 32], strides = [1, 1]} : vector<8x128xf32> to vector<1x32xf32>
    %18 = vector.extract_strided_slice %12 {offsets = [1, 0], sizes = [1, 1], strides = [1, 1]} : vector<8x128xf32> to vector<1x1xf32>
    %cst = arith.constant dense<0.000000e+00> : vector<24x128xf32>
    %19 = tpu.matmul %1, %2, %cst {dimension_numbers = #tpu.dot_dimension_numbers<[1], [0], [0], [1], [0, 0, 1, 1], [], []>} : vector<24x16xf32>, vector<16x128xf32>, vector<24x128xf32> -> vector<24x128xf32>
    %20 = vector.extract_strided_slice %19 {offsets = [0, 0], sizes = [8, 128], strides = [1, 1]} : vector<24x128xf32> to vector<8x128xf32>
    %21 = vector.extract_strided_slice %19 {offsets = [8, 0], sizes = [8, 128], strides = [1, 1]} : vector<24x128xf32> to vector<8x128xf32>
    %22 = vector.extract_strided_slice %19 {offsets = [16, 0], sizes = [8, 128], strides = [1, 1]} : vector<24x128xf32> to vector<8x128xf32>
    %23 = arith.mulf %20, %20 : vector<8x128xf32>
    %24 = arith.mulf %21, %21 : vector<8x128xf32>
    %25 = arith.addf %23, %24 : vector<8x128xf32>
    %26 = arith.mulf %22, %22 : vector<8x128xf32>
    %27 = arith.addf %25, %26 : vector<8x128xf32>
    "tpu.trace_start"() <{level = 10 : i32, message = "jvp"}> : () -> ()
    %cst_14 = arith.constant 9.99999974E-5 : f32
    %28 = vector.broadcast %cst_14 : f32 to vector<8x128xf32>
    %29 = arith.maximumf %27, %28 : vector<8x128xf32>
    %30 = arith.cmpf oeq, %27, %29 : vector<8x128xf32>
    %cst_15 = arith.constant 1.000000e+00 : f32
    %31 = vector.broadcast %cst_15 : f32 to vector<8x128xf32>
    %cst_16 = arith.constant 0.000000e+00 : f32
    %32 = vector.broadcast %cst_16 : f32 to vector<8x128xf32>
    %33 = arith.select %30, %31, %32 : vector<8x128xi1>, vector<8x128xf32>
    %cst_17 = arith.constant 9.99999974E-5 : f32
    %34 = vector.broadcast %cst_17 : f32 to vector<8x128xf32>
    %35 = arith.cmpf oeq, %34, %29 : vector<8x128xf32>
    %cst_18 = arith.constant 2.000000e+00 : f32
    %36 = vector.broadcast %cst_18 : f32 to vector<8x128xf32>
    %cst_19 = arith.constant 1.000000e+00 : f32
    %37 = vector.broadcast %cst_19 : f32 to vector<8x128xf32>
    %38 = arith.select %35, %36, %37 : vector<8x128xi1>, vector<8x128xf32>
    %39 = arith.divf %33, %38 : vector<8x128xf32>
    %40 = math.sqrt %29 : vector<8x128xf32>
    %cst_20 = arith.constant 5.000000e-01 : f32
    %41 = vector.broadcast %cst_20 : f32 to vector<8x128xf32>
    %42 = arith.divf %41, %40 : vector<8x128xf32>
    %cst_21 = arith.constant 2.000000e-01 : f32
    %43 = vector.broadcast %cst_21 : f32 to vector<8x128xf32>
    %44 = arith.mulf %40, %43 : vector<8x128xf32>
    %cst_22 = arith.constant 1.000000e+00 : f32
    %45 = vector.broadcast %cst_22 : f32 to vector<8x128xf32>
    %46 = arith.minimumf %44, %45 : vector<8x128xf32>
    %47 = arith.cmpf oeq, %44, %46 : vector<8x128xf32>
    %cst_23 = arith.constant 1.000000e+00 : f32
    %48 = vector.broadcast %cst_23 : f32 to vector<8x128xf32>
    %cst_24 = arith.constant 0.000000e+00 : f32
    %49 = vector.broadcast %cst_24 : f32 to vector<8x128xf32>
    %50 = arith.select %47, %48, %49 : vector<8x128xi1>, vector<8x128xf32>
    %cst_25 = arith.constant 1.000000e+00 : f32
    %51 = vector.broadcast %cst_25 : f32 to vector<8x128xf32>
    %52 = arith.cmpf oeq, %51, %46 : vector<8x128xf32>
    %cst_26 = arith.constant 2.000000e+00 : f32
    %53 = vector.broadcast %cst_26 : f32 to vector<8x128xf32>
    %cst_27 = arith.constant 1.000000e+00 : f32
    %54 = vector.broadcast %cst_27 : f32 to vector<8x128xf32>
    %55 = arith.select %52, %53, %54 : vector<8x128xi1>, vector<8x128xf32>
    %56 = arith.divf %50, %55 : vector<8x128xf32>
    %57 = arith.mulf %46, %46 : vector<8x128xf32>
    %cst_28 = arith.constant 1.000000e+00 : f32
    %58 = vector.broadcast %cst_28 : f32 to vector<8x128xf32>
    %59 = arith.subf %58, %57 : vector<8x128xf32>
    %60 = arith.mulf %59, %59 : vector<8x128xf32>
    %cst_29 = arith.constant 2.000000e+00 : f32
    %61 = vector.broadcast %cst_29 : f32 to vector<8x128xf32>
    %62 = arith.mulf %61, %59 : vector<8x128xf32>
    %63 = vector.extract_strided_slice %40 {offsets = [0, 0], sizes = [1, 128], strides = [1, 1]} : vector<8x128xf32> to vector<1x128xf32>
    %64 = vector.broadcast %63 : vector<1x128xf32> to vector<16x128xf32>
    %65 = vector.broadcast %13 : vector<16x1xf32> to vector<16x128xf32>
    %66 = arith.subf %64, %65 : vector<16x128xf32>
    %67 = arith.mulf %66, %66 : vector<16x128xf32>
    %cst_30 = arith.constant 2.000000e+00 : f32
    %68 = vector.broadcast %cst_30 : f32 to vector<16x128xf32>
    %69 = arith.mulf %68, %66 : vector<16x128xf32>
    %cst_31 = arith.constant -4.500000e+00 : f32
    %70 = vector.broadcast %cst_31 : f32 to vector<16x128xf32>
    %71 = arith.mulf %70, %67 : vector<16x128xf32>
    %72 = math.exp %71 : vector<16x128xf32>
    %cst_32 = arith.constant dense<0.000000e+00> : vector<32x128xf32>
    %73 = tpu.matmul %8, %72, %cst_32 {dimension_numbers = #tpu.dot_dimension_numbers<[1], [0], [0], [1], [0, 0, 1, 1], [], []>} : vector<32x16xf32>, vector<16x128xf32>, vector<32x128xf32> -> vector<32x128xf32>
    %74 = vector.broadcast %14 : vector<32x1xf32> to vector<32x128xf32>
    %75 = arith.addf %73, %74 : vector<32x128xf32>
    %76 = vector.extract_strided_slice %60 {offsets = [0, 0], sizes = [1, 128], strides = [1, 1]} : vector<8x128xf32> to vector<1x128xf32>
    %77 = vector.broadcast %76 : vector<1x128xf32> to vector<32x128xf32>
    %78 = arith.mulf %75, %77 : vector<32x128xf32>
    %79 = arith.mulf %78, %4 : vector<32x128xf32>
    %80 = vector.extract_strided_slice %40 {offsets = [1, 0], sizes = [1, 128], strides = [1, 1]} : vector<8x128xf32> to vector<1x128xf32>
    %81 = vector.broadcast %80 : vector<1x128xf32> to vector<16x128xf32>
    %82 = vector.broadcast %13 : vector<16x1xf32> to vector<16x128xf32>
    %83 = arith.subf %81, %82 : vector<16x128xf32>
    %84 = arith.mulf %83, %83 : vector<16x128xf32>
    %cst_33 = arith.constant 2.000000e+00 : f32
    %85 = vector.broadcast %cst_33 : f32 to vector<16x128xf32>
    %86 = arith.mulf %85, %83 : vector<16x128xf32>
    %cst_34 = arith.constant -4.500000e+00 : f32
    %87 = vector.broadcast %cst_34 : f32 to vector<16x128xf32>
    %88 = arith.mulf %87, %84 : vector<16x128xf32>
    %89 = math.exp %88 : vector<16x128xf32>
    %cst_35 = arith.constant dense<0.000000e+00> : vector<32x128xf32>
    %90 = tpu.matmul %8, %89, %cst_35 {dimension_numbers = #tpu.dot_dimension_numbers<[1], [0], [0], [1], [0, 0, 1, 1], [], []>} : vector<32x16xf32>, vector<16x128xf32>, vector<32x128xf32> -> vector<32x128xf32>
    %91 = vector.broadcast %14 : vector<32x1xf32> to vector<32x128xf32>
    %92 = arith.addf %90, %91 : vector<32x128xf32>
    %93 = vector.extract_strided_slice %60 {offsets = [1, 0], sizes = [1, 128], strides = [1, 1]} : vector<8x128xf32> to vector<1x128xf32>
    %94 = vector.broadcast %93 : vector<1x128xf32> to vector<32x128xf32>
    %95 = arith.mulf %92, %94 : vector<32x128xf32>
    %96 = arith.mulf %95, %4 : vector<32x128xf32>
    %97 = vector.extract_strided_slice %40 {offsets = [2, 0], sizes = [1, 128], strides = [1, 1]} : vector<8x128xf32> to vector<1x128xf32>
    %98 = vector.broadcast %97 : vector<1x128xf32> to vector<16x128xf32>
    %99 = vector.broadcast %13 : vector<16x1xf32> to vector<16x128xf32>
    %100 = arith.subf %98, %99 : vector<16x128xf32>
    %101 = arith.mulf %100, %100 : vector<16x128xf32>
    %cst_36 = arith.constant 2.000000e+00 : f32
    %102 = vector.broadcast %cst_36 : f32 to vector<16x128xf32>
    %103 = arith.mulf %102, %100 : vector<16x128xf32>
    %cst_37 = arith.constant -4.500000e+00 : f32
    %104 = vector.broadcast %cst_37 : f32 to vector<16x128xf32>
    %105 = arith.mulf %104, %101 : vector<16x128xf32>
    %106 = math.exp %105 : vector<16x128xf32>
    %cst_38 = arith.constant dense<0.000000e+00> : vector<32x128xf32>
    %107 = tpu.matmul %8, %106, %cst_38 {dimension_numbers = #tpu.dot_dimension_numbers<[1], [0], [0], [1], [0, 0, 1, 1], [], []>} : vector<32x16xf32>, vector<16x128xf32>, vector<32x128xf32> -> vector<32x128xf32>
    %108 = vector.broadcast %14 : vector<32x1xf32> to vector<32x128xf32>
    %109 = arith.addf %107, %108 : vector<32x128xf32>
    %110 = vector.extract_strided_slice %60 {offsets = [2, 0], sizes = [1, 128], strides = [1, 1]} : vector<8x128xf32> to vector<1x128xf32>
    %111 = vector.broadcast %110 : vector<1x128xf32> to vector<32x128xf32>
    %112 = arith.mulf %109, %111 : vector<32x128xf32>
    %113 = arith.mulf %112, %4 : vector<32x128xf32>
    %114 = vector.extract_strided_slice %40 {offsets = [3, 0], sizes = [1, 128], strides = [1, 1]} : vector<8x128xf32> to vector<1x128xf32>
    %115 = vector.broadcast %114 : vector<1x128xf32> to vector<16x128xf32>
    %116 = vector.broadcast %13 : vector<16x1xf32> to vector<16x128xf32>
    %117 = arith.subf %115, %116 : vector<16x128xf32>
    %118 = arith.mulf %117, %117 : vector<16x128xf32>
    %cst_39 = arith.constant 2.000000e+00 : f32
    %119 = vector.broadcast %cst_39 : f32 to vector<16x128xf32>
    %120 = arith.mulf %119, %117 : vector<16x128xf32>
    %cst_40 = arith.constant -4.500000e+00 : f32
    %121 = vector.broadcast %cst_40 : f32 to vector<16x128xf32>
    %122 = arith.mulf %121, %118 : vector<16x128xf32>
    %123 = math.exp %122 : vector<16x128xf32>
    %cst_41 = arith.constant dense<0.000000e+00> : vector<32x128xf32>
    %124 = tpu.matmul %8, %123, %cst_41 {dimension_numbers = #tpu.dot_dimension_numbers<[1], [0], [0], [1], [0, 0, 1, 1], [], []>} : vector<32x16xf32>, vector<16x128xf32>, vector<32x128xf32> -> vector<32x128xf32>
    %125 = vector.broadcast %14 : vector<32x1xf32> to vector<32x128xf32>
    %126 = arith.addf %124, %125 : vector<32x128xf32>
    %127 = vector.extract_strided_slice %60 {offsets = [3, 0], sizes = [1, 128], strides = [1, 1]} : vector<8x128xf32> to vector<1x128xf32>
    %128 = vector.broadcast %127 : vector<1x128xf32> to vector<32x128xf32>
    %129 = arith.mulf %126, %128 : vector<32x128xf32>
    %130 = arith.mulf %129, %4 : vector<32x128xf32>
    %131 = vector.extract_strided_slice %40 {offsets = [4, 0], sizes = [1, 128], strides = [1, 1]} : vector<8x128xf32> to vector<1x128xf32>
    %132 = vector.broadcast %131 : vector<1x128xf32> to vector<16x128xf32>
    %133 = vector.broadcast %13 : vector<16x1xf32> to vector<16x128xf32>
    %134 = arith.subf %132, %133 : vector<16x128xf32>
    %135 = arith.mulf %134, %134 : vector<16x128xf32>
    %cst_42 = arith.constant 2.000000e+00 : f32
    %136 = vector.broadcast %cst_42 : f32 to vector<16x128xf32>
    %137 = arith.mulf %136, %134 : vector<16x128xf32>
    %cst_43 = arith.constant -4.500000e+00 : f32
    %138 = vector.broadcast %cst_43 : f32 to vector<16x128xf32>
    %139 = arith.mulf %138, %135 : vector<16x128xf32>
    %140 = math.exp %139 : vector<16x128xf32>
    %cst_44 = arith.constant dense<0.000000e+00> : vector<32x128xf32>
    %141 = tpu.matmul %8, %140, %cst_44 {dimension_numbers = #tpu.dot_dimension_numbers<[1], [0], [0], [1], [0, 0, 1, 1], [], []>} : vector<32x16xf32>, vector<16x128xf32>, vector<32x128xf32> -> vector<32x128xf32>
    %142 = vector.broadcast %14 : vector<32x1xf32> to vector<32x128xf32>
    %143 = arith.addf %141, %142 : vector<32x128xf32>
    %144 = vector.extract_strided_slice %60 {offsets = [4, 0], sizes = [1, 128], strides = [1, 1]} : vector<8x128xf32> to vector<1x128xf32>
    %145 = vector.broadcast %144 : vector<1x128xf32> to vector<32x128xf32>
    %146 = arith.mulf %143, %145 : vector<32x128xf32>
    %147 = arith.mulf %146, %4 : vector<32x128xf32>
    %148 = vector.extract_strided_slice %40 {offsets = [5, 0], sizes = [1, 128], strides = [1, 1]} : vector<8x128xf32> to vector<1x128xf32>
    %149 = vector.broadcast %148 : vector<1x128xf32> to vector<16x128xf32>
    %150 = vector.broadcast %13 : vector<16x1xf32> to vector<16x128xf32>
    %151 = arith.subf %149, %150 : vector<16x128xf32>
    %152 = arith.mulf %151, %151 : vector<16x128xf32>
    %cst_45 = arith.constant 2.000000e+00 : f32
    %153 = vector.broadcast %cst_45 : f32 to vector<16x128xf32>
    %154 = arith.mulf %153, %151 : vector<16x128xf32>
    %cst_46 = arith.constant -4.500000e+00 : f32
    %155 = vector.broadcast %cst_46 : f32 to vector<16x128xf32>
    %156 = arith.mulf %155, %152 : vector<16x128xf32>
    %157 = math.exp %156 : vector<16x128xf32>
    %cst_47 = arith.constant dense<0.000000e+00> : vector<32x128xf32>
    %158 = tpu.matmul %8, %157, %cst_47 {dimension_numbers = #tpu.dot_dimension_numbers<[1], [0], [0], [1], [0, 0, 1, 1], [], []>} : vector<32x16xf32>, vector<16x128xf32>, vector<32x128xf32> -> vector<32x128xf32>
    %159 = vector.broadcast %14 : vector<32x1xf32> to vector<32x128xf32>
    %160 = arith.addf %158, %159 : vector<32x128xf32>
    %161 = vector.extract_strided_slice %60 {offsets = [5, 0], sizes = [1, 128], strides = [1, 1]} : vector<8x128xf32> to vector<1x128xf32>
    %162 = vector.broadcast %161 : vector<1x128xf32> to vector<32x128xf32>
    %163 = arith.mulf %160, %162 : vector<32x128xf32>
    %164 = arith.mulf %163, %4 : vector<32x128xf32>
    %165 = vector.extract_strided_slice %40 {offsets = [6, 0], sizes = [1, 128], strides = [1, 1]} : vector<8x128xf32> to vector<1x128xf32>
    %166 = vector.broadcast %165 : vector<1x128xf32> to vector<16x128xf32>
    %167 = vector.broadcast %13 : vector<16x1xf32> to vector<16x128xf32>
    %168 = arith.subf %166, %167 : vector<16x128xf32>
    %169 = arith.mulf %168, %168 : vector<16x128xf32>
    %cst_48 = arith.constant 2.000000e+00 : f32
    %170 = vector.broadcast %cst_48 : f32 to vector<16x128xf32>
    %171 = arith.mulf %170, %168 : vector<16x128xf32>
    %cst_49 = arith.constant -4.500000e+00 : f32
    %172 = vector.broadcast %cst_49 : f32 to vector<16x128xf32>
    %173 = arith.mulf %172, %169 : vector<16x128xf32>
    %174 = math.exp %173 : vector<16x128xf32>
    %cst_50 = arith.constant dense<0.000000e+00> : vector<32x128xf32>
    %175 = tpu.matmul %8, %174, %cst_50 {dimension_numbers = #tpu.dot_dimension_numbers<[1], [0], [0], [1], [0, 0, 1, 1], [], []>} : vector<32x16xf32>, vector<16x128xf32>, vector<32x128xf32> -> vector<32x128xf32>
    %176 = vector.broadcast %14 : vector<32x1xf32> to vector<32x128xf32>
    %177 = arith.addf %175, %176 : vector<32x128xf32>
    %178 = vector.extract_strided_slice %60 {offsets = [6, 0], sizes = [1, 128], strides = [1, 1]} : vector<8x128xf32> to vector<1x128xf32>
    %179 = vector.broadcast %178 : vector<1x128xf32> to vector<32x128xf32>
    %180 = arith.mulf %177, %179 : vector<32x128xf32>
    %181 = arith.mulf %180, %4 : vector<32x128xf32>
    %182 = vector.extract_strided_slice %40 {offsets = [7, 0], sizes = [1, 128], strides = [1, 1]} : vector<8x128xf32> to vector<1x128xf32>
    %183 = vector.broadcast %182 : vector<1x128xf32> to vector<16x128xf32>
    %184 = vector.broadcast %13 : vector<16x1xf32> to vector<16x128xf32>
    %185 = arith.subf %183, %184 : vector<16x128xf32>
    %186 = arith.mulf %185, %185 : vector<16x128xf32>
    %cst_51 = arith.constant 2.000000e+00 : f32
    %187 = vector.broadcast %cst_51 : f32 to vector<16x128xf32>
    %188 = arith.mulf %187, %185 : vector<16x128xf32>
    %cst_52 = arith.constant -4.500000e+00 : f32
    %189 = vector.broadcast %cst_52 : f32 to vector<16x128xf32>
    %190 = arith.mulf %189, %186 : vector<16x128xf32>
    %191 = math.exp %190 : vector<16x128xf32>
    %cst_53 = arith.constant dense<0.000000e+00> : vector<32x128xf32>
    %192 = tpu.matmul %8, %191, %cst_53 {dimension_numbers = #tpu.dot_dimension_numbers<[1], [0], [0], [1], [0, 0, 1, 1], [], []>} : vector<32x16xf32>, vector<16x128xf32>, vector<32x128xf32> -> vector<32x128xf32>
    %193 = vector.broadcast %14 : vector<32x1xf32> to vector<32x128xf32>
    %194 = arith.addf %192, %193 : vector<32x128xf32>
    %195 = vector.extract_strided_slice %60 {offsets = [7, 0], sizes = [1, 128], strides = [1, 1]} : vector<8x128xf32> to vector<1x128xf32>
    %196 = vector.broadcast %195 : vector<1x128xf32> to vector<32x128xf32>
    %197 = arith.mulf %194, %196 : vector<32x128xf32>
    %198 = arith.mulf %197, %4 : vector<32x128xf32>
    %199 = tpu.concatenate %79, %96, %113, %130, %147, %164, %181, %198 in 1 : vector<32x128xf32>, vector<32x128xf32>, vector<32x128xf32>, vector<32x128xf32>, vector<32x128xf32>, vector<32x128xf32>, vector<32x128xf32>, vector<32x128xf32> -> vector<32x1024xf32>
    %cst_54 = arith.constant dense<0.000000e+00> : vector<32x128xf32>
    %200 = tpu.matmul %199, %3, %cst_54 {dimension_numbers = #tpu.dot_dimension_numbers<[1], [0], [0], [1], [0, 0, 1, 1], [], []>} : vector<32x1024xf32>, vector<1024x128xf32>, vector<32x128xf32> -> vector<32x128xf32>
    %cst_55 = arith.constant dense<0.000000e+00> : vector<32x128xf32>
    %201 = tpu.matmul %6, %200, %cst_55 {dimension_numbers = #tpu.dot_dimension_numbers<[1], [0], [0], [1], [0, 0, 1, 1], [], []>} : vector<32x32xf32>, vector<32x128xf32>, vector<32x128xf32> -> vector<32x128xf32>
    %202 = vector.broadcast %15 : vector<32x1xf32> to vector<32x128xf32>
    %203 = arith.addf %201, %202 : vector<32x128xf32>
    %204 = math.tanh %203 : vector<32x128xf32>
    %cst_56 = arith.constant 1.000000e+00 : f32
    %205 = vector.broadcast %cst_56 : f32 to vector<32x128xf32>
    %206 = arith.subf %205, %204 : vector<32x128xf32>
    %207 = arith.addf %5, %204 : vector<32x128xf32>
    %cst_57 = arith.constant dense<0.000000e+00> : vector<32x128xf32>
    %208 = tpu.matmul %7, %207, %cst_57 {dimension_numbers = #tpu.dot_dimension_numbers<[1], [0], [0], [1], [0, 0, 1, 1], [], []>} : vector<32x32xf32>, vector<32x128xf32>, vector<32x128xf32> -> vector<32x128xf32>
    %209 = vector.broadcast %16 : vector<32x1xf32> to vector<32x128xf32>
    %210 = arith.addf %208, %209 : vector<32x128xf32>
    %211 = math.tanh %210 : vector<32x128xf32>
    %cst_58 = arith.constant 1.000000e+00 : f32
    %212 = vector.broadcast %cst_58 : f32 to vector<32x128xf32>
    %213 = arith.subf %212, %211 : vector<32x128xf32>
    %cst_59 = arith.constant dense<0.000000e+00> : vector<1x128xf32>
    %214 = tpu.matmul %17, %211, %cst_59 {dimension_numbers = #tpu.dot_dimension_numbers<[1], [0], [0], [1], [0, 0, 1, 1], [], []>} : vector<1x32xf32>, vector<32x128xf32>, vector<1x128xf32> -> vector<1x128xf32>
    %215 = vector.broadcast %18 : vector<1x1xf32> to vector<1x128xf32>
    %216 = arith.addf %214, %215 : vector<1x128xf32>
    %cst_60 = arith.constant dense<0.000000e+00> : vector<1x128xf32>
    %217 = tpu.matmul %216, %10, %cst_60 {dimension_numbers = #tpu.dot_dimension_numbers<[1], [0], [0], [1], [0, 0, 1, 1], [], []>} : vector<1x128xf32>, vector<128x128xf32>, vector<1x128xf32> -> vector<1x128xf32>
    %cst_61 = arith.constant 1.000000e+00 : f32
    "tpu.trace_stop"() : () -> ()
    "tpu.trace_start"() <{level = 10 : i32, message = "transpose"}> : () -> ()
    "tpu.trace_start"() <{level = 10 : i32, message = "jvp"}> : () -> ()
    %218 = vector.broadcast %cst_61 : f32 to vector<1x128xf32>
    %cst_62 = arith.constant dense<0.000000e+00> : vector<128x32xf32>
    %219 = tpu.matmul %218, %17, %cst_62 {dimension_numbers = #tpu.dot_dimension_numbers<[0], [0], [1], [1], [0, 1, 1, 1], [], []>} : vector<1x128xf32>, vector<1x32xf32>, vector<128x32xf32> -> vector<128x32xf32>
    %220 = tpu.transpose %219, [1, 0] : vector<128x32xf32> -> vector<32x128xf32>
    %221 = arith.mulf %220, %213 : vector<32x128xf32>
    %222 = arith.mulf %221, %211 : vector<32x128xf32>
    %223 = arith.addf %221, %222 : vector<32x128xf32>
    %cst_63 = arith.constant dense<0.000000e+00> : vector<128x32xf32>
    %224 = tpu.matmul %223, %7, %cst_63 {dimension_numbers = #tpu.dot_dimension_numbers<[0], [0], [1], [1], [0, 1, 1, 1], [], []>} : vector<32x128xf32>, vector<32x32xf32>, vector<128x32xf32> -> vector<128x32xf32>
    %225 = tpu.transpose %224, [1, 0] : vector<128x32xf32> -> vector<32x128xf32>
    %226 = arith.mulf %225, %206 : vector<32x128xf32>
    %227 = arith.mulf %226, %204 : vector<32x128xf32>
    %228 = arith.addf %226, %227 : vector<32x128xf32>
    %cst_64 = arith.constant dense<0.000000e+00> : vector<128x32xf32>
    %229 = tpu.matmul %228, %6, %cst_64 {dimension_numbers = #tpu.dot_dimension_numbers<[0], [0], [1], [1], [0, 1, 1, 1], [], []>} : vector<32x128xf32>, vector<32x32xf32>, vector<128x32xf32> -> vector<128x32xf32>
    %230 = tpu.transpose %229, [1, 0] : vector<128x32xf32> -> vector<32x128xf32>
    %cst_65 = arith.constant dense<0.000000e+00> : vector<32x1024xf32>
    %231 = tpu.matmul %230, %3, %cst_65 {dimension_numbers = #tpu.dot_dimension_numbers<[1], [1], [0], [0], [0, 0, 1, 0], [], []>} : vector<32x128xf32>, vector<1024x128xf32>, vector<32x1024xf32> -> vector<32x1024xf32>
    %232 = vector.extract_strided_slice %231 {offsets = [0, 0], sizes = [32, 128], strides = [1, 1]} : vector<32x1024xf32> to vector<32x128xf32>
    %233 = vector.extract_strided_slice %231 {offsets = [0, 128], sizes = [32, 128], strides = [1, 1]} : vector<32x1024xf32> to vector<32x128xf32>
    %234 = vector.extract_strided_slice %231 {offsets = [0, 256], sizes = [32, 128], strides = [1, 1]} : vector<32x1024xf32> to vector<32x128xf32>
    %235 = vector.extract_strided_slice %231 {offsets = [0, 384], sizes = [32, 128], strides = [1, 1]} : vector<32x1024xf32> to vector<32x128xf32>
    %236 = vector.extract_strided_slice %231 {offsets = [0, 512], sizes = [32, 128], strides = [1, 1]} : vector<32x1024xf32> to vector<32x128xf32>
    %237 = vector.extract_strided_slice %231 {offsets = [0, 640], sizes = [32, 128], strides = [1, 1]} : vector<32x1024xf32> to vector<32x128xf32>
    %238 = vector.extract_strided_slice %231 {offsets = [0, 768], sizes = [32, 128], strides = [1, 1]} : vector<32x1024xf32> to vector<32x128xf32>
    %239 = vector.extract_strided_slice %231 {offsets = [0, 896], sizes = [32, 128], strides = [1, 1]} : vector<32x1024xf32> to vector<32x128xf32>
    %240 = arith.mulf %239, %4 : vector<32x128xf32>
    %241 = arith.mulf %194, %240 : vector<32x128xf32>
    %cst_66 = arith.constant dense<0.000000e+00> : vector<128xf32>
    %242 = vector.multi_reduction <add>, %241, %cst_66 [0] : vector<32x128xf32> to vector<128xf32>
    %243 = vector.shape_cast %242 : vector<128xf32> to vector<1x128xf32>
    %244 = vector.broadcast %195 : vector<1x128xf32> to vector<32x128xf32>
    %245 = arith.mulf %240, %244 : vector<32x128xf32>
    %cst_67 = arith.constant 0.000000e+00 : f32
    %246 = vector.broadcast %cst_67 : f32 to vector<7x128xf32>
    %247 = tpu.concatenate %246, %243 in 0 : vector<7x128xf32>, vector<1x128xf32> -> vector<8x128xf32>
    %cst_68 = arith.constant dense<0.000000e+00> : vector<128x16xf32>
    %248 = tpu.matmul %245, %8, %cst_68 {dimension_numbers = #tpu.dot_dimension_numbers<[0], [0], [1], [1], [0, 1, 1, 1], [], []>} : vector<32x128xf32>, vector<32x16xf32>, vector<128x16xf32> -> vector<128x16xf32>
    %249 = tpu.transpose %248, [1, 0] : vector<128x16xf32> -> vector<16x128xf32>
    %250 = arith.mulf %249, %191 : vector<16x128xf32>
    %cst_69 = arith.constant -4.500000e+00 : f32
    %251 = vector.broadcast %cst_69 : f32 to vector<16x128xf32>
    %252 = arith.mulf %251, %250 : vector<16x128xf32>
    %253 = arith.mulf %252, %188 : vector<16x128xf32>
    %cst_70 = arith.constant dense<0.000000e+00> : vector<128xf32>
    %254 = vector.multi_reduction <add>, %253, %cst_70 [0] : vector<16x128xf32> to vector<128xf32>
    %255 = vector.shape_cast %254 : vector<128xf32> to vector<1x128xf32>
    %cst_71 = arith.constant 0.000000e+00 : f32
    %256 = vector.broadcast %cst_71 : f32 to vector<7x128xf32>
    %257 = tpu.concatenate %256, %255 in 0 : vector<7x128xf32>, vector<1x128xf32> -> vector<8x128xf32>
    %258 = arith.mulf %238, %4 : vector<32x128xf32>
    %259 = arith.mulf %177, %258 : vector<32x128xf32>
    %cst_72 = arith.constant dense<0.000000e+00> : vector<128xf32>
    %260 = vector.multi_reduction <add>, %259, %cst_72 [0] : vector<32x128xf32> to vector<128xf32>
    %261 = vector.shape_cast %260 : vector<128xf32> to vector<1x128xf32>
    %262 = vector.broadcast %178 : vector<1x128xf32> to vector<32x128xf32>
    %263 = arith.mulf %258, %262 : vector<32x128xf32>
    %cst_73 = arith.constant 0.000000e+00 : f32
    %264 = vector.broadcast %cst_73 : f32 to vector<6x128xf32>
    %265 = tpu.concatenate %264, %261 in 0 : vector<6x128xf32>, vector<1x128xf32> -> vector<7x128xf32>
    %266 = vector.broadcast %cst_73 : f32 to vector<1x128xf32>
    %267 = tpu.concatenate %265, %266 in 0 : vector<7x128xf32>, vector<1x128xf32> -> vector<8x128xf32>
    %268 = arith.addf %247, %267 : vector<8x128xf32>
    %cst_74 = arith.constant dense<0.000000e+00> : vector<128x16xf32>
    %269 = tpu.matmul %263, %8, %cst_74 {dimension_numbers = #tpu.dot_dimension_numbers<[0], [0], [1], [1], [0, 1, 1, 1], [], []>} : vector<32x128xf32>, vector<32x16xf32>, vector<128x16xf32> -> vector<128x16xf32>
    %270 = tpu.transpose %269, [1, 0] : vector<128x16xf32> -> vector<16x128xf32>
    %271 = arith.mulf %270, %174 : vector<16x128xf32>
    %cst_75 = arith.constant -4.500000e+00 : f32
    %272 = vector.broadcast %cst_75 : f32 to vector<16x128xf32>
    %273 = arith.mulf %272, %271 : vector<16x128xf32>
    %274 = arith.mulf %273, %171 : vector<16x128xf32>
    %cst_76 = arith.constant dense<0.000000e+00> : vector<128xf32>
    %275 = vector.multi_reduction <add>, %274, %cst_76 [0] : vector<16x128xf32> to vector<128xf32>
    %276 = vector.shape_cast %275 : vector<128xf32> to vector<1x128xf32>
    %cst_77 = arith.constant 0.000000e+00 : f32
    %277 = vector.broadcast %cst_77 : f32 to vector<6x128xf32>
    %278 = tpu.concatenate %277, %276 in 0 : vector<6x128xf32>, vector<1x128xf32> -> vector<7x128xf32>
    %279 = vector.broadcast %cst_77 : f32 to vector<1x128xf32>
    %280 = tpu.concatenate %278, %279 in 0 : vector<7x128xf32>, vector<1x128xf32> -> vector<8x128xf32>
    %281 = arith.addf %257, %280 : vector<8x128xf32>
    %282 = arith.mulf %237, %4 : vector<32x128xf32>
    %283 = arith.mulf %160, %282 : vector<32x128xf32>
    %cst_78 = arith.constant dense<0.000000e+00> : vector<128xf32>
    %284 = vector.multi_reduction <add>, %283, %cst_78 [0] : vector<32x128xf32> to vector<128xf32>
    %285 = vector.shape_cast %284 : vector<128xf32> to vector<1x128xf32>
    %286 = vector.broadcast %161 : vector<1x128xf32> to vector<32x128xf32>
    %287 = arith.mulf %282, %286 : vector<32x128xf32>
    %cst_79 = arith.constant 0.000000e+00 : f32
    %288 = vector.broadcast %cst_79 : f32 to vector<5x128xf32>
    %289 = tpu.concatenate %288, %285 in 0 : vector<5x128xf32>, vector<1x128xf32> -> vector<6x128xf32>
    %290 = vector.broadcast %cst_79 : f32 to vector<2x128xf32>
    %291 = tpu.concatenate %289, %290 in 0 : vector<6x128xf32>, vector<2x128xf32> -> vector<8x128xf32>
    %292 = arith.addf %268, %291 : vector<8x128xf32>
    %cst_80 = arith.constant dense<0.000000e+00> : vector<128x16xf32>
    %293 = tpu.matmul %287, %8, %cst_80 {dimension_numbers = #tpu.dot_dimension_numbers<[0], [0], [1], [1], [0, 1, 1, 1], [], []>} : vector<32x128xf32>, vector<32x16xf32>, vector<128x16xf32> -> vector<128x16xf32>
    %294 = tpu.transpose %293, [1, 0] : vector<128x16xf32> -> vector<16x128xf32>
    %295 = arith.mulf %294, %157 : vector<16x128xf32>
    %cst_81 = arith.constant -4.500000e+00 : f32
    %296 = vector.broadcast %cst_81 : f32 to vector<16x128xf32>
    %297 = arith.mulf %296, %295 : vector<16x128xf32>
    %298 = arith.mulf %297, %154 : vector<16x128xf32>
    %cst_82 = arith.constant dense<0.000000e+00> : vector<128xf32>
    %299 = vector.multi_reduction <add>, %298, %cst_82 [0] : vector<16x128xf32> to vector<128xf32>
    %300 = vector.shape_cast %299 : vector<128xf32> to vector<1x128xf32>
    %cst_83 = arith.constant 0.000000e+00 : f32
    %301 = vector.broadcast %cst_83 : f32 to vector<5x128xf32>
    %302 = tpu.concatenate %301, %300 in 0 : vector<5x128xf32>, vector<1x128xf32> -> vector<6x128xf32>
    %303 = vector.broadcast %cst_83 : f32 to vector<2x128xf32>
    %304 = tpu.concatenate %302, %303 in 0 : vector<6x128xf32>, vector<2x128xf32> -> vector<8x128xf32>
    %305 = arith.addf %281, %304 : vector<8x128xf32>
    %306 = arith.mulf %236, %4 : vector<32x128xf32>
    %307 = arith.mulf %143, %306 : vector<32x128xf32>
    %cst_84 = arith.constant dense<0.000000e+00> : vector<128xf32>
    %308 = vector.multi_reduction <add>, %307, %cst_84 [0] : vector<32x128xf32> to vector<128xf32>
    %309 = vector.shape_cast %308 : vector<128xf32> to vector<1x128xf32>
    %310 = vector.broadcast %144 : vector<1x128xf32> to vector<32x128xf32>
    %311 = arith.mulf %306, %310 : vector<32x128xf32>
    %cst_85 = arith.constant 0.000000e+00 : f32
    %312 = vector.broadcast %cst_85 : f32 to vector<4x128xf32>
    %313 = tpu.concatenate %312, %309 in 0 : vector<4x128xf32>, vector<1x128xf32> -> vector<5x128xf32>
    %314 = vector.broadcast %cst_85 : f32 to vector<3x128xf32>
    %315 = tpu.concatenate %313, %314 in 0 : vector<5x128xf32>, vector<3x128xf32> -> vector<8x128xf32>
    %316 = arith.addf %292, %315 : vector<8x128xf32>
    %cst_86 = arith.constant dense<0.000000e+00> : vector<128x16xf32>
    %317 = tpu.matmul %311, %8, %cst_86 {dimension_numbers = #tpu.dot_dimension_numbers<[0], [0], [1], [1], [0, 1, 1, 1], [], []>} : vector<32x128xf32>, vector<32x16xf32>, vector<128x16xf32> -> vector<128x16xf32>
    %318 = tpu.transpose %317, [1, 0] : vector<128x16xf32> -> vector<16x128xf32>
    %319 = arith.mulf %318, %140 : vector<16x128xf32>
    %cst_87 = arith.constant -4.500000e+00 : f32
    %320 = vector.broadcast %cst_87 : f32 to vector<16x128xf32>
    %321 = arith.mulf %320, %319 : vector<16x128xf32>
    %322 = arith.mulf %321, %137 : vector<16x128xf32>
    %cst_88 = arith.constant dense<0.000000e+00> : vector<128xf32>
    %323 = vector.multi_reduction <add>, %322, %cst_88 [0] : vector<16x128xf32> to vector<128xf32>
    %324 = vector.shape_cast %323 : vector<128xf32> to vector<1x128xf32>
    %cst_89 = arith.constant 0.000000e+00 : f32
    %325 = vector.broadcast %cst_89 : f32 to vector<4x128xf32>
    %326 = tpu.concatenate %325, %324 in 0 : vector<4x128xf32>, vector<1x128xf32> -> vector<5x128xf32>
    %327 = vector.broadcast %cst_89 : f32 to vector<3x128xf32>
    %328 = tpu.concatenate %326, %327 in 0 : vector<5x128xf32>, vector<3x128xf32> -> vector<8x128xf32>
    %329 = arith.addf %305, %328 : vector<8x128xf32>
    %330 = arith.mulf %235, %4 : vector<32x128xf32>
    %331 = arith.mulf %126, %330 : vector<32x128xf32>
    %cst_90 = arith.constant dense<0.000000e+00> : vector<128xf32>
    %332 = vector.multi_reduction <add>, %331, %cst_90 [0] : vector<32x128xf32> to vector<128xf32>
    %333 = vector.shape_cast %332 : vector<128xf32> to vector<1x128xf32>
    %334 = vector.broadcast %127 : vector<1x128xf32> to vector<32x128xf32>
    %335 = arith.mulf %330, %334 : vector<32x128xf32>
    %cst_91 = arith.constant 0.000000e+00 : f32
    %336 = vector.broadcast %cst_91 : f32 to vector<3x128xf32>
    %337 = tpu.concatenate %336, %333 in 0 : vector<3x128xf32>, vector<1x128xf32> -> vector<4x128xf32>
    %338 = vector.broadcast %cst_91 : f32 to vector<4x128xf32>
    %339 = tpu.concatenate %337, %338 in 0 : vector<4x128xf32>, vector<4x128xf32> -> vector<8x128xf32>
    %340 = arith.addf %316, %339 : vector<8x128xf32>
    %cst_92 = arith.constant dense<0.000000e+00> : vector<128x16xf32>
    %341 = tpu.matmul %335, %8, %cst_92 {dimension_numbers = #tpu.dot_dimension_numbers<[0], [0], [1], [1], [0, 1, 1, 1], [], []>} : vector<32x128xf32>, vector<32x16xf32>, vector<128x16xf32> -> vector<128x16xf32>
    %342 = tpu.transpose %341, [1, 0] : vector<128x16xf32> -> vector<16x128xf32>
    %343 = arith.mulf %342, %123 : vector<16x128xf32>
    %cst_93 = arith.constant -4.500000e+00 : f32
    %344 = vector.broadcast %cst_93 : f32 to vector<16x128xf32>
    %345 = arith.mulf %344, %343 : vector<16x128xf32>
    %346 = arith.mulf %345, %120 : vector<16x128xf32>
    %cst_94 = arith.constant dense<0.000000e+00> : vector<128xf32>
    %347 = vector.multi_reduction <add>, %346, %cst_94 [0] : vector<16x128xf32> to vector<128xf32>
    %348 = vector.shape_cast %347 : vector<128xf32> to vector<1x128xf32>
    %cst_95 = arith.constant 0.000000e+00 : f32
    %349 = vector.broadcast %cst_95 : f32 to vector<3x128xf32>
    %350 = tpu.concatenate %349, %348 in 0 : vector<3x128xf32>, vector<1x128xf32> -> vector<4x128xf32>
    %351 = vector.broadcast %cst_95 : f32 to vector<4x128xf32>
    %352 = tpu.concatenate %350, %351 in 0 : vector<4x128xf32>, vector<4x128xf32> -> vector<8x128xf32>
    %353 = arith.addf %329, %352 : vector<8x128xf32>
    %354 = arith.mulf %234, %4 : vector<32x128xf32>
    %355 = arith.mulf %109, %354 : vector<32x128xf32>
    %cst_96 = arith.constant dense<0.000000e+00> : vector<128xf32>
    %356 = vector.multi_reduction <add>, %355, %cst_96 [0] : vector<32x128xf32> to vector<128xf32>
    %357 = vector.shape_cast %356 : vector<128xf32> to vector<1x128xf32>
    %358 = vector.broadcast %110 : vector<1x128xf32> to vector<32x128xf32>
    %359 = arith.mulf %354, %358 : vector<32x128xf32>
    %cst_97 = arith.constant 0.000000e+00 : f32
    %360 = vector.broadcast %cst_97 : f32 to vector<2x128xf32>
    %361 = tpu.concatenate %360, %357 in 0 : vector<2x128xf32>, vector<1x128xf32> -> vector<3x128xf32>
    %362 = vector.broadcast %cst_97 : f32 to vector<5x128xf32>
    %363 = tpu.concatenate %361, %362 in 0 : vector<3x128xf32>, vector<5x128xf32> -> vector<8x128xf32>
    %364 = arith.addf %340, %363 : vector<8x128xf32>
    %cst_98 = arith.constant dense<0.000000e+00> : vector<128x16xf32>
    %365 = tpu.matmul %359, %8, %cst_98 {dimension_numbers = #tpu.dot_dimension_numbers<[0], [0], [1], [1], [0, 1, 1, 1], [], []>} : vector<32x128xf32>, vector<32x16xf32>, vector<128x16xf32> -> vector<128x16xf32>
    %366 = tpu.transpose %365, [1, 0] : vector<128x16xf32> -> vector<16x128xf32>
    %367 = arith.mulf %366, %106 : vector<16x128xf32>
    %cst_99 = arith.constant -4.500000e+00 : f32
    %368 = vector.broadcast %cst_99 : f32 to vector<16x128xf32>
    %369 = arith.mulf %368, %367 : vector<16x128xf32>
    %370 = arith.mulf %369, %103 : vector<16x128xf32>
    %cst_100 = arith.constant dense<0.000000e+00> : vector<128xf32>
    %371 = vector.multi_reduction <add>, %370, %cst_100 [0] : vector<16x128xf32> to vector<128xf32>
    %372 = vector.shape_cast %371 : vector<128xf32> to vector<1x128xf32>
    %cst_101 = arith.constant 0.000000e+00 : f32
    %373 = vector.broadcast %cst_101 : f32 to vector<2x128xf32>
    %374 = tpu.concatenate %373, %372 in 0 : vector<2x128xf32>, vector<1x128xf32> -> vector<3x128xf32>
    %375 = vector.broadcast %cst_101 : f32 to vector<5x128xf32>
    %376 = tpu.concatenate %374, %375 in 0 : vector<3x128xf32>, vector<5x128xf32> -> vector<8x128xf32>
    %377 = arith.addf %353, %376 : vector<8x128xf32>
    %378 = arith.mulf %233, %4 : vector<32x128xf32>
    %379 = arith.mulf %92, %378 : vector<32x128xf32>
    %cst_102 = arith.constant dense<0.000000e+00> : vector<128xf32>
    %380 = vector.multi_reduction <add>, %379, %cst_102 [0] : vector<32x128xf32> to vector<128xf32>
    %381 = vector.shape_cast %380 : vector<128xf32> to vector<1x128xf32>
    %382 = vector.broadcast %93 : vector<1x128xf32> to vector<32x128xf32>
    %383 = arith.mulf %378, %382 : vector<32x128xf32>
    %cst_103 = arith.constant 0.000000e+00 : f32
    %384 = vector.broadcast %cst_103 : f32 to vector<1x128xf32>
    %385 = tpu.concatenate %384, %381 in 0 : vector<1x128xf32>, vector<1x128xf32> -> vector<2x128xf32>
    %386 = vector.broadcast %cst_103 : f32 to vector<6x128xf32>
    %387 = tpu.concatenate %385, %386 in 0 : vector<2x128xf32>, vector<6x128xf32> -> vector<8x128xf32>
    %388 = arith.addf %364, %387 : vector<8x128xf32>
    %cst_104 = arith.constant dense<0.000000e+00> : vector<128x16xf32>
    %389 = tpu.matmul %383, %8, %cst_104 {dimension_numbers = #tpu.dot_dimension_numbers<[0], [0], [1], [1], [0, 1, 1, 1], [], []>} : vector<32x128xf32>, vector<32x16xf32>, vector<128x16xf32> -> vector<128x16xf32>
    %390 = tpu.transpose %389, [1, 0] : vector<128x16xf32> -> vector<16x128xf32>
    %391 = arith.mulf %390, %89 : vector<16x128xf32>
    %cst_105 = arith.constant -4.500000e+00 : f32
    %392 = vector.broadcast %cst_105 : f32 to vector<16x128xf32>
    %393 = arith.mulf %392, %391 : vector<16x128xf32>
    %394 = arith.mulf %393, %86 : vector<16x128xf32>
    %cst_106 = arith.constant dense<0.000000e+00> : vector<128xf32>
    %395 = vector.multi_reduction <add>, %394, %cst_106 [0] : vector<16x128xf32> to vector<128xf32>
    %396 = vector.shape_cast %395 : vector<128xf32> to vector<1x128xf32>
    %cst_107 = arith.constant 0.000000e+00 : f32
    %397 = vector.broadcast %cst_107 : f32 to vector<1x128xf32>
    %398 = tpu.concatenate %397, %396 in 0 : vector<1x128xf32>, vector<1x128xf32> -> vector<2x128xf32>
    %399 = vector.broadcast %cst_107 : f32 to vector<6x128xf32>
    %400 = tpu.concatenate %398, %399 in 0 : vector<2x128xf32>, vector<6x128xf32> -> vector<8x128xf32>
    %401 = arith.addf %377, %400 : vector<8x128xf32>
    %402 = arith.mulf %232, %4 : vector<32x128xf32>
    %403 = arith.mulf %75, %402 : vector<32x128xf32>
    %cst_108 = arith.constant dense<0.000000e+00> : vector<128xf32>
    %404 = vector.multi_reduction <add>, %403, %cst_108 [0] : vector<32x128xf32> to vector<128xf32>
    %405 = vector.shape_cast %404 : vector<128xf32> to vector<1x128xf32>
    %406 = vector.broadcast %76 : vector<1x128xf32> to vector<32x128xf32>
    %407 = arith.mulf %402, %406 : vector<32x128xf32>
    %cst_109 = arith.constant 0.000000e+00 : f32
    %408 = vector.broadcast %cst_109 : f32 to vector<7x128xf32>
    %409 = tpu.concatenate %405, %408 in 0 : vector<1x128xf32>, vector<7x128xf32> -> vector<8x128xf32>
    %410 = arith.addf %388, %409 : vector<8x128xf32>
    %cst_110 = arith.constant dense<0.000000e+00> : vector<128x16xf32>
    %411 = tpu.matmul %407, %8, %cst_110 {dimension_numbers = #tpu.dot_dimension_numbers<[0], [0], [1], [1], [0, 1, 1, 1], [], []>} : vector<32x128xf32>, vector<32x16xf32>, vector<128x16xf32> -> vector<128x16xf32>
    %412 = tpu.transpose %411, [1, 0] : vector<128x16xf32> -> vector<16x128xf32>
    %413 = arith.mulf %412, %72 : vector<16x128xf32>
    %cst_111 = arith.constant -4.500000e+00 : f32
    %414 = vector.broadcast %cst_111 : f32 to vector<16x128xf32>
    %415 = arith.mulf %414, %413 : vector<16x128xf32>
    %416 = arith.mulf %415, %69 : vector<16x128xf32>
    %cst_112 = arith.constant dense<0.000000e+00> : vector<128xf32>
    %417 = vector.multi_reduction <add>, %416, %cst_112 [0] : vector<16x128xf32> to vector<128xf32>
    %418 = vector.shape_cast %417 : vector<128xf32> to vector<1x128xf32>
    %cst_113 = arith.constant 0.000000e+00 : f32
    %419 = vector.broadcast %cst_113 : f32 to vector<7x128xf32>
    %420 = tpu.concatenate %418, %419 in 0 : vector<1x128xf32>, vector<7x128xf32> -> vector<8x128xf32>
    %421 = arith.addf %401, %420 : vector<8x128xf32>
    %422 = arith.mulf %410, %62 : vector<8x128xf32>
    %cst_114 = arith.constant 0.000000e+00 : f32
    %423 = vector.broadcast %cst_114 : f32 to vector<8x128xf32>
    %424 = arith.subf %423, %422 : vector<8x128xf32>
    %425 = arith.mulf %46, %424 : vector<8x128xf32>
    %426 = arith.mulf %424, %46 : vector<8x128xf32>
    %427 = arith.addf %425, %426 : vector<8x128xf32>
    %428 = arith.mulf %427, %56 : vector<8x128xf32>
    %cst_115 = arith.constant 2.000000e-01 : f32
    %429 = vector.broadcast %cst_115 : f32 to vector<8x128xf32>
    %430 = arith.mulf %428, %429 : vector<8x128xf32>
    %431 = arith.addf %421, %430 : vector<8x128xf32>
    %432 = arith.mulf %431, %42 : vector<8x128xf32>
    %433 = arith.mulf %432, %39 : vector<8x128xf32>
    "tpu.trace_stop"() : () -> ()
    "tpu.trace_stop"() : () -> ()
    %434 = arith.mulf %433, %20 : vector<8x128xf32>
    %435 = arith.mulf %433, %21 : vector<8x128xf32>
    %436 = arith.mulf %433, %22 : vector<8x128xf32>
    %437 = tpu.concatenate %434, %435, %436 in 1 : vector<8x128xf32>, vector<8x128xf32>, vector<8x128xf32> -> vector<8x384xf32>
    %cst_116 = arith.constant dense<0.000000e+00> : vector<8x128xf32>
    %438 = tpu.matmul %437, %9, %cst_116 {dimension_numbers = #tpu.dot_dimension_numbers<[1], [0], [0], [1], [0, 0, 1, 1], [], []>} : vector<8x384xf32>, vector<384x128xf32>, vector<8x128xf32> -> vector<8x128xf32>
    %cst_117 = arith.constant -2.000000e+00 : f32
    %439 = vector.broadcast %cst_117 : f32 to vector<8x128xf32>
    %440 = arith.mulf %439, %438 : vector<8x128xf32>
    %c0_118 = arith.constant 0 : index
    %c0_119 = arith.constant 0 : index
    %c0_120 = arith.constant 0 : index
    %441 = vector.load %arg3[%c0_118, %c0_119, %c0_120] : memref<1x8x128xf32, #tpu.memory_space<vmem>>, vector<1x8x128xf32>
    %442 = vector.shape_cast %441 : vector<1x8x128xf32> to vector<8x128xf32>
    %443 = vector.shape_cast %440 : vector<8x128xf32> to vector<1x8x128xf32>
    tpu.vector_store %arg3[%c0_118, %c0_119, %c0_120], %443 {strides = array<i32>} : memref<1x8x128xf32, #tpu.memory_space<vmem>>, vector<1x8x128xf32>,
    %c0_121 = arith.constant 0 : index
    %c0_122 = arith.constant 0 : index
    %c0_123 = arith.constant 0 : index
    %444 = vector.load %arg4[%c0_121, %c0_122, %c0_123] : memref<1x1x128xf32, #tpu.memory_space<vmem>>, vector<1x1x128xf32>
    %445 = vector.shape_cast %444 : vector<1x1x128xf32> to vector<1x128xf32>
    %446 = vector.shape_cast %217 : vector<1x128xf32> to vector<1x1x128xf32>
    tpu.vector_store %arg4[%c0_121, %c0_122, %c0_123], %446 {strides = array<i32>} : memref<1x1x128xf32, #tpu.memory_space<vmem>>, vector<1x1x128xf32>,
    return
  }
  func.func @transform_0(%arg0: i32) -> (i32, i32, i32) {
    %c0_i32 = arith.constant 0 : i32
    %c0_i32_0 = arith.constant 0 : i32
    %c0_i32_1 = arith.constant 0 : i32
    return %arg0, %c0_i32, %c0_i32_0 : i32, i32, i32
  }
  func.func @transform_1(%arg0: i32) -> (i32, i32) {
    %c0_i32 = arith.constant 0 : i32
    %c0_i32_0 = arith.constant 0 : i32
    %c0_i32_1 = arith.constant 0 : i32
    return %c0_i32, %c0_i32_0 : i32, i32
  }
  func.func @transform_2(%arg0: i32) -> (i32, i32, i32) {
    %c0_i32 = arith.constant 0 : i32
    %c0_i32_0 = arith.constant 0 : i32
    %c0_i32_1 = arith.constant 0 : i32
    return %arg0, %c0_i32, %c0_i32_0 : i32, i32, i32
  }
  func.func @transform_3(%arg0: i32) -> (i32, i32, i32) {
    %c0_i32 = arith.constant 0 : i32
    %c0_i32_0 = arith.constant 0 : i32
    %c0_i32_1 = arith.constant 0 : i32
    return %arg0, %c0_i32, %c0_i32_0 : i32, i32, i32
  }
}

</mosaic_0001>

<bundles_post_ra>
// kernel: torchmdnet_interface_forward.1
= control target key start
LH: loop header
LB: loop body
LE: loop exit
PB: predicated region body
PF: predicated region fallthrough
CT: control target
= control target key end

     0   :  { %s8045_s12 = smov 0   ;;  %s10462_s0 = inlined_call_operand.vmem [shape: f32[4,24,16], index: 0, kind: input, shape index: {}]   ;;  %s10463_s1 = inlined_call_operand.vmem [shape: f32[1752,128], index: 1, kind: input, shape index: {}]   ;;  %s10464_s2 = inlined_call_operand.vmem [shape: f32[4,8,128], index: 2, kind: output, shape index: {0}]   ;;  %s10465_s3 = inlined_call_operand.vmem [shape: f32[4,1,128], index: 3, kind: output, shape index: {1}]  }
   0x1 LB: > { %s5966_s13 = sadd.s32 4294967295, %s8015_s12   ;;  %p5970_p0 = scmp.ge.s32.totalorder %s8015_s12, 1  ;;  %s8015_s12 = sphi %s8045_s12, %s14_s12  }
   0x2   : > { %p140_p1 = scmp.lt.s32.totalorder %s8015_s12, 5 }
   0x4   : > { %p141_p2 = pnand %p5970_p0, %p140_p1 }
   0x6   : > { %144 = sbr.rel (%p141_p2) target bundleno = 3847 (0xf07), region = 28 }
   0xd   : > { %v181_v0 = vld [vmem:[%s10463_s1] sm:$0xff]  ;;  %v182_v1 = vld [vmem:[%s10463_s1 + $0x8] sm:$0xff]  ;;  %p166_p3 = scmp.lt.s32.totalorder %s5966_s13, 3  ;;  %v10472_v2 = vmov 0.0|0.0   ;;  %vm8018_vm0 = vmmov 0   ;;  %v10470_v4 = vmov 0.0   ;;  %v523_v29 = vlaneseq }
   0xe   : > { %7442 = vmatprep.subr.bf16.mxu0 %v10472_v2  ;;  %v7443_v3 = vpack.c.bf16 %v182_v1, %v181_v0  ;;  %6898 = vmatprep.mubr.msk.f32.mxu0 %vm8018_vm0, %v10470_v4  ;;  %v395_v5 = vld [vmem:[%s10463_s1 + $0x6b0] sm:$0xff]  ;;  %v10466_v6 = vmov 0   ;;  %v396_v7 = vld [vmem:[%s10463_s1 + $0x6b8] sm:$0xff]  ;;  %vm400_vm1 = vcmask 130048   ;;  %v397_v12 = vld [vmem:[%s10463_s1 + $0x6c0] sm:$0xff]  ;;  %v8021_v13 = vmov 1  }
   0xf   : > { %s10854_s13 = smov (!%p166_p3, %s5966_s13), 3  ;;  %7932 = vset.pattern.permute.xlu0 %v10466_v6  ;;  %v8085_v11 = vld [vmem:[%s10463_s1 + $0x490] sm:$0xff]  ;;  %7933 = vset.pattern.permute.xlu1 %v8021_v13  ;;  %v398_v14 = vld [vmem:[%s10463_s1 + $0x6c8] sm:$0xff]  ;;  %v10468_v27 = vmov 1.0   ;;  %v8110_v30 = vshrl.u32 %v523_v29, 7  ;;  %vm1823_vm6 = vcmask 261120  }
  0x10   : > { %7444 = vmatpush3.bf16.msra.mxu0 %v7443_v3  ;;  %529 = vperm.xlu0 %7932, %v395_v5   ;;  %s7915_s20 = smul.u32 24, %s10854_s13  ;;  %v186_v6 = vld [vmem:[%s10463_s1 + $0x28] sm:$0xff]  ;;  %vm2283_vm7 = vcmask 1040384   ;;  %vm2234_vm8 = vcmask 7168   ;;  %vm3970_vm9 = vcmask 1044480   ;;  %vm3672_vm10 = vcmask 1045504  }
  0x11   : > { %6911 = vmatprep.mubr.msk.f32.mxu1 %vm400_vm1, %v8085_v11  ;;  %550 = vperm.xlu1 %7933, %v395_v5   ;;  %v10481_v34 = vsub.s32 0, %v8110_v30  ;;  %v10479_v35 = vsub.s32 2, %v8110_v30  ;;  %v10480_v36 = vsub.s32 1, %v8110_v30  ;;  %v10475_v38 = vsub.s32 4, %v8110_v30  ;;  %s5972_s6 = sshll.u32 %s10854_s13, 3 }
  0x12   : > { %s170_s25 = scalar_lea.vmem %s10462_s0, %s7915_s20  ;;  %v10478_v52 = vsub.s32 3, %v8110_v30  ;;  %v10474_v60 = vsub.s32 6, %v8110_v30  ;;  %s177_s20 = scalar_lea.vmem %s10465_s3, %s10854_s13  ;;  %vm3378_vm11 = vcmask 1046528   ;;  %vm4566_vm12 = vcmask 1042432  }
  0x13   : > { %v178_v8 = vld [vmem:[%s170_s25] sm:$0xff]  ;;  %v179_v9 = vld [vmem:[%s170_s25 + $0x8] sm:$0xff]  ;;  %v180_v10 = vld [vmem:[%s170_s25 + $0x10] sm:$0xff]  ;;  %vm4268_vm13 = vcmask 1043456   ;;  %vm4864_vm15 = vcmask 1041408   ;;  %s174_s9 = scalar_lea.vmem %s10464_s2, %s5972_s6 }
  0x14   : > { %534 = vperm.xlu0 %7932, %v396_v7   ;;  %6899 = vmatmul.mubr.msk.f32.vlgmr.msra.gmra.mrb[0].mxu0 %vm400_vm1, %v178_v8 }
  0x15   : > { %6901 = vmatprep.mubr.msk.f32.mxu0 %vm8018_vm0, %v10470_v4  ;;  %554 = vperm.xlu1 %7933, %v396_v7   ;;  %v10477_v7 = vsub.s32 5, %v8110_v30 }
  0x18   : > { %6902 = vmatmul.mubr.msk.f32.gmra.mrb[2].mxu0 %vm400_vm1, %v179_v9  ;;  %7934 = vset.pattern.permute.xlu0 %v8021_v13 }
  0x19   : > { %6904 = vmatprep.mubr.msk.f32.mxu0 %vm8018_vm0, %v10470_v4  ;;  %559 = vperm.xlu0 %7934, %v397_v12  }
  0x1a   : > { %564 = vperm.xlu1 %7933, %v398_v14  }
  0x1c   : > { %6905 = vmatmul.mubr.msk.f32.gmra.mrb[4].mxu0 %vm400_vm1, %v180_v10 }
  0x1d   : > { %6931 = vmatprep.mubr.msk.f32.mxu0 %vm400_vm1, %v8085_v11 }
  0x8f   : > { %v8112_v32 = vpop.permute.xlu0 %529 }
  0x93   : > { %v8133_v47 = vpop.permute.xlu0 %534 }
  0xe7   : > { %v8097_v15 = vpop.f32.mrb[0].mxu0 }
  0xe8   : > { %10607 = vst [vmem:[#allocation2_spill] sm:$0xff] %v8097_v15  ;;  %v6900_v16 = vpop.f32.mrb[1].mxu0  ;;  %v490_v18 = vmul.f32 %v8097_v15, %v8097_v15  ;;  %v239_v15 = vld [vmem:[%s10463_s1 + $0x1d0] sm:$0xff] }
  0xeb   : > { %v8099_v17 = vpop.f32.mrb[2].mxu0 }
  0xec   : > { %10608 = vst [vmem:[#allocation3_spill] sm:$0xff] %v8099_v17  ;;  %v491_v19 = vmul.f32 %v8099_v17, %v8099_v17  ;;  %v6903_v20 = vpop.f32.mrb[3].mxu0  ;;  %v214_v17 = vld [vmem:[%s10463_s1 + $0x108] sm:$0xff] }
  0xee   : > { %v492_v21 = vadd.f32 %v491_v19, %v490_v18 }
  0xef   : > { %v8105_v22 = vpop.f32.mrb[4].mxu0 }
  0xf0   : > { %10609 = vst [vmem:[#allocation4_spill] sm:$0xff] %v8105_v22  ;;  %v493_v23 = vmul.f32 %v8105_v22, %v8105_v22  ;;  %v6906_v24 = vpop.f32.mrb[5].mxu0 }
  0xf2   : > { %v494_v25 = vadd.f32 %v493_v23, %v492_v21 }
  0xf4   : > { %v495_v26 = vmax.f32 %v494_v25, 0.0001 }
  0xf6   : > { %vm496_vm2 = vcmp.eq.f32.partialorder %v494_v25, %v495_v26  ;;  %7941 = vrsqrt.f32 %v495_v26  ;;  %vm5976_vm3 = vcmp.eq.f32.partialorder %v495_v26, 0.0001  ;;  %vm504_vm4 = vcmp.eq.f32.partialorder %v495_v26, inf }
  0xf7   : > { %v499_v28 = vsel %vm5976_vm3, 2.0, %v10468_v27  ;;  %v507_v37 = vand.u32 2147483648, %v495_v26  ;;  %v497_v40 = vsel %vm496_vm2, 1.0, %v10470_v4  ;;  %vm506_vm5 = vcmp.eq.f32.partialorder %v495_v26, 0.0  ;;  %v205_v4 = vld [vmem:[%s10463_s1 + $0xc0] sm:$0xff] }
  0xf8   : > { %7943 = vrcp.f32 %v499_v28 }
 0x100   : > { %v7942_v31 = vpop.eup %7941 }
 0x101   : > { %v503_v33 = vmul.f32 %v7942_v31, %v495_v26 }
 0x102   : > { %v7944_v39 = vpop.eup %7943 }
 0x103   : > { %v505_v41 = vsel %vm504_vm4, %v495_v26, %v503_v33  ;;  %v8122_v43 = vmul.f32 %v7944_v39, %v497_v40 }
 0x104   : > { %v8120_v42 = vsel %vm506_vm5, %v507_v37, %v505_v41 }
 0x105   : > { %10610 = vst [vmem:[#allocation5_spill] sm:$0xff] %v8120_v42  ;;  %10611 = vst [vmem:[#allocation6_spill] sm:$0xff] %v8122_v43  ;;  %v526_v44 = vrot.slane %v8120_v42, %v10481_v34  ;;  %v792_v45 = vrot.slane %v8120_v42, %v10479_v35  ;;  %v679_v46 = vrot.slane %v8120_v42, %v10480_v36  ;;  %v193_v35 = vld [vmem:[%s10463_s1 + $0x60] sm:$0xff]  ;;  %v212_v34 = vld [vmem:[%s10463_s1 + $0xf8] sm:$0xff] }
 0x106   : > { %v1018_v48 = vrot.slane %v8120_v42, %v10475_v38  ;;  %v905_v18 = vrot.slane %v8120_v42, %v10478_v52  ;;  %v1244_v21 = vrot.slane %v8120_v42, %v10474_v60  ;;  %v1131_v24 = vrot.slane %v8120_v42, %v10477_v7  ;;  %v189_v38 = vld [vmem:[%s10463_s1 + $0x40] sm:$0xff] }
 0x107   : > { %v8139_v49 = vsub.f32 %v526_v44, %v8112_v32  ;;  %v8142_v50 = vsub.f32 %v526_v44, %v8133_v47  ;;  %v8145_v51 = vsub.f32 %v792_v45, %v8112_v32  ;;  %v8149_v53 = vsub.f32 %v792_v45, %v8133_v47  ;;  %v217_v7 = vld [vmem:[%s10463_s1 + $0x120] sm:$0xff] }
 0x108   : > { %v8152_v54 = vsub.f32 %v679_v46, %v8112_v32  ;;  %v8155_v55 = vsub.f32 %v679_v46, %v8133_v47  ;;  %v8158_v56 = vsub.f32 %v1018_v48, %v8112_v32  ;;  %v8174_v0 = vsub.f32 %v1018_v48, %v8133_v47 }
 0x109   : > { %10612 = vst [vmem:[#allocation7_spill] sm:$0xff] %v8139_v49  ;;  %10613 = vst [vmem:[#allocation8_spill] sm:$0xff] %v8142_v50  ;;  %v539_v57 = vmul.f32 %v8139_v49, %v8139_v49  ;;  %v540_v58 = vmul.f32 %v8142_v50, %v8142_v50  ;;  %v795_v59 = vmul.f32 %v8145_v51, %v8145_v51  ;;  %v10476_v48 = vsub.s32 7, %v8110_v30  ;;  %v244_v49 = vld [vmem:[%s10463_s1 + $0x1f8] sm:$0xff] }
 0x10a   : > { %10614 = vst [vmem:[#allocation9_spill] sm:$0xff] %v8145_v51  ;;  %10615 = vst [vmem:[#allocation10_spill] sm:$0xff] %v8149_v53  ;;  %v796_v61 = vmul.f32 %v8149_v53, %v8149_v53  ;;  %v682_v62 = vmul.f32 %v8152_v54, %v8152_v54  ;;  %v683_v63 = vmul.f32 %v8155_v55, %v8155_v55 }
 0x10b   : > { %10616 = vst [vmem:[#allocation11_spill] sm:$0xff] %v8152_v54  ;;  %10617 = vst [vmem:[#allocation12_spill] sm:$0xff] %v8155_v55  ;;  %v543_v1 = vmul.f32 -4.5, %v539_v57  ;;  %v544_v3 = vmul.f32 -4.5, %v540_v58  ;;  %v799_v5 = vmul.f32 -4.5, %v795_v59  ;;  %v1021_v12 = vmul.f32 %v8158_v56, %v8158_v56  ;;  %v197_v54 = vld [vmem:[%s10463_s1 + $0x80] sm:$0xff] }
 0x10c   : > { %10618 = vst [vmem:[#allocation13_spill] sm:$0xff] %v8158_v56  ;;  %10619 = vst [vmem:[#allocation14_spill] sm:$0xff] %v8174_v0  ;;  %v800_v8 = vmul.f32 -4.5, %v796_v61  ;;  %v686_v9 = vmul.f32 -4.5, %v682_v62  ;;  %v687_v10 = vmul.f32 -4.5, %v683_v63  ;;  %v1022_v20 = vmul.f32 %v8174_v0, %v8174_v0 }
 0x10d   : > { %v545_v13 = vmul.f32 1.442695, %v543_v1  ;;  %v547_v14 = vmul.f32 1.442695, %v544_v3  ;;  %v801_v16 = vmul.f32 1.442695, %v799_v5  ;;  %v8191_v29 = vsub.f32 %v905_v18, %v8112_v32 }
 0x10e   : > { %v803_v19 = vmul.f32 1.442695, %v800_v8  ;;  %v688_v23 = vmul.f32 1.442695, %v686_v9  ;;  %v690_v25 = vmul.f32 1.442695, %v687_v10  ;;  %v8194_v31 = vsub.f32 %v905_v18, %v8133_v47 }
 0x10f   : > { %7945 = vpow2.f32 %v545_v13  ;;  %v1025_v26 = vmul.f32 -4.5, %v1021_v12  ;;  %v1026_v28 = vmul.f32 -4.5, %v1022_v20  ;;  %10620 = vst [vmem:[#allocation15_spill] sm:$0xff] %v8191_v29  ;;  %v8197_v39 = vsub.f32 %v1244_v21, %v8112_v32 }
 0x110   : > { %7947 = vpow2.f32 %v547_v14  ;;  %10621 = vst [vmem:[#allocation16_spill] sm:$0xff] %v8194_v31  ;;  %v908_v40 = vmul.f32 %v8191_v29, %v8191_v29  ;;  %v909_v41 = vmul.f32 %v8194_v31, %v8194_v31  ;;  %v8204_v44 = vsub.f32 %v1244_v21, %v8133_v47 }
 0x111   : > { %7949 = vpow2.f32 %v801_v16  ;;  %v1027_v33 = vmul.f32 1.442695, %v1025_v26  ;;  %v1029_v37 = vmul.f32 1.442695, %v1026_v28  ;;  %10622 = vst [vmem:[#allocation17_spill] sm:$0xff] %v8197_v39  ;;  %v1247_v45 = vmul.f32 %v8197_v39, %v8197_v39  ;;  %v8732_v39 = vpop.permute.xlu0 %559 }
 0x112   : > { %7951 = vpow2.f32 %v803_v19  ;;  %10623 = vst [vmem:[#allocation18_spill] sm:$0xff] %v8204_v44  ;;  %v8209_v46 = vsub.f32 %v1131_v24, %v8112_v32  ;;  %v912_v57 = vmul.f32 -4.5, %v908_v40  ;;  %v913_v58 = vmul.f32 -4.5, %v909_v41 }
 0x113   : > { %7953 = vpow2.f32 %v688_v23  ;;  %v1248_v59 = vmul.f32 %v8204_v44, %v8204_v44  ;;  %v1251_v61 = vmul.f32 -4.5, %v1247_v45  ;;  %v8215_v62 = vsub.f32 %v1131_v24, %v8133_v47  ;;  %v266_v44 = vld [vmem:[%s10463_s1 + $0x2a8] sm:$0xff] }
 0x114   : > { %7955 = vpow2.f32 %v690_v25  ;;  %10624 = vst [vmem:[#allocation19_spill] sm:$0xff] %v8209_v46  ;;  %v1134_v63 = vmul.f32 %v8209_v46, %v8209_v46  ;;  %v914_v1 = vmul.f32 1.442695, %v912_v57  ;;  %v916_v3 = vmul.f32 1.442695, %v913_v58  ;;  %v8262_v58 = vld [vmem:[%s10463_s1 + $0x4a0] sm:$0xff] }
 0x115   : > { %7957 = vpow2.f32 %v1027_v33  ;;  %10625 = vst [vmem:[#allocation20_spill] sm:$0xff] %v8215_v62  ;;  %v1252_v5 = vmul.f32 -4.5, %v1248_v59  ;;  %v1253_v8 = vmul.f32 1.442695, %v1251_v61  ;;  %v1135_v9 = vmul.f32 %v8215_v62, %v8215_v62 }
 0x116   : > { %7959 = vpow2.f32 %v1029_v37  ;;  %v1138_v10 = vmul.f32 -4.5, %v1134_v63  ;;  %v1357_v12 = vrot.slane %v8120_v42, %v10476_v48  ;;  %v8664_v31 = vmul.f32 0.2, %v8120_v42 }
 0x117   : > { %7961 = vpow2.f32 %v914_v1  ;;  %v1255_v14 = vmul.f32 1.442695, %v1252_v5  ;;  %v1139_v18 = vmul.f32 -4.5, %v1135_v9  ;;  %v8275_v5 = vld [vmem:[%s10463_s1 + $0x4a8] sm:$0xff]  ;;  %v10670_v56 = vsub.s32 0, %v8110_v30 }
 0x118   : > { %7963 = vpow2.f32 %v916_v3  ;;  %v1140_v19 = vmul.f32 1.442695, %v1138_v10  ;;  %v8229_v20 = vsub.f32 %v1357_v12, %v8112_v32  ;;  %v8236_v24 = vsub.f32 %v1357_v12, %v8133_v47  ;;  %v8253_v47 = vld [vmem:[%s10463_s1 + $0x498] sm:$0xff]  ;;  %10666 = vst [vmem:[#allocation61_spill] sm:$0xff] %v8664_v31 }
 0x119   : > { %v8224_v13 = vpop.eup %7945  ;;  %7965 = vpow2.f32 %v1253_v8  ;;  %v1142_v26 = vmul.f32 1.442695, %v1139_v18  ;;  %v199_v18 = vld [vmem:[%s10463_s1 + $0x90] sm:$0xff] }
 0x11a   : > { %10626 = vst [vmem:[#allocation21_spill] sm:$0xff] %v8224_v13  ;;  %v8226_v16 = vpop.eup %7947  ;;  %10628 = vst [vmem:[#allocation23_spill] sm:$0xff] %v8229_v20  ;;  %7967 = vpow2.f32 %v1255_v14  ;;  %v1360_v28 = vmul.f32 %v8229_v20, %v8229_v20  ;;  %v1361_v37 = vmul.f32 %v8236_v24, %v8236_v24 }
 0x11b   : > { %10627 = vst [vmem:[#allocation22_spill] sm:$0xff] %v8226_v16  ;;  %v8231_v21 = vpop.eup %7949  ;;  %v7445_v23 = vpack.c.bf16 %v8226_v16, %v8224_v13  ;;  %10630 = vst [vmem:[#allocation25_spill] sm:$0xff] %v8236_v24  ;;  %7969 = vpow2.f32 %v1140_v19  ;;  %v200_v19 = vld [vmem:[%s10463_s1 + $0x98] sm:$0xff]  ;;  %v230_v13 = vld [vmem:[%s10463_s1 + $0x188] sm:$0xff] }
 0x11c   : > { %10629 = vst [vmem:[#allocation24_spill] sm:$0xff] %v8231_v21  ;;  %v8238_v25 = vpop.eup %7951  ;;  %7971 = vpow2.f32 %v1142_v26  ;;  %v1364_v41 = vmul.f32 -4.5, %v1360_v28  ;;  %v1365_v59 = vmul.f32 -4.5, %v1361_v37  ;;  %v8315_v37 = vpack.c.bf16 %v200_v19, %v199_v18 }
 0x11d   : > { %10631 = vst [vmem:[#allocation26_spill] sm:$0xff] %v8238_v25  ;;  %v8242_v33 = vpop.eup %7953  ;;  %7446 = vmatprep.subr.bf16.mxu1 %v7445_v23  ;;  %v7453_v32 = vpack.c.bf16 %v8238_v25, %v8231_v21 }
 0x11e   : > { %10632 = vst [vmem:[#allocation27_spill] sm:$0xff] %v8242_v33  ;;  %v8248_v40 = vpop.eup %7955  ;;  %7448 = vmatpush3.bf16.msra.mxu1 %v7445_v23  ;;  %v1366_v63 = vmul.f32 1.442695, %v1364_v41  ;;  %v1368_v3 = vmul.f32 1.442695, %v1365_v59  ;;  %v184_v59 = vld [vmem:[%s10463_s1 + $0x18] sm:$0xff] }
 0x11f   : > { %10633 = vst [vmem:[#allocation28_spill] sm:$0xff] %v8248_v40  ;;  %v8255_v45 = vpop.eup %7957  ;;  %7454 = vmatprep.subr.bf16.mxu0 %v7453_v32  ;;  %v7449_v57 = vpack.c.bf16 %v8248_v40, %v8242_v33  ;;  %v263_v40 = vld [vmem:[%s10463_s1 + $0x290] sm:$0xff]  ;;  %v229_v33 = vld [vmem:[%s10463_s1 + $0x180] sm:$0xff] }
 0x120   : > { %10634 = vst [vmem:[#allocation29_spill] sm:$0xff] %v8255_v45  ;;  %v8264_v61 = vpop.eup %7959  ;;  %7456 = vmatpush3.bf16.msra.mxu0 %v7453_v32  ;;  %7973 = vpow2.f32 %v1366_v63 }
 0x121   : > { %10635 = vst [vmem:[#allocation30_spill] sm:$0xff] %v8264_v61  ;;  %7450 = vmatprep.subr.bf16.mxu1 %v7449_v57  ;;  %v7461_v1 = vpack.c.bf16 %v8264_v61, %v8255_v45  ;;  %6912 = vmatmul.mubr.msk.f32.vlgmr.msra.gmra.mrb[0].mxu1 %vm400_vm1, %v8253_v47  ;;  %v8277_v8 = vpop.eup %7961  ;;  %7975 = vpow2.f32 %v1368_v3  ;;  %v202_v3 = vld [vmem:[%s10463_s1 + $0xa8] sm:$0xff]  ;;  %v10673_v45 = vsub.s32 1, %v8110_v30 }
 0x122   : > { %7452 = vmatpush3.bf16.msra.mxu1 %v7449_v57  ;;  %6914 = vmatprep.mubr.msk.f32.mxu1 %vm400_vm1, %v8262_v58  ;;  %10636 = vst [vmem:[#allocation31_spill] sm:$0xff] %v8277_v8  ;;  %v8281_v9 = vpop.eup %7963  ;;  %v183_v57 = vld [vmem:[%s10463_s1 + $0x10] sm:$0xff] }
 0x123   : > { %7462 = vmatprep.subr.bf16.mxu0 %v7461_v1  ;;  %6932 = vmatmul.mubr.msk.f32.vlgmr.msra.gmra.mrb[6].mxu0 %vm400_vm1, %v8253_v47  ;;  %10637 = vst [vmem:[#allocation32_spill] sm:$0xff] %v8281_v9  ;;  %v8285_v10 = vpop.eup %7965  ;;  %v7457_v12 = vpack.c.bf16 %v8281_v9, %v8277_v8  ;;  %v8673_v9 = vpop.permute.xlu1 %550 }
 0x124   : > { %7464 = vmatpush3.bf16.msra.mxu0 %v7461_v1  ;;  %6934 = vmatprep.mubr.msk.f32.mxu0 %vm400_vm1, %v8262_v58  ;;  %10638 = vst [vmem:[#allocation33_spill] sm:$0xff] %v8285_v10  ;;  %v8291_v14 = vpop.eup %7967  ;;  %v201_v1 = vld [vmem:[%s10463_s1 + $0xa0] sm:$0xff] }
 0x125   : > { %6915 = vmatmul.mubr.msk.f32.gmra.mrb[2].mxu1 %vm400_vm1, %v8275_v5  ;;  %10639 = vst [vmem:[#allocation34_spill] sm:$0xff] %v8291_v14  ;;  %v8301_v23 = vpop.eup %7969  ;;  %7458 = vmatprep.subr.bf16.mxu1 %v7457_v12  ;;  %v7469_v26 = vpack.c.bf16 %v8291_v14, %v8285_v10  ;;  %v8354_v19 = vpack.c.bf16 %v202_v3, %v201_v1  ;;  %v231_v1 = vld [vmem:[%s10463_s1 + $0x190] sm:$0xff]  ;;  %v232_v3 = vld [vmem:[%s10463_s1 + $0x198] sm:$0xff] }
 0x126   : > { %6921 = vmatprep.mubr.msk.f32.mxu1 %vm400_vm1, %v8085_v11  ;;  %10640 = vst [vmem:[#allocation35_spill] sm:$0xff] %v8301_v23  ;;  %v8307_v28 = vpop.eup %7971 }
 0x127   : > { %6935 = vmatmul.mubr.msk.f32.gmra.mrb[8].mxu0 %vm400_vm1, %v8275_v5  ;;  %10641 = vst [vmem:[#allocation36_spill] sm:$0xff] %v8307_v28  ;;  %7470 = vmatprep.subr.bf16.mxu0 %v7469_v26  ;;  %v7465_v32 = vpack.c.bf16 %v8307_v28, %v8301_v23 }
 0x128   : > { %6951 = vmatprep.mubr.msk.f32.mxu0 %vm400_vm1, %v8085_v11 }
 0x129   : > { %6922 = vmatmul.mubr.msk.f32.vlgmr.msra.gmra.mrb[4].mxu1 %vm400_vm1, %v8253_v47 }
 0x12a   : > { %7460 = vmatpush3.bf16.msra.mxu1 %v7457_v12  ;;  %6924 = vmatprep.mubr.msk.f32.mxu1 %vm400_vm1, %v8262_v58  ;;  %v8323_v41 = vpop.eup %7973  ;;  %v8348_v12 = vpack.c.bf16 %v184_v59, %v183_v57  ;;  %v203_v57 = vld [vmem:[%s10463_s1 + $0xb0] sm:$0xff]  ;;  %v204_v59 = vld [vmem:[%s10463_s1 + $0xb8] sm:$0xff] }
 0x12b   : > { %6952 = vmatmul.mubr.msk.f32.vlgmr.msra.gmra.mrb[10].mxu0 %vm400_vm1, %v8253_v47  ;;  %7466 = vmatprep.subr.bf16.mxu1 %v7465_v32  ;;  %10642 = vst [vmem:[#allocation37_spill] sm:$0xff] %v8323_v41  ;;  %v8334_v63 = vpop.eup %7975  ;;  %v8386_v27 = vpack.c.bf16 %v204_v59, %v203_v57  ;;  %v206_v57 = vld [vmem:[%s10463_s1 + $0xc8] sm:$0xff]  ;;  %v8404_v59 = vpack.c.bf16 %v232_v3, %v231_v1  ;;  %v215_v3 = vld [vmem:[%s10463_s1 + $0x110] sm:$0xff] }
 0x12c   : > { %7472 = vmatpush3.bf16.msra.mxu0 %v7469_v26  ;;  %6954 = vmatprep.mubr.msk.f32.mxu0 %vm400_vm1, %v8262_v58  ;;  %10643 = vst [vmem:[#allocation38_spill] sm:$0xff] %v8334_v63  ;;  %v7473_v18 = vpack.c.bf16 %v8334_v63, %v8323_v41  ;;  %v185_v26 = vld [vmem:[%s10463_s1 + $0x20] sm:$0xff]  ;;  %v8412_v60 = vpack.c.bf16 %v206_v57, %v205_v4  ;;  %v190_v1 = vld [vmem:[%s10463_s1 + $0x48] sm:$0xff]  ;;  %v216_v4 = vld [vmem:[%s10463_s1 + $0x118] sm:$0xff] }
 0x12d   : > { %6925 = vmatmul.mubr.msk.f32.gmra.mrb[6].mxu1 %vm400_vm1, %v8275_v5  ;;  %7478 = vmatprep.subr.bf16.mxu0 %v8315_v37  ;;  %10644 = vst [vmem:[#allocation39_spill] sm:$0xff] %v8404_v59  ;;  %v8443_v57 = vpack.c.bf16 %v216_v4, %v215_v3  ;;  %v191_v4 = vld [vmem:[%s10463_s1 + $0x50] sm:$0xff] }
 0x12e   : > { %6941 = vmatprep.mubr.msk.f32.mxu1 %vm400_vm1, %v8085_v11  ;;  %v247_v63 = vld [vmem:[%s10463_s1 + $0x210] sm:$0xff] }
 0x12f   : > { %6955 = vmatmul.mubr.msk.f32.gmra.mrb[12].mxu0 %vm400_vm1, %v8275_v5  ;;  %10645 = vst [vmem:[#allocation40_spill] sm:$0xff] %v8443_v57 }
 0x130   : > { %6971 = vmatprep.mubr.msk.f32.mxu0 %vm400_vm1, %v8085_v11 }
 0x131   : > { %6942 = vmatmul.mubr.msk.f32.vlgmr.msra.gmra.mrb[8].mxu1 %vm400_vm1, %v8253_v47 }
 0x132   : > { %7468 = vmatpush3.bf16.msra.mxu1 %v7465_v32  ;;  %6944 = vmatprep.mubr.msk.f32.mxu1 %vm400_vm1, %v8262_v58  ;;  %v8375_v32 = vpack.c.bf16 %v186_v6, %v185_v26  ;;  %v187_v6 = vld [vmem:[%s10463_s1 + $0x30] sm:$0xff]  ;;  %v188_v26 = vld [vmem:[%s10463_s1 + $0x38] sm:$0xff] }
 0x133   : > { %6972 = vmatmul.mubr.msk.f32.vlgmr.msra.gmra.mrb[14].mxu0 %vm400_vm1, %v8253_v47  ;;  %7474 = vmatprep.subr.bf16.mxu1 %v7473_v18  ;;  %v8407_v2 = vpack.c.bf16 %v188_v26, %v187_v6  ;;  %v233_v6 = vld [vmem:[%s10463_s1 + $0x1a0] sm:$0xff]  ;;  %v8436_v26 = vpack.c.bf16 %v190_v1, %v189_v38  ;;  %v218_v38 = vld [vmem:[%s10463_s1 + $0x128] sm:$0xff]  ;;  %v207_v1 = vld [vmem:[%s10463_s1 + $0xd0] sm:$0xff] }
 0x134   : > { %6974 = vmatprep.mubr.msk.f32.mxu0 %vm400_vm1, %v8262_v58  ;;  %7480 = vmatpush3.bf16.msra.mxu0 %v8348_v12 }
 0x135   : > { %6945 = vmatmul.mubr.msk.f32.gmra.mrb[10].mxu1 %vm400_vm1, %v8275_v5  ;;  %7482 = vmatprep.subr.bf16.mxu0 %v8354_v19 }
 0x136   : > { %6961 = vmatprep.mubr.msk.f32.mxu1 %vm400_vm1, %v8085_v11 }
 0x137   : > { %6975 = vmatmul.mubr.msk.f32.gmra.mrb[16].mxu0 %vm400_vm1, %v8275_v5 }
 0x138   : > { %7484 = vmatpush3.bf16.msra.mxu0 %v8375_v32 }
 0x139   : > { %6962 = vmatmul.mubr.msk.f32.vlgmr.msra.gmra.mrb[12].mxu1 %vm400_vm1, %v8253_v47  ;;  %7486 = vmatprep.subr.bf16.mxu0 %v8386_v27 }
 0x13a   : > { %7476 = vmatpush3.bf16.msra.mxu1 %v7473_v18  ;;  %6964 = vmatprep.mubr.msk.f32.mxu1 %vm400_vm1, %v8262_v58  ;;  %v234_v18 = vld [vmem:[%s10463_s1 + $0x1a8] sm:$0xff] }
 0x13b   : > { %7510 = vmatprep.subr.bf16.mxu1 %v8404_v59  ;;  %v8445_v48 = vpack.c.bf16 %v234_v18, %v233_v6  ;;  %v192_v6 = vld [vmem:[%s10463_s1 + $0x58] sm:$0xff]  ;;  %v219_v18 = vld [vmem:[%s10463_s1 + $0x130] sm:$0xff] }
 0x13c   : > { %7488 = vmatpush3.bf16.msra.mxu0 %v8407_v2 }
 0x13d   : > { %6965 = vmatmul.mubr.msk.f32.gmra.mrb[14].mxu1 %vm400_vm1, %v8275_v5  ;;  %7490 = vmatprep.subr.bf16.mxu0 %v8412_v60  ;;  %10646 = vst [vmem:[#allocation41_spill] sm:$0xff] %v8445_v48 }
 0x13e   : > { %6981 = vmatprep.mubr.msk.f32.mxu1 %vm400_vm1, %v8085_v11  ;;  %v8459_v11 = vpack.c.bf16 %v218_v38, %v217_v7  ;;  %v235_v7 = vld [vmem:[%s10463_s1 + $0x1b0] sm:$0xff]  ;;  %v8492_v38 = vpack.c.bf16 %v192_v6, %v191_v4  ;;  %v237_v4 = vld [vmem:[%s10463_s1 + $0x1c0] sm:$0xff]  ;;  %v238_v6 = vld [vmem:[%s10463_s1 + $0x1c8] sm:$0xff] }
 0x13f   : > { %v8517_v36 = vpack.c.bf16 %v238_v6, %v237_v4  ;;  %v211_v6 = vld [vmem:[%s10463_s1 + $0xf0] sm:$0xff] }
 0x140   : > { %7492 = vmatpush3.bf16.msra.mxu0 %v8436_v26  ;;  %10647 = vst [vmem:[#allocation42_spill] sm:$0xff] %v8459_v11  ;;  %v8544_v22 = vpack.c.bf16 %v212_v34, %v211_v6  ;;  %v196_v34 = vld [vmem:[%s10463_s1 + $0x78] sm:$0xff] }
 0x141   : > { %6982 = vmatmul.mubr.msk.f32.vlgmr.msra.gmra.mrb[16].mxu1 %vm400_vm1, %v8253_v47  ;;  %v208_v47 = vld [vmem:[%s10463_s1 + $0xd8] sm:$0xff]  ;;  %10650 = vst [vmem:[#allocation45_spill] sm:$0xff] %v8517_v36 }
 0x142   : > { %6984 = vmatprep.mubr.msk.f32.mxu1 %vm400_vm1, %v8262_v58  ;;  %7512 = vmatpush3.bf16.msra.mxu1 %v8443_v57  ;;  %v8474_v58 = vpack.c.bf16 %v208_v47, %v207_v1  ;;  %v220_v1 = vld [vmem:[%s10463_s1 + $0x138] sm:$0xff]  ;;  %v209_v47 = vld [vmem:[%s10463_s1 + $0xe0] sm:$0xff]  ;;  %10652 = vst [vmem:[#allocation47_spill] sm:$0xff] %v8544_v22  ;;  %v298_v57 = vld [vmem:[%s10463_s1 + $0x3a8] sm:$0xff] }
 0x143   : > { %7514 = vmatprep.subr.bf16.mxu1 %v8445_v48  ;;  %v224_v6 = vld [vmem:[%s10463_s1 + $0x158] sm:$0xff] }
 0x144   : > { %7494 = vmatprep.subr.bf16.mxu0 %v8474_v58 }
 0x145   : > { %6985 = vmatmul.mubr.msk.f32.gmra.mrb[18].mxu1 %vm400_vm1, %v8275_v5  ;;  %v236_v5 = vld [vmem:[%s10463_s1 + $0x1b8] sm:$0xff]  ;;  %7496 = vmatpush3.bf16.msra.mxu0 %v8492_v38 }
 0x146   : > { %7516 = vmatpush3.bf16.msra.mxu1 %v8459_v11  ;;  %v8479_v3 = vpack.c.bf16 %v236_v5, %v235_v7  ;;  %v210_v7 = vld [vmem:[%s10463_s1 + $0xe8] sm:$0xff]  ;;  %v8503_v5 = vpack.c.bf16 %v220_v1, %v219_v18  ;;  %v221_v1 = vld [vmem:[%s10463_s1 + $0x140] sm:$0xff] }
 0x147   : > { %v8505_v52 = vpack.c.bf16 %v210_v7, %v209_v47  ;;  %v194_v18 = vld [vmem:[%s10463_s1 + $0x68] sm:$0xff] }
 0x148   : > { %10648 = vst [vmem:[#allocation43_spill] sm:$0xff] %v8479_v3  ;;  %7518 = vmatprep.subr.bf16.mxu1 %v8479_v3  ;;  %10649 = vst [vmem:[#allocation44_spill] sm:$0xff] %v8503_v5  ;;  %v222_v47 = vld [vmem:[%s10463_s1 + $0x148] sm:$0xff]  ;;  %v8530_v7 = vpack.c.bf16 %v194_v18, %v193_v35  ;;  %v240_v35 = vld [vmem:[%s10463_s1 + $0x1d8] sm:$0xff] }
 0x149   : > { %7498 = vmatprep.subr.bf16.mxu0 %v8505_v52  ;;  %v8532_v4 = vpack.c.bf16 %v222_v47, %v221_v1  ;;  %v8550_v18 = vpack.c.bf16 %v240_v35, %v239_v15  ;;  %v195_v1 = vld [vmem:[%s10463_s1 + $0x70] sm:$0xff]  ;;  %v213_v35 = vld [vmem:[%s10463_s1 + $0x100] sm:$0xff] }
 0x14a   : > { %7520 = vmatpush3.bf16.msra.mxu1 %v8503_v5  ;;  %7500 = vmatpush3.bf16.msra.mxu0 %v8530_v7  ;;  %v223_v47 = vld [vmem:[%s10463_s1 + $0x150] sm:$0xff]  ;;  %v8564_v15 = vpack.c.bf16 %v196_v34, %v195_v1  ;;  %v8577_v55 = vpack.c.bf16 %v214_v17, %v213_v35  ;;  %v241_v1 = vld [vmem:[%s10463_s1 + $0x1e0] sm:$0xff]  ;;  %v242_v34 = vld [vmem:[%s10463_s1 + $0x1e8] sm:$0xff] }
 0x14b   : > { %10651 = vst [vmem:[#allocation46_spill] sm:$0xff] %v8532_v4  ;;  %7522 = vmatprep.subr.bf16.mxu1 %v8517_v36  ;;  %10653 = vst [vmem:[#allocation48_spill] sm:$0xff] %v8550_v18  ;;  %7502 = vmatprep.subr.bf16.mxu0 %v8544_v22  ;;  %v8575_v43 = vpack.c.bf16 %v224_v6, %v223_v47  ;;  %v8589_v50 = vpack.c.bf16 %v242_v34, %v241_v1  ;;  %v198_v17 = vld [vmem:[%s10463_s1 + $0x88] sm:$0xff]  ;;  %v225_v47 = vld [vmem:[%s10463_s1 + $0x160] sm:$0xff] }
 0x14c   : > { %10654 = vst [vmem:[#allocation49_spill] sm:$0xff] %v8564_v15  ;;  %10656 = vst [vmem:[#allocation51_spill] sm:$0xff] %v8577_v55  ;;  %v226_v6 = vld [vmem:[%s10463_s1 + $0x168] sm:$0xff]  ;;  %v8602_v35 = vpack.c.bf16 %v198_v17, %v197_v54  ;;  %v243_v34 = vld [vmem:[%s10463_s1 + $0x1f0] sm:$0xff] }
 0x14d   : > { %10655 = vst [vmem:[#allocation50_spill] sm:$0xff] %v8575_v43  ;;  %10657 = vst [vmem:[#allocation52_spill] sm:$0xff] %v8589_v50  ;;  %v8604_v1 = vpack.c.bf16 %v226_v6, %v225_v47  ;;  %v8616_v16 = vpack.c.bf16 %v244_v49, %v243_v34  ;;  %v264_v54 = vld [vmem:[%s10463_s1 + $0x298] sm:$0xff]  ;;  %v227_v47 = vld [vmem:[%s10463_s1 + $0x170] sm:$0xff] }
 0x14e   : > { %7524 = vmatpush3.bf16.msra.mxu1 %v8532_v4  ;;  %7504 = vmatpush3.bf16.msra.mxu0 %v8564_v15  ;;  %10658 = vst [vmem:[#allocation53_spill] sm:$0xff] %v8602_v35  ;;  %v8622_v17 = vpack.c.bf16 %v264_v54, %v263_v40  ;;  %v228_v6 = vld [vmem:[%s10463_s1 + $0x178] sm:$0xff]  ;;  %v245_v40 = vld [vmem:[%s10463_s1 + $0x200] sm:$0xff]  ;;  %v246_v34 = vld [vmem:[%s10463_s1 + $0x208] sm:$0xff] }
 0x14f   : > { %7526 = vmatprep.subr.bf16.mxu1 %v8550_v18  ;;  %7506 = vmatprep.subr.bf16.mxu0 %v8577_v55  ;;  %10659 = vst [vmem:[#allocation54_spill] sm:$0xff] %v8604_v1  ;;  %10660 = vst [vmem:[#allocation55_spill] sm:$0xff] %v8616_v16  ;;  %v8633_v49 = vpack.c.bf16 %v228_v6, %v227_v47  ;;  %v8641_v54 = vpack.c.bf16 %v246_v34, %v245_v40  ;;  %v295_v6 = vld [vmem:[%s10463_s1 + $0x390] sm:$0xff]  ;;  %v296_v40 = vld [vmem:[%s10463_s1 + $0x398] sm:$0xff]  ;;  %v10685_v18 = vsub.s32 3, %v8110_v30 }
 0x150   : > { %10661 = vst [vmem:[#allocation56_spill] sm:$0xff] %v8622_v17  ;;  %v8650_v47 = vpack.c.bf16 %v230_v13, %v229_v33  ;;  %v8659_v34 = vpack.c.bf16 %v296_v40, %v295_v6  ;;  %v8667_v13 = vmin.f32 %v8664_v31, 1.0  ;;  %v269_v5 = vld [vmem:[%s10463_s1 + $0x2c0] sm:$0xff] }
 0x151   : > { %10662 = vst [vmem:[#allocation57_spill] sm:$0xff] %v8633_v49  ;;  %10663 = vst [vmem:[#allocation58_spill] sm:$0xff] %v8641_v54  ;;  %v8843_v3 = vld [vmem:[%s10463_s1 + $0x420] sm:$0xff] }
 0x152   : > { %7528 = vmatpush3.bf16.msra.mxu1 %v8575_v43  ;;  %7508 = vmatpush3.bf16.msra.mxu0 %v8602_v35  ;;  %10664 = vst [vmem:[#allocation59_spill] sm:$0xff] %v8650_v47  ;;  %10665 = vst [vmem:[#allocation60_spill] sm:$0xff] %v8659_v34  ;;  %v519_v33 = vmul.f32 %v8667_v13, %v8667_v13  ;;  %v281_v35 = vld [vmem:[%s10463_s1 + $0x320] sm:$0xff] }
 0x153   : > { %7530 = vmatprep.subr.bf16.mxu1 %v8589_v50  ;;  %7542 = vmatprep.subr.bf16.mxu0 %v8622_v17  ;;  %10667 = vst [vmem:[#allocation62_spill] sm:$0xff] %v8667_v13  ;;  %v10683_v50 = vsub.s32 2, %v8110_v30  ;;  %v254_v17 = vld [vmem:[%s10463_s1 + $0x248] sm:$0xff] }
 0x154   : > { %v8671_v53 = vsub.f32 1.0, %v519_v33  ;;  %v8688_v33 = vpop.permute.xlu1 %554 }
 0x156   : > { %7532 = vmatpush3.bf16.msra.mxu1 %v8604_v1  ;;  %10668 = vst [vmem:[#allocation63_spill] sm:$0xff] %v8671_v53  ;;  %v8679_v42 = vmul.f32 %v8671_v53, %v8671_v53 }
 0x157   : > { %7534 = vmatprep.subr.bf16.mxu1 %v8616_v16 }
 0x158   : > { %v8693_v28 = vrot.slane %v8679_v42, %v10670_v56  ;;  %v8701_v24 = vrot.slane %v8679_v42, %v10673_v45  ;;  %v248_v45 = vld [vmem:[%s10463_s1 + $0x218] sm:$0xff]  ;;  %v8787_v43 = vrot.slane %v8679_v42, %v10683_v50  ;;  %v8792_v4 = vrot.slane %v8679_v42, %v10685_v18  ;;  %v279_v18 = vld [vmem:[%s10463_s1 + $0x310] sm:$0xff] }
 0x159   : > { %v252_v50 = vld [vmem:[%s10463_s1 + $0x238] sm:$0xff] }
 0x15a   : > { %7536 = vmatpush3.bf16.msra.mxu1 %v8633_v49  ;;  %10671 = vst [vmem:[#allocation65_spill] sm:$0xff] %v8693_v28  ;;  %10674 = vst [vmem:[#allocation67_spill] sm:$0xff] %v8701_v24 }
 0x15b   : > { %7538 = vmatprep.subr.bf16.mxu1 %v8641_v54  ;;  %10684 = vst [vmem:[#allocation76_spill] sm:$0xff] %v8787_v43  ;;  %10686 = vst [vmem:[#allocation77_spill] sm:$0xff] %v8792_v4 }
 0x15e   : > { %7540 = vmatpush3.bf16.msra.mxu1 %v8650_v47  ;;  %v8744_v47 = vpack.c.bf16 %v248_v45, %v247_v63  ;;  %v8770_v45 = vld [vmem:[%s10463_s1 + $0x418] sm:$0xff] }
 0x15f   : > { %7574 = vmatprep.subr.bf16.mxu1 %v8659_v34 }
 0x160   : > { %10678 = vst [vmem:[#allocation71_spill] sm:$0xff] %v8744_v47 }
 0x1f4   : > { %v6913_v29 = vpop.f32.mrb[0].mxu1 }
 0x1f5   : > { %v645_v51 = vpop.f32.mrb[1].mxu1  ;;  %v8712_v56 = vadd.f32 %v6913_v29, %v8688_v33  ;;  %v8730_v29 = vld [vmem:[%s10463_s1 + $0x410] sm:$0xff] }
 0x1f6   : > { %v6933_v6 = vpop.f32.mrb[6].mxu0  ;;  %v8684_v62 = vadd.f32 %v645_v51, %v8673_v9 }
 0x1f7   : > { %v871_v40 = vpop.f32.mrb[7].mxu0  ;;  %10676 = vst [vmem:[#allocation69_spill] sm:$0xff] %v8712_v56  ;;  %v669_v49 = vmul.f32 %v8693_v28, %v8712_v56 }
 0x1f8   : > { %v8675_v25 = vpop.f32.mrb[2].mxu1  ;;  %10669 = vst [vmem:[#allocation64_spill] sm:$0xff] %v8684_v62  ;;  %v8758_v16 = vadd.f32 %v871_v40, %v8673_v9  ;;  %v268_v40 = vld [vmem:[%s10463_s1 + $0x2b8] sm:$0xff] }
 0x1f9   : > { %v655_v8 = vpop.f32.mrb[3].mxu1 }
 0x1fa   : > { %v8681_v21 = vpop.f32.mrb[8].mxu0  ;;  %10680 = vst [vmem:[#allocation73_spill] sm:$0xff] %v8758_v16 }
 0x1fb   : > { %v8686_v46 = vpop.f32.mrb[9].mxu0 }
 0x1fc   : > { %v6923_v0 = vpop.f32.mrb[4].mxu1 }
 0x1fd   : > { %v8696_v61 = vadd.f32 %v6923_v0, %v8688_v33  ;;  %v758_v23 = vpop.f32.mrb[5].mxu1  ;;  %v668_v0 = vmul.f32 %v8693_v28, %v8684_v62 }
 0x1fe   : > { %v8703_v51 = vpop.f32.mrb[10].mxu0  ;;  %v8706_v20 = vadd.f32 %v758_v23, %v8673_v9  ;;  %v265_v23 = vld [vmem:[%s10463_s1 + $0x2a0] sm:$0xff] }
 0x1ff   : > { %10672 = vst [vmem:[#allocation66_spill] sm:$0xff] %v8696_v61  ;;  %v8716_v41 = vpop.f32.mrb[11].mxu0  ;;  %v782_v14 = vmul.f32 %v8701_v24, %v8696_v61  ;;  %v8746_v54 = vpack.c.bf16 %v266_v44, %v265_v23  ;;  %v249_v61 = vld [vmem:[%s10463_s1 + $0x220] sm:$0xff]  ;;  %v8763_v44 = vadd.f32 %v655_v8, %v8732_v39  ;;  %v267_v23 = vld [vmem:[%s10463_s1 + $0x2b0] sm:$0xff] }
 0x200   : > { %10675 = vst [vmem:[#allocation68_spill] sm:$0xff] %v8706_v20  ;;  %v781_v10 = vmul.f32 %v8701_v24, %v8706_v20  ;;  %v6926_v31 = vpop.f32.mrb[6].mxu1  ;;  %v250_v20 = vld [vmem:[%s10463_s1 + $0x228] sm:$0xff] }
 0x201   : > { %v768_v53 = vpop.f32.mrb[7].mxu1  ;;  %10679 = vst [vmem:[#allocation72_spill] sm:$0xff] %v8746_v54  ;;  %10681 = vst [vmem:[#allocation74_spill] sm:$0xff] %v8763_v44  ;;  %v786_v1 = vmul.f32 %v782_v14, %v8770_v45  ;;  %v251_v14 = vld [vmem:[%s10463_s1 + $0x230] sm:$0xff] }
 0x202   : > { %v8738_v13 = vpop.f32.mrb[12].mxu0  ;;  %v8741_v62 = vadd.f32 %v768_v53, %v8732_v39  ;;  %v785_v34 = vmul.f32 %v781_v10, %v8730_v29  ;;  %v672_v53 = vmul.f32 %v668_v0, %v8730_v29  ;;  %v8760_v10 = vpop.permute.xlu1 %564 }
 0x203   : > { %v8765_v63 = vpop.f32.mrb[13].mxu0  ;;  %v8779_v0 = vadd.f32 %v6926_v31, %v8760_v10 }
 0x204   : > { %10677 = vst [vmem:[#allocation70_spill] sm:$0xff] %v8741_v62  ;;  %v783_v8 = vmul.f32 %v8701_v24, %v8741_v62  ;;  %v6943_v56 = vpop.f32.mrb[8].mxu1  ;;  %1531 = vmatprep.mubr.f32.mxu0 %v785_v34  ;;  %v8797_v62 = vpack.c.bf16 %v250_v20, %v249_v61  ;;  %v8809_v34 = vadd.f32 %v6933_v6, %v8688_v33  ;;  %v270_v6 = vld [vmem:[%s10463_s1 + $0x2c8] sm:$0xff] }
 0x205   : > { %10682 = vst [vmem:[#allocation75_spill] sm:$0xff] %v8779_v0  ;;  %v8795_v31 = vadd.f32 %v6943_v56, %v8688_v33  ;;  %v984_v36 = vpop.f32.mrb[9].mxu1  ;;  %1532 = vmatmul.mubr.f32.vlgmr.msra.gmra.mrb[18].mxu0 %v672_v53  ;;  %v8817_v61 = vpack.c.bf16 %v268_v40, %v267_v23  ;;  %v280_v53 = vld [vmem:[%s10463_s1 + $0x318] sm:$0xff]  ;;  %v670_v23 = vmul.f32 %v8693_v28, %v8763_v44 }
 0x206   : > { %10688 = vst [vmem:[#allocation79_spill] sm:$0xff] %v8797_v62  ;;  %10689 = vst [vmem:[#allocation80_spill] sm:$0xff] %v8809_v34  ;;  %v8811_v56 = vpop.f32.mrb[14].mxu0  ;;  %v8814_v20 = vadd.f32 %v984_v36, %v8673_v9  ;;  %7544 = vmatpush3.bf16.msra.mxu0 %v8744_v47  ;;  %1536 = vmatprep.mubr.f32.mxu0 %v786_v1  ;;  %v894_v36 = vmul.f32 %v8787_v43, %v8758_v16  ;;  %v10693_v16 = vsub.s32 5, %v8110_v30 }
 0x207   : > { %10687 = vst [vmem:[#allocation78_spill] sm:$0xff] %v8795_v31  ;;  %10691 = vst [vmem:[#allocation82_spill] sm:$0xff] %v8817_v61  ;;  %v8832_v1 = vadd.f32 %v8675_v25, %v8760_v10  ;;  %v8836_v40 = vpop.f32.mrb[15].mxu0  ;;  %7546 = vmatprep.subr.bf16.mxu0 %v8746_v54  ;;  %v673_v47 = vmul.f32 %v669_v49, %v8770_v45  ;;  %v784_v25 = vmul.f32 %v8701_v24, %v8779_v0  ;;  %v297_v49 = vld [vmem:[%s10463_s1 + $0x3a0] sm:$0xff] }
 0x208   : > { %10690 = vst [vmem:[#allocation81_spill] sm:$0xff] %v8814_v20  ;;  %v8848_v11 = vrot.slane %v8679_v42, %v10693_v16  ;;  %v1007_v44 = vmul.f32 %v8792_v4, %v8814_v20  ;;  %v6946_v48 = vpop.f32.mrb[10].mxu1  ;;  %v787_v54 = vmul.f32 %v783_v8, %v8843_v3  ;;  %v253_v16 = vld [vmem:[%s10463_s1 + $0x240] sm:$0xff]  ;;  %v1008_v24 = vmul.f32 %v8792_v4, %v8795_v31  ;;  %v282_v31 = vld [vmem:[%s10463_s1 + $0x328] sm:$0xff] }
 0x209   : > { %10692 = vst [vmem:[#allocation83_spill] sm:$0xff] %v8832_v1  ;;  %v994_v0 = vpop.f32.mrb[11].mxu1  ;;  %1537 = vmatmul.mubr.f32.gmra.mrb[20].mxu0 %v673_v47  ;;  %v8866_v20 = vpack.c.bf16 %v252_v50, %v251_v14  ;;  %v8868_v8 = vpack.c.bf16 %v280_v53, %v279_v18  ;;  %v8870_v59 = vpack.c.bf16 %v270_v6, %v269_v5 }
 0x20a   : > { %10694 = vst [vmem:[#allocation84_spill] sm:$0xff] %v8848_v11  ;;  %v895_v47 = vmul.f32 %v8787_v43, %v8809_v34  ;;  %v8883_v14 = vpop.f32.mrb[16].mxu0  ;;  %v8886_v5 = vadd.f32 %v994_v0, %v8732_v39  ;;  %7548 = vmatpush3.bf16.msra.mxu0 %v8797_v62  ;;  %1541 = vmatprep.mubr.f32.mxu0 %v787_v54  ;;  %v8904_v54 = vld [vmem:[%s10463_s1 + $0x428] sm:$0xff] }
 0x20b   : > { %v1011_v50 = vmul.f32 %v1007_v44, %v8730_v29  ;;  %v898_v18 = vmul.f32 %v894_v36, %v8730_v29  ;;  %v671_v53 = vmul.f32 %v8693_v28, %v8832_v1  ;;  %v8895_v6 = vadd.f32 %v8686_v46, %v8732_v39  ;;  %v8897_v34 = vpop.f32.mrb[17].mxu0  ;;  %7550 = vmatprep.subr.bf16.mxu0 %v8817_v61  ;;  %v271_v44 = vld [vmem:[%s10463_s1 + $0x2d0] sm:$0xff]  ;;  %v272_v46 = vld [vmem:[%s10463_s1 + $0x2d8] sm:$0xff] }
 0x20c   : > { %10695 = vst [vmem:[#allocation85_spill] sm:$0xff] %v8886_v5  ;;  %v674_v0 = vmul.f32 %v670_v23, %v8843_v3  ;;  %v8912_v36 = vpop.f32.mrb[12].mxu1  ;;  %v788_v28 = vmul.f32 %v784_v25, %v8904_v54  ;;  %v8915_v1 = vpack.c.bf16 %v298_v57, %v297_v49  ;;  %v8917_v23 = vpack.c.bf16 %v254_v17, %v253_v16  ;;  %v299_v57 = vld [vmem:[%s10463_s1 + $0x3b0] sm:$0xff]  ;;  %v256_v49 = vld [vmem:[%s10463_s1 + $0x258] sm:$0xff] }
 0x20d   : > { %10696 = vst [vmem:[#allocation86_spill] sm:$0xff] %v8895_v6  ;;  %1616 = vmatprep.mubr.f32.mxu1 %v1011_v50  ;;  %v8919_v61 = vpack.c.bf16 %v282_v31, %v281_v35  ;;  %v8922_v62 = vadd.f32 %v6946_v48, %v8760_v10  ;;  %v1009_v55 = vmul.f32 %v8792_v4, %v8886_v5  ;;  %v1210_v15 = vpop.f32.mrb[13].mxu1  ;;  %v300_v35 = vld [vmem:[%s10463_s1 + $0x3b8] sm:$0xff]  ;;  %v255_v31 = vld [vmem:[%s10463_s1 + $0x250] sm:$0xff] }
 0x20e   : > { %10697 = vst [vmem:[#allocation87_spill] sm:$0xff] %v8917_v23  ;;  %1542 = vmatmul.mubr.f32.gmra.mrb[22].mxu0 %v674_v0  ;;  %1617 = vmatmul.mubr.f32.vlgmr.msra.gmra.mrb[20].mxu1 %v898_v18  ;;  %v1012_v22 = vmul.f32 %v1008_v24, %v8770_v45  ;;  %v8935_v48 = vadd.f32 %v8681_v21, %v8760_v10  ;;  %v283_v16 = vld [vmem:[%s10463_s1 + $0x330] sm:$0xff]  ;;  %v284_v50 = vld [vmem:[%s10463_s1 + $0x338] sm:$0xff]  ;;  %v273_v18 = vld [vmem:[%s10463_s1 + $0x2e0] sm:$0xff] }
 0x20f   : > { %10698 = vst [vmem:[#allocation88_spill] sm:$0xff] %v8922_v62  ;;  %v8938_v17 = vadd.f32 %v1210_v15, %v8673_v9  ;;  %7552 = vmatpush3.bf16.msra.mxu0 %v8866_v20  ;;  %7576 = vmatpush3.bf16.msra.mxu1 %v8868_v8  ;;  %v8942_v24 = vpack.c.bf16 %v272_v46, %v271_v44 }
 0x210   : > { %10699 = vst [vmem:[#allocation89_spill] sm:$0xff] %v8935_v48  ;;  %v896_v25 = vmul.f32 %v8787_v43, %v8895_v6  ;;  %1546 = vmatprep.mubr.f32.mxu0 %v788_v28  ;;  %1621 = vmatprep.mubr.f32.mxu1 %v1012_v22  ;;  %v675_v21 = vmul.f32 %v671_v53, %v8904_v54  ;;  %v8962_v22 = vpop.f32.mrb[14].mxu1  ;;  %v274_v53 = vld [vmem:[%s10463_s1 + $0x2e8] sm:$0xff] }
 0x211   : > { %10700 = vst [vmem:[#allocation90_spill] sm:$0xff] %v8938_v17  ;;  %10701 = vst [vmem:[#allocation91_spill] sm:$0xff] %v8942_v24  ;;  %v899_v15 = vmul.f32 %v895_v47, %v8770_v45  ;;  %v1233_v28 = vmul.f32 %v8848_v11, %v8938_v17  ;;  %7554 = vmatprep.subr.bf16.mxu0 %v8870_v59  ;;  %7578 = vmatprep.subr.bf16.mxu1 %v8915_v1  ;;  %v8976_v44 = vpop.f32.mrb[15].mxu1 }
 0x212   : > { %v8966_v47 = vpack.c.bf16 %v300_v35, %v299_v57  ;;  %v1010_v0 = vmul.f32 %v8792_v4, %v8922_v62  ;;  %1547 = vmatmul.mubr.f32.gmra.mrb[24].mxu0 %v675_v21  ;;  %v1013_v46 = vmul.f32 %v1009_v55, %v8843_v3  ;;  %v301_v57 = vld [vmem:[%s10463_s1 + $0x3c0] sm:$0xff]  ;;  %v302_v35 = vld [vmem:[%s10463_s1 + $0x3c8] sm:$0xff]  ;;  %v8988_v17 = vpack.c.bf16 %v256_v49, %v255_v31 }
 0x213   : > { %1622 = vmatmul.mubr.f32.gmra.mrb[22].mxu1 %v899_v15  ;;  %7556 = vmatpush3.bf16.msra.mxu0 %v8917_v23  ;;  %v1237_v4 = vmul.f32 %v1233_v28, %v8730_v29  ;;  %v8990_v21 = vpack.c.bf16 %v284_v50, %v283_v16  ;;  %v257_v55 = vld [vmem:[%s10463_s1 + $0x260] sm:$0xff]  ;;  %v258_v15 = vld [vmem:[%s10463_s1 + $0x268] sm:$0xff]  ;;  %v897_v62 = vmul.f32 %v8787_v43, %v8935_v48  ;;  %v275_v50 = vld [vmem:[%s10463_s1 + $0x2f0] sm:$0xff]  ;;  %v10705_v48 = vsub.s32 7, %v8110_v30 }
 0x214   : > { %7580 = vmatpush3.bf16.msra.mxu1 %v8919_v61  ;;  %10702 = vst [vmem:[#allocation92_spill] sm:$0xff] %v8988_v17  ;;  %1626 = vmatprep.mubr.f32.mxu1 %v1013_v46  ;;  %v900_v28 = vmul.f32 %v896_v25, %v8843_v3  ;;  %v9002_v31 = vpack.c.bf16 %v274_v53, %v273_v18  ;;  %v285_v49 = vld [vmem:[%s10463_s1 + $0x340] sm:$0xff]  ;;  %v286_v16 = vld [vmem:[%s10463_s1 + $0x348] sm:$0xff]  ;;  %v9013_v43 = vpop.f32.mrb[16].mxu1  ;;  %v276_v18 = vld [vmem:[%s10463_s1 + $0x2f8] sm:$0xff] }
 0x215   : > { %7558 = vmatprep.subr.bf16.mxu0 %v8942_v24  ;;  %1701 = vmatprep.mubr.f32.mxu0 %v1237_v4  ;;  %v9016_v25 = vpack.c.bf16 %v302_v35, %v301_v57  ;;  %v303_v53 = vld [vmem:[%s10463_s1 + $0x3d0] sm:$0xff]  ;;  %v304_v46 = vld [vmem:[%s10463_s1 + $0x3d8] sm:$0xff]  ;;  %v9030_v4 = vrot.slane %v8679_v42, %v10705_v48  ;;  %v1436_v5 = vpop.f32.mrb[17].mxu1  ;;  %v1014_v57 = vmul.f32 %v1010_v0, %v8904_v54  ;;  %v261_v23 = vld [vmem:[%s10463_s1 + $0x280] sm:$0xff] }
 0x216   : > { %10703 = vst [vmem:[#allocation93_spill] sm:$0xff] %v9002_v31  ;;  %7582 = vmatprep.subr.bf16.mxu1 %v8966_v47  ;;  %v9034_v35 = vadd.f32 %v1436_v5, %v8673_v9  ;;  %v9038_v6 = vpack.c.bf16 %v258_v15, %v257_v55  ;;  %v9040_v24 = vpack.c.bf16 %v286_v16, %v285_v49  ;;  %v259_v48 = vld [vmem:[%s10463_s1 + $0x270] sm:$0xff]  ;;  %v288_v15 = vld [vmem:[%s10463_s1 + $0x358] sm:$0xff]  ;;  %v277_v49 = vld [vmem:[%s10463_s1 + $0x300] sm:$0xff] }
 0x217   : > { %10704 = vst [vmem:[#allocation94_spill] sm:$0xff] %v9016_v25  ;;  %10706 = vst [vmem:[#allocation95_spill] sm:$0xff] %v9030_v4  ;;  %1627 = vmatmul.mubr.f32.gmra.mrb[24].mxu1 %v900_v28  ;;  %7560 = vmatpush3.bf16.msra.mxu0 %v8988_v17  ;;  %v260_v28 = vld [vmem:[%s10463_s1 + $0x278] sm:$0xff]  ;;  %v901_v5 = vmul.f32 %v897_v62, %v8904_v54  ;;  %v9050_v0 = vpack.c.bf16 %v276_v18, %v275_v50  ;;  %v287_v55 = vld [vmem:[%s10463_s1 + $0x350] sm:$0xff] }
 0x218   : > { %10707 = vst [vmem:[#allocation96_spill] sm:$0xff] %v9034_v35  ;;  %7584 = vmatpush3.bf16.msra.mxu1 %v8990_v21  ;;  %10708 = vst [vmem:[#allocation97_spill] sm:$0xff] %v9038_v6  ;;  %1631 = vmatprep.mubr.f32.mxu1 %v1014_v57  ;;  %v9052_v17 = vpack.c.bf16 %v304_v46, %v303_v53  ;;  %v1459_v16 = vmul.f32 %v9030_v4, %v9034_v35  ;;  %v9065_v62 = vpop.f32.mrb[18].mxu1  ;;  %v278_v50 = vld [vmem:[%s10463_s1 + $0x308] sm:$0xff]  ;;  %v305_v18 = vld [vmem:[%s10463_s1 + $0x3e0] sm:$0xff] }
 0x219   : > { %7562 = vmatprep.subr.bf16.mxu0 %v9002_v31  ;;  %7586 = vmatprep.subr.bf16.mxu1 %v9016_v25  ;;  %v306_v53 = vld [vmem:[%s10463_s1 + $0x3e8] sm:$0xff]  ;;  %v9077_v46 = vpop.f32.mrb[19].mxu1  ;;  %v9082_v35 = vpack.c.bf16 %v260_v28, %v259_v48  ;;  %v9084_v31 = vpack.c.bf16 %v288_v15, %v287_v55  ;;  %v9091_v25 = vadd.f32 %v8716_v41, %v8673_v9  ;;  %v289_v28 = vld [vmem:[%s10463_s1 + $0x360] sm:$0xff]  ;;  %v307_v15 = vld [vmem:[%s10463_s1 + $0x3f0] sm:$0xff] }
 0x21a   : > { %v1463_v57 = vmul.f32 %v1459_v16, %v8730_v29  ;;  %v262_v48 = vld [vmem:[%s10463_s1 + $0x288] sm:$0xff]  ;;  %v9110_v55 = vadd.f32 %v8912_v36, %v8688_v33  ;;  %v10713_v16 = vsub.s32 4, %v8110_v30 }
 0x21b   : > { %1632 = vmatmul.mubr.f32.gmra.mrb[26].mxu1 %v901_v5  ;;  %7564 = vmatpush3.bf16.msra.mxu0 %v9038_v6  ;;  %10709 = vst [vmem:[#allocation98_spill] sm:$0xff] %v9082_v35  ;;  %10710 = vst [vmem:[#allocation99_spill] sm:$0xff] %v9091_v25  ;;  %v9095_v5 = vpack.c.bf16 %v278_v50, %v277_v49  ;;  %v9097_v6 = vpack.c.bf16 %v306_v53, %v305_v18  ;;  %v290_v41 = vld [vmem:[%s10463_s1 + $0x368] sm:$0xff]  ;;  %v308_v49 = vld [vmem:[%s10463_s1 + $0x3f8] sm:$0xff] }
 0x21c   : > { %7588 = vmatpush3.bf16.msra.mxu1 %v9040_v24  ;;  %7566 = vmatprep.subr.bf16.mxu0 %v9050_v0  ;;  %10712 = vst [vmem:[#allocation101_spill] sm:$0xff] %v9110_v55  ;;  %v9121_v50 = vrot.slane %v8679_v42, %v10713_v16  ;;  %v9125_v36 = vpack.c.bf16 %v262_v48, %v261_v23  ;;  %v291_v53 = vld [vmem:[%s10463_s1 + $0x370] sm:$0xff]  ;;  %v292_v23 = vld [vmem:[%s10463_s1 + $0x378] sm:$0xff]  ;;  %v309_v48 = vld [vmem:[%s10463_s1 + $0x400] sm:$0xff] }
 0x21d   : > { %7590 = vmatprep.subr.bf16.mxu1 %v9052_v17  ;;  %10711 = vst [vmem:[#allocation100_spill] sm:$0xff] %v9095_v5  ;;  %1786 = vmatprep.mubr.f32.mxu1 %v1463_v57  ;;  %v9127_v18 = vpack.c.bf16 %v290_v41, %v289_v28  ;;  %v9134_v57 = vadd.f32 %v8703_v51, %v8688_v33  ;;  %v310_v51 = vld [vmem:[%s10463_s1 + $0x408] sm:$0xff] }
 0x21e   : > { %10714 = vst [vmem:[#allocation102_spill] sm:$0xff] %v9121_v50  ;;  %10715 = vst [vmem:[#allocation103_spill] sm:$0xff] %v9125_v36  ;;  %v1120_v16 = vmul.f32 %v9121_v50, %v9091_v25  ;;  %v1234_v28 = vmul.f32 %v8848_v11, %v9110_v55  ;;  %v9155_v41 = vadd.f32 %v8976_v44, %v8732_v39 }
 0x21f   : > { %7568 = vmatpush3.bf16.msra.mxu0 %v9082_v35  ;;  %10716 = vst [vmem:[#allocation104_spill] sm:$0xff] %v9134_v57  ;;  %v9140_v35 = vpack.c.bf16 %v308_v49, %v307_v15  ;;  %v9159_v15 = vpack.c.bf16 %v292_v23, %v291_v53  ;;  %v9161_v49 = vpack.c.bf16 %v310_v51, %v309_v48  ;;  %v293_v53 = vld [vmem:[%s10463_s1 + $0x380] sm:$0xff]  ;;  %v294_v23 = vld [vmem:[%s10463_s1 + $0x388] sm:$0xff]  ;;  %v10722_v48 = vsub.s32 6, %v8110_v30 }
 0x220   : > { %7592 = vmatpush3.bf16.msra.mxu1 %v9084_v31  ;;  %7570 = vmatprep.subr.bf16.mxu0 %v9095_v5  ;;  %10717 = vst [vmem:[#allocation105_spill] sm:$0xff] %v9155_v41  ;;  %v1121_v25 = vmul.f32 %v9121_v50, %v9134_v57  ;;  %v1124_v5 = vmul.f32 %v1120_v16, %v8730_v29 }
 0x221   : > { %7594 = vmatprep.subr.bf16.mxu1 %v9097_v6  ;;  %v9168_v55 = vadd.f32 %v8765_v63, %v8732_v39  ;;  %v9172_v44 = vadd.f32 %v8836_v40, %v8673_v9  ;;  %v9183_v16 = vadd.f32 %v8962_v22, %v8760_v10  ;;  %v1235_v63 = vmul.f32 %v8848_v11, %v9155_v41 }
 0x222   : > { %v9189_v9 = vadd.f32 %v9013_v43, %v8688_v33  ;;  %v1238_v40 = vmul.f32 %v1234_v28, %v8770_v45  ;;  %v9195_v51 = vrot.slane %v8679_v42, %v10722_v48  ;;  %v9199_v57 = vadd.f32 %v8738_v13, %v8760_v10 }
 0x223   : > { %7572 = vmatpush3.bf16.msra.mxu0 %v9125_v36  ;;  %10718 = vst [vmem:[#allocation106_spill] sm:$0xff] %v9168_v55  ;;  %10719 = vst [vmem:[#allocation107_spill] sm:$0xff] %v9172_v44  ;;  %v9202_v22 = vpack.c.bf16 %v294_v23, %v293_v53  ;;  %v1122_v43 = vmul.f32 %v9121_v50, %v9168_v55  ;;  %v9208_v28 = vadd.f32 %v8811_v56, %v8688_v33 }
 0x224   : > { %7596 = vmatpush3.bf16.msra.mxu1 %v9127_v18  ;;  %10720 = vst [vmem:[#allocation108_spill] sm:$0xff] %v9183_v16  ;;  %10721 = vst [vmem:[#allocation109_spill] sm:$0xff] %v9189_v9  ;;  %v1346_v30 = vmul.f32 %v9195_v51, %v9172_v44  ;;  %v1125_v42 = vmul.f32 %v1121_v25, %v8770_v45  ;;  %v1236_v13 = vmul.f32 %v8848_v11, %v9183_v16 }
 0x225   : > { %7598 = vmatprep.subr.bf16.mxu1 %v9140_v35  ;;  %10723 = vst [vmem:[#allocation110_spill] sm:$0xff] %v9195_v51  ;;  %10724 = vst [vmem:[#allocation111_spill] sm:$0xff] %v9199_v57  ;;  %v9220_v53 = vadd.f32 %v9077_v46, %v8732_v39  ;;  %v1239_v33 = vmul.f32 %v1235_v63, %v8843_v3  ;;  %v1123_v56 = vmul.f32 %v9121_v50, %v9199_v57 }
 0x226   : > { %1702 = vmatmul.mubr.f32.vlgmr.msra.gmra.mrb[26].mxu0 %v1124_v5  ;;  %10725 = vst [vmem:[#allocation112_spill] sm:$0xff] %v9202_v22  ;;  %10726 = vst [vmem:[#allocation113_spill] sm:$0xff] %v9208_v28  ;;  %v1460_v5 = vmul.f32 %v9030_v4, %v9189_v9  ;;  %v1347_v25 = vmul.f32 %v9195_v51, %v9208_v28  ;;  %v1350_v23 = vmul.f32 %v1346_v30, %v8730_v29 }
 0x227   : > { %1706 = vmatprep.mubr.f32.mxu0 %v1238_v40  ;;  %10727 = vst [vmem:[#allocation114_spill] sm:$0xff] %v9220_v53  ;;  %v9231_v40 = vadd.f32 %v8897_v34, %v8732_v39  ;;  %v1126_v46 = vmul.f32 %v1122_v43, %v8843_v3  ;;  %v9236_v63 = vadd.f32 %v9065_v62, %v8760_v10 }
 0x228   : > { %7600 = vmatpush3.bf16.msra.mxu1 %v9159_v15  ;;  %v1461_v48 = vmul.f32 %v9030_v4, %v9220_v53  ;;  %v9244_v39 = vadd.f32 %v8883_v14, %v8760_v10  ;;  %v1127_v34 = vmul.f32 %v1123_v56, %v8904_v54  ;;  %v1351_v62 = vmul.f32 %v1347_v25, %v8770_v45  ;;  %v9280_v25 = vld [vmem:[%s10463_s1 + $0x6c0] sm:$0xff] }
 0x229   : > { %7602 = vmatprep.subr.bf16.mxu1 %v9161_v49  ;;  %10728 = vst [vmem:[#allocation115_spill] sm:$0xff] %v9231_v40  ;;  %10729 = vst [vmem:[#allocation116_spill] sm:$0xff] %v9236_v63  ;;  %v1348_v29 = vmul.f32 %v9195_v51, %v9231_v40  ;;  %v1462_v43 = vmul.f32 %v9030_v4, %v9236_v63  ;;  %v8023_v56 = vmov 2  }
 0x22a   : > { %1707 = vmatmul.mubr.f32.gmra.mrb[28].mxu0 %v1125_v42  ;;  %v1240_v42 = vmul.f32 %v1236_v13, %v8904_v54  ;;  %10730 = vst [vmem:[#allocation117_spill] sm:$0xff] %v9244_v39  ;;  %v1465_v30 = vmul.f32 %v1461_v48, %v8843_v3  ;;  %v1349_v13 = vmul.f32 %v9195_v51, %v9244_v39 }
 0x22b   : > { %1711 = vmatprep.mubr.f32.mxu0 %v1239_v33  ;;  %v1464_v33 = vmul.f32 %v1460_v5, %v8770_v45  ;;  %v1352_v10 = vmul.f32 %v1348_v29, %v8843_v3  ;;  %v1466_v14 = vmul.f32 %v1462_v43, %v8904_v54  ;;  %v9261_v45 = vld [vmem:[%s10463_s1 + $0x450] sm:$0xff]  ;;  %7935 = vset.pattern.permute.xlu1 %v8023_v56 }
 0x22c   : > { %7604 = vmatpush3.bf16.msra.mxu1 %v9202_v22  ;;  %v1353_v5 = vmul.f32 %v1349_v13, %v8904_v54  ;;  %7936 = vset.pattern.permute.xlu0 %v8023_v56  ;;  %v9268_v3 = vld [vmem:[%s10463_s1 + $0x6b0] sm:$0xff]  ;;  %v9274_v54 = vld [vmem:[%s10463_s1 + $0x6b8] sm:$0xff] }
 0x22d   : > { %1808 = vperm.xlu1 %7935, %v9268_v3   ;;  %1812 = vperm.xlu0 %7936, %v9274_v54  }
 0x22e   : > { %1712 = vmatmul.mubr.f32.gmra.mrb[30].mxu0 %v1126_v46 }
 0x22f   : > { %1787 = vmatmul.mubr.f32.vlgmr.msra.gmra.mrb[28].mxu1 %v1350_v23  ;;  %1716 = vmatprep.mubr.f32.mxu0 %v1240_v42  ;;  %v9286_v23 = vld [vmem:[%s10463_s1 + $0x6c8] sm:$0xff] }
 0x230   : > { %1791 = vmatprep.mubr.f32.mxu1 %v1464_v33 }
 0x231   : > { %1816 = vperm.xlu1 %7935, %v9280_v25  }
 0x232   : > { %1717 = vmatmul.mubr.f32.gmra.mrb[32].mxu0 %v1127_v34 }
 0x233   : > { %1792 = vmatmul.mubr.f32.gmra.mrb[30].mxu1 %v1351_v62  ;;  %6995 = vmatprep.mubr.msk.f32.mxu0 %vm1823_vm6, %v9261_v45 }
 0x234   : > { %1796 = vmatprep.mubr.f32.mxu1 %v1465_v30 }
 0x235   : > { %1820 = vperm.xlu1 %7935, %v9286_v23  }
 0x237   : > { %1797 = vmatmul.mubr.f32.gmra.mrb[32].mxu1 %v1352_v10 }
 0x238   : > { %1801 = vmatprep.mubr.f32.mxu1 %v1466_v14 }
 0x23b   : > { %1802 = vmatmul.mubr.f32.gmra.mrb[34].mxu1 %v1353_v5 }
 0x2d8   : > { %v6283_v46 = vpop.f32.mrb[18].mxu0 }
 0x2d9   : > { %v6284_v48 = vpop.f32.mrb[19].mxu0 }
 0x2da   : > { %v6285_v42 = vadd.f32 %v6284_v48, %v6283_v46 }
 0x2dc   : > { %v6286_v33 = vpop.f32.mrb[20].mxu0 }
 0x2dd   : > { %v6287_v29 = vpop.f32.mrb[21].mxu0 }
 0x2de   : > { %v6288_v34 = vadd.f32 %v6287_v29, %v6286_v33 }
 0x2e1   : > { %v6289_v62 = vpop.f32.mrb[22].mxu0  ;;  %v6327_v43 = vpop.f32.mrb[20].mxu1 }
 0x2e2   : > { %v6290_v30 = vpop.f32.mrb[23].mxu0  ;;  %v6328_v13 = vpop.f32.mrb[21].mxu1 }
 0x2e3   : > { %v6291_v10 = vadd.f32 %v6290_v30, %v6289_v62  ;;  %v6329_v14 = vadd.f32 %v6328_v13, %v6327_v43 }
 0x2e5   : > { %v1619_v5 = vadd.f32 %v6329_v14, %v6285_v42  ;;  %v6292_v56 = vpop.f32.mrb[24].mxu0 }
 0x2e6   : > { %v6330_v11 = vpop.f32.mrb[22].mxu1  ;;  %v6293_v4 = vpop.f32.mrb[25].mxu0 }
 0x2e7   : > { %v6331_v16 = vpop.f32.mrb[23].mxu1  ;;  %v6294_v63 = vadd.f32 %v6293_v4, %v6292_v56 }
 0x2e8   : > { %v6332_v39 = vadd.f32 %v6331_v16, %v6330_v11 }
 0x2ea   : > { %v1624_v57 = vadd.f32 %v6332_v39, %v6288_v34  ;;  %v6333_v41 = vpop.f32.mrb[24].mxu1 }
 0x2eb   : > { %v6334_v53 = vpop.f32.mrb[25].mxu1 }
 0x2ec   : > { %v6335_v46 = vadd.f32 %v6334_v53, %v6333_v41 }
 0x2ee   : > { %v1629_v48 = vadd.f32 %v6335_v46, %v6291_v10  ;;  %v6336_v40 = vpop.f32.mrb[26].mxu1 }
 0x2ef   : > { %v6337_v33 = vpop.f32.mrb[27].mxu1 }
 0x2f0   : > { %v6338_v29 = vadd.f32 %v6337_v33, %v6336_v40 }
 0x2f2   : > { %v1634_v55 = vadd.f32 %v6338_v29, %v6294_v63 }
 0x2f9   : > { %v6371_v9 = vpop.f32.mrb[26].mxu0 }
 0x2fa   : > { %v6372_v28 = vpop.f32.mrb[27].mxu0 }
 0x2fb   : > { %v6373_v62 = vadd.f32 %v6372_v28, %v6371_v9 }
 0x2fd   : > { %v1704_v43 = vadd.f32 %v6373_v62, %v1619_v5  ;;  %v6374_v42 = vpop.f32.mrb[28].mxu0 }
 0x2fe   : > { %v6375_v30 = vpop.f32.mrb[29].mxu0 }
 0x2ff   : > { %v6376_v13 = vadd.f32 %v6375_v30, %v6374_v42 }
 0x301   : > { %v1709_v14 = vadd.f32 %v6376_v13, %v1624_v57  ;;  %v6377_v44 = vpop.f32.mrb[30].mxu0 }
 0x302   : > { %v6415_v4 = vpop.f32.mrb[28].mxu1  ;;  %v6378_v11 = vpop.f32.mrb[31].mxu0 }
 0x303   : > { %v6416_v16 = vpop.f32.mrb[29].mxu1  ;;  %v6379_v39 = vadd.f32 %v6378_v11, %v6377_v44  ;;  %v9307_v11 = vld [vmem:[%s10463_s1 + $0x468] sm:$0xff] }
 0x304   : > { %v6417_v34 = vadd.f32 %v6416_v16, %v6415_v4  ;;  %v9292_v4 = vld [vmem:[%s10463_s1 + $0x458] sm:$0xff]  ;;  %v10732_v16 = vmov 0.0  }
 0x305   : > { %v1714_v41 = vadd.f32 %v6379_v39, %v1629_v48  ;;  %v6380_v10 = vpop.f32.mrb[32].mxu0  ;;  %v9316_v39 = vld [vmem:[%s10463_s1 + $0x470] sm:$0xff] }
 0x306   : > { %v1789_v53 = vadd.f32 %v6417_v34, %v1704_v43  ;;  %v6418_v56 = vpop.f32.mrb[30].mxu1  ;;  %v6381_v40 = vpop.f32.mrb[33].mxu0  ;;  %7009 = vmatprep.mubr.msk.f32.mxu1 %vm1823_vm6, %v9316_v39  ;;  %v8024_v34 = vmov 3  }
 0x307   : > { %v6419_v63 = vpop.f32.mrb[31].mxu1  ;;  %v6382_v46 = vadd.f32 %v6381_v40, %v6380_v10  ;;  %7938 = vset.pattern.permute.xlu1 %v8024_v34  ;;  %7937 = vset.pattern.permute.xlu0 %v8024_v34 }
 0x308   : > { %v6420_v33 = vadd.f32 %v6419_v63, %v6418_v56  ;;  %1938 = vperm.xlu1 %7938, %v9274_v54   ;;  %1934 = vperm.xlu0 %7937, %v9268_v3   ;;  %v1813_v56 = vpop.permute.xlu0 %1812 }
 0x309   : > { %v1719_v9 = vadd.f32 %v6382_v46, %v1634_v55  ;;  %v9297_v55 = vld [vmem:[%s10463_s1 + $0x460] sm:$0xff] }
 0x30a   : > { %v1794_v28 = vadd.f32 %v6420_v33, %v1709_v14  ;;  %v6421_v5 = vpop.f32.mrb[32].mxu1  ;;  %v10731_v14 = vmov 0.0|0.0  }
 0x30b   : > { %v6422_v29 = vpop.f32.mrb[33].mxu1 }
 0x30c   : > { %v6423_v62 = vadd.f32 %v6422_v29, %v6421_v5  ;;  %v7605_v57 = vpack.c.bf16 %v1794_v28, %v1789_v53  ;;  %1942 = vperm.xlu1 %7938, %v9280_v25   ;;  %1946 = vperm.xlu0 %7937, %v9286_v23   ;;  %v1809_v53 = vpop.permute.xlu1 %1808  ;;  %v316_v25 = vld [vmem:[%s10463_s1 + $0x438] sm:$0xff]  ;;  %v315_v23 = vld [vmem:[%s10463_s1 + $0x430] sm:$0xff] }
 0x30e   : > { %v1799_v42 = vadd.f32 %v6423_v62, %v1714_v41  ;;  %v6424_v30 = vpop.f32.mrb[34].mxu1  ;;  %7606 = vmatprep.subr.bf16.mxu0 %v7605_v57  ;;  %v10733_v41 = vmov 1.0  }
 0x30f   : > { %v6425_v13 = vpop.f32.mrb[35].mxu1  ;;  %7608 = vmatpush3.bf16.msra.mxu0 %v7605_v57 }
 0x310   : > { %v6426_v44 = vadd.f32 %v6425_v13, %v6424_v30  ;;  %v1817_v10 = vpop.permute.xlu1 %1816  ;;  %v318_v30 = vld [vmem:[%s10463_s1 + $0x448] sm:$0xff]  ;;  %v317_v13 = vld [vmem:[%s10463_s1 + $0x440] sm:$0xff] }
 0x312   : > { %v1804_v48 = vadd.f32 %v6426_v44, %v1719_v9 }
 0x314   : > { %v7609_v43 = vpack.c.bf16 %v1804_v48, %v1799_v42  ;;  %v1821_v9 = vpop.permute.xlu1 %1820 }
 0x316   : > { %7610 = vmatprep.subr.bf16.mxu0 %v7609_v43 }
 0x317   : > { %7612 = vmatpush3.bf16.msra.mxu0 %v7609_v43 }
 0x318   : > { %7621 = vmatprep.subr.bf16.mxu0 %v10731_v14 }
 0x31a   : > { %6996 = vmatmul.mubr.msk.f32.vlgmr.msra.gmra.mrb[34].mxu0 %vm1823_vm6, %v9292_v4 }
 0x31b   : > { %6998 = vmatprep.mubr.msk.f32.mxu0 %vm1823_vm6, %v9297_v55 }
 0x31e   : > { %6999 = vmatmul.mubr.msk.f32.gmra.mrb[36].mxu0 %vm1823_vm6, %v9307_v11 }
 0x31f   : > { %7023 = vmatprep.mubr.msk.f32.mxu0 %vm8018_vm0, %v10732_v16 }
 0x335   : > { %2202 = vxpose.xlu1.b32.start.end [1/1] (short) %v10733_v41, 128 }
 0x3ed   : > { %v6997_v40 = vpop.f32.mrb[34].mxu0 }
 0x3ee   : > { %v1908_v63 = vadd.f32 %v6997_v40, %v1813_v56  ;;  %v1902_v46 = vpop.f32.mrb[35].mxu0  ;;  %v9352_v56 = vld [vmem:[%s10463_s1 + $0x478] sm:$0xff]  ;;  %v9357_v40 = vld [vmem:[%s10463_s1 + $0x480] sm:$0xff] }
 0x3ef   : > { %v1903_v33 = vadd.f32 %v1902_v46, %v1809_v53  ;;  %v1939_v46 = vpop.permute.xlu1 %1938 }
 0x3f0   : > { %7977 = vtanh.f32 %v1908_v63  ;;  %v9367_v63 = vld [vmem:[%s10463_s1 + $0x488] sm:$0xff] }
 0x3f1   : > { %7979 = vtanh.f32 %v1903_v33  ;;  %v7000_v28 = vpop.f32.mrb[36].mxu0 }
 0x3f2   : > { %v1918_v54 = vadd.f32 %v7000_v28, %v1821_v9  ;;  %v1912_v5 = vpop.f32.mrb[37].mxu0 }
 0x3f3   : > { %v1913_v3 = vadd.f32 %v1912_v5, %v1817_v10  ;;  %v1943_v33 = vpop.permute.xlu1 %1942 }
 0x3f4   : > { %7981 = vtanh.f32 %v1918_v54 }
 0x3f5   : > { %7983 = vtanh.f32 %v1913_v3 }
 0x3f7   : > { %v2218_v9 = vpop.trf.xlu1 }
 0x3fa   : > { %v9331_v29 = vpop.eup %7977 }
 0x3fb   : > { %v9333_v62 = vpop.eup %7979  ;;  %v1930_v57 = vadd.f32 %v9331_v29, %v316_v25  ;;  %v2219_v28 = vpop.trf.xlu1 }
 0x3fc   : > { %v1929_v42 = vadd.f32 %v9333_v62, %v315_v23  ;;  %v1935_v23 = vpop.permute.xlu0 %1934 }
 0x3fe   : > { %v9343_v44 = vpop.eup %7981  ;;  %v7613_v48 = vpack.c.bf16 %v1930_v57, %v1929_v42 }
 0x3ff   : > { %v9345_v43 = vpop.eup %7983  ;;  %v1932_v34 = vadd.f32 %v9343_v44, %v318_v30  ;;  %v2220_v54 = vpop.trf.xlu1 }
 0x400   : > { %7614 = vmatprep.subr.bf16.mxu1 %v7613_v48  ;;  %v1931_v53 = vadd.f32 %v9345_v43, %v317_v13 }
 0x401   : > { %7616 = vmatpush3.bf16.msra.mxu1 %v7613_v48 }
 0x402   : > { %v7617_v10 = vpack.c.bf16 %v1932_v34, %v1931_v53  ;;  %v1947_v53 = vpop.permute.xlu0 %1946 }
 0x403   : > { %v2221_v5 = vpop.trf.xlu1 }
 0x404   : > { %7618 = vmatprep.subr.bf16.mxu1 %v7617_v10 }
 0x405   : > { %7620 = vmatpush3.bf16.msra.mxu1 %v7617_v10 }
 0x406   : > { %7627 = vmatprep.subr.bf16.mxu1 %v10731_v14 }
 0x407   : > { %v2222_v3 = vpop.trf.xlu1 }
 0x408   : > { %7010 = vmatmul.mubr.msk.f32.vlgmr.msra.gmra.mrb[36].mxu1 %vm1823_vm6, %v9352_v56 }
 0x409   : > { %7012 = vmatprep.mubr.msk.f32.mxu1 %vm1823_vm6, %v9357_v40 }
 0x40b   : > { %v2223_v25 = vpop.trf.xlu1 }
 0x40c   : > { %7013 = vmatmul.mubr.msk.f32.gmra.mrb[38].mxu1 %vm1823_vm6, %v9367_v63 }
 0x40d   : > { %7058 = vmatprep.mubr.msk.f32.mxu1 %vm8018_vm0, %v10732_v16 }
 0x40f   : > { %v2224_v57 = vpop.trf.xlu1 }
 0x413   : > { %v2225_v41 = vpop.trf.xlu1 }
 0x417   : > { %v2226_v50 = vpop.trf.xlu1 }
 0x4db   : > { %v7011_v42 = vpop.f32.mrb[36].mxu1 }
 0x4dc   : > { %v2033_v30 = vadd.f32 %v7011_v42, %v1939_v46  ;;  %v2027_v13 = vpop.f32.mrb[37].mxu1 }
 0x4dd   : > { %v2028_v48 = vadd.f32 %v2027_v13, %v1935_v23  ;;  %v2227_v23 = vpop.trf.xlu1 }
 0x4de   : > { %7985 = vtanh.f32 %v2033_v30 }
 0x4df   : > { %7987 = vtanh.f32 %v2028_v48  ;;  %v7014_v34 = vpop.f32.mrb[38].mxu1 }
 0x4e0   : > { %v2043_v10 = vadd.f32 %v7014_v34, %v1947_v53  ;;  %v2037_v16 = vpop.f32.mrb[39].mxu1 }
 0x4e1   : > { %v2038_v51 = vadd.f32 %v2037_v16, %v1943_v33  ;;  %v2228_v33 = vpop.trf.xlu1 }
 0x4e2   : > { %7989 = vtanh.f32 %v2043_v10 }
 0x4e3   : > { %7991 = vtanh.f32 %v2038_v51  ;;  %v9389_v51 = vld [vmem:[%s10463_s1 + $0x6d0] sm:$0xff] }
 0x4e5   : > { %v2229_v13 = vpop.trf.xlu1 }
 0x4e8   : > { %v9373_v22 = vpop.eup %7985 }
 0x4e9   : > { %v9375_v36 = vpop.eup %7987  ;;  %v2230_v48 = vpop.trf.xlu1 }
 0x4ea   : > { %v7622_v46 = vpack.c.bf16 %v9373_v22, %v9375_v36 }
 0x4ec   : > { %v9379_v42 = vpop.eup %7989  ;;  %7623 = vmatpush3.bf16.msra.mxu0 %v7622_v46 }
 0x4ed   : > { %v9381_v30 = vpop.eup %7991  ;;  %7624 = vmatprep.subr.bf16.mxu0 %v10731_v14  ;;  %v2231_v34 = vpop.trf.xlu1 }
 0x4ee   : > { %v7625_v16 = vpack.c.bf16 %v9379_v42, %v9381_v30 }
 0x4f0   : > { %7626 = vmatpush3.bf16.msra.mxu0 %v7625_v16 }
 0x4f1   : > { %7061 = vmatprep.subr.msk.mxu0 %vm2283_vm7, %v9389_v51 }
 0x4f3   : > { %7024 = vmatmul.mubr.msk.f32.vlgmr.msra.gmra.mrb[38].mxu0 %vm1823_vm6, %v9389_v51 }
 0x4f4   : > { %7062 = vmatpush3.msk.msra.mxu0 %vm2283_vm7, %v9389_v51  ;;  %7063 = vmatprep.mubr.msk.f32.mxu0 %vm2234_vm8, %v2218_v9  ;;  %v2232_v9 = vpop.trf.xlu1 }
 0x4f7   : > { %7064 = vmatmul.mubr.msk.f32.vlgmr.msra.gmra.mrb[40].mxu0 %vm2234_vm8, %v2219_v28 }
 0x4f8   : > { %7066 = vmatprep.mubr.msk.f32.mxu0 %vm2234_vm8, %v2220_v54  ;;  %v2233_v28 = vpop.trf.xlu1 }
 0x4fb   : > { %7067 = vmatmul.mubr.msk.f32.gmra.mrb[42].mxu0 %vm2234_vm8, %v2221_v5 }
 0x4fc   : > { %7069 = vmatprep.mubr.msk.f32.mxu0 %vm2234_vm8, %v2222_v3 }
 0x4ff   : > { %7070 = vmatmul.mubr.msk.f32.gmra.mrb[44].mxu0 %vm2234_vm8, %v2223_v25 }
 0x500   : > { %7072 = vmatprep.mubr.msk.f32.mxu0 %vm2234_vm8, %v2224_v57 }
 0x503   : > { %7073 = vmatmul.mubr.msk.f32.gmra.mrb[46].mxu0 %vm2234_vm8, %v2225_v41 }
 0x504   : > { %7075 = vmatprep.mubr.msk.f32.mxu0 %vm2234_vm8, %v2226_v50 }
 0x507   : > { %7076 = vmatmul.mubr.msk.f32.gmra.mrb[48].mxu0 %vm2234_vm8, %v2227_v23 }
 0x508   : > { %7078 = vmatprep.mubr.msk.f32.mxu0 %vm2234_vm8, %v2228_v33 }
 0x50b   : > { %7079 = vmatmul.mubr.msk.f32.gmra.mrb[50].mxu0 %vm2234_vm8, %v2229_v13 }
 0x50c   : > { %7081 = vmatprep.mubr.msk.f32.mxu0 %vm2234_vm8, %v2230_v48 }
 0x50f   : > { %7082 = vmatmul.mubr.msk.f32.gmra.mrb[52].mxu0 %vm2234_vm8, %v2231_v34 }
 0x510   : > { %7084 = vmatprep.mubr.msk.f32.mxu0 %vm2234_vm8, %v2232_v9 }
 0x513   : > { %7085 = vmatmul.mubr.msk.f32.gmra.mrb[54].mxu0 %vm2234_vm8, %v2233_v28 }
 0x5c6   : > { %v9413_v41 = vpop.f32.mrb[38].mxu0 }
 0x5c7   : > { %v7025_v50 = vpop.f32.mrb[39].mxu0 }
 0x5c8   : > { %v7651_v50 = vpack.c.bf16 %v9352_v56, %v9316_v39 }
 0x5ca   : > { %v7065_v54 = vpop.f32.mrb[40].mxu0  ;;  %7652 = vmatprep.subr.bf16.mxu0 %v7651_v50 }
 0x5cb   : > { %v2352_v5 = vpop.f32.mrb[41].mxu0  ;;  %7654 = vmatpush3.bf16.msra.mxu0 %v7651_v50  ;;  %v381_v50 = vld [vmem:[%s10463_s1 + $0x640] sm:$0xff] }
 0x5cc   : > { %2431 = vxpose.xlu0.b32.start [1/16] (narrow) %v2352_v5, 32  ;;  %v2050_v5 = vsub.f32 1.0, %v9375_v36 }
 0x5ce   : > { %v7068_v3 = vpop.f32.mrb[42].mxu0 }
 0x5cf   : > { %v2362_v25 = vpop.f32.mrb[43].mxu0 }
 0x5d0   : > { %2432 = vxpose.xlu0.b32.cont [2/16] (narrow) %v7065_v54, 32  ;;  %v7655_v54 = vpack.c.bf16 %v9367_v63, %v9357_v40  ;;  %v2052_v40 = vsub.f32 1.0, %v9381_v30 }
 0x5d2   : > { %v7071_v57 = vpop.f32.mrb[44].mxu0  ;;  %7656 = vmatprep.subr.bf16.mxu0 %v7655_v54 }
 0x5d3   : > { %v2372_v53 = vpop.f32.mrb[45].mxu0  ;;  %7658 = vmatpush3.bf16.msra.mxu0 %v7655_v54 }
 0x5d4   : > { %2433 = vxpose.xlu0.b32.cont [3/16] (narrow) %v2362_v25, 32  ;;  %7668 = vmatprep.subr.bf16.mxu0 %v8315_v37 }
 0x5d6   : > { %v7074_v10 = vpop.f32.mrb[46].mxu0 }
 0x5d7   : > { %v2382_v46 = vpop.f32.mrb[47].mxu0 }
 0x5d8   : > { %2434 = vxpose.xlu0.b32.cont [4/16] (narrow) %v7068_v3, 32 }
 0x5da   : > { %v7077_v23 = vpop.f32.mrb[48].mxu0 }
 0x5db   : > { %v2392_v16 = vpop.f32.mrb[49].mxu0 }
 0x5dc   : > { %2435 = vxpose.xlu0.b32.cont [5/16] (narrow) %v2372_v53, 32  ;;  %v2051_v53 = vsub.f32 1.0, %v9373_v22 }
 0x5de   : > { %v7080_v33 = vpop.f32.mrb[50].mxu0 }
 0x5df   : > { %v2402_v13 = vpop.f32.mrb[51].mxu0 }
 0x5e0   : > { %2436 = vxpose.xlu0.b32.cont [6/16] (narrow) %v7071_v57, 32 }
 0x5e2   : > { %v7083_v48 = vpop.f32.mrb[52].mxu0 }
 0x5e3   : > { %v2412_v34 = vpop.f32.mrb[53].mxu0 }
 0x5e4   : > { %2437 = vxpose.xlu0.b32.cont [7/16] (narrow) %v2382_v46, 32 }
 0x5e6   : > { %v7086_v9 = vpop.f32.mrb[54].mxu0 }
 0x5e7   : > { %v2422_v28 = vpop.f32.mrb[55].mxu0 }
 0x5e8   : > { %2438 = vxpose.xlu0.b32.cont [8/16] (narrow) %v7074_v10, 32 }
 0x5ec   : > { %2439 = vxpose.xlu0.b32.cont [9/16] (narrow) %v2392_v16, 32 }
 0x5f0   : > { %2440 = vxpose.xlu0.b32.cont [10/16] (narrow) %v7077_v23, 32 }
 0x5f4   : > { %2441 = vxpose.xlu0.b32.cont [11/16] (narrow) %v2402_v13, 32 }
 0x5f8   : > { %2442 = vxpose.xlu0.b32.cont [12/16] (narrow) %v7080_v33, 32  ;;  %v2053_v33 = vsub.f32 1.0, %v9379_v42 }
 0x5fc   : > { %2443 = vxpose.xlu0.b32.cont [13/16] (narrow) %v2412_v34, 32 }
 0x600   : > { %2444 = vxpose.xlu0.b32.cont [14/16] (narrow) %v7083_v48, 32 }
 0x604   : > { %2445 = vxpose.xlu0.b32.cont [15/16] (narrow) %v2422_v28, 32  ;;  %v379_v28 = vld [vmem:[%s10463_s1 + $0x630] sm:$0xff] }
 0x608   : > { %2446 = vxpose.xlu0.b32.end [16/16] (narrow) %v7086_v9, 32 }
 0x64c   : > { %v2447_v3 = vpop.trf.xlu0 }
 0x64d   : > { %v2463_v25 = vmul.f32 %v2447_v3, %v2050_v5  ;;  %v383_v3 = vld [vmem:[%s10463_s1 + $0x650] sm:$0xff] }
 0x64f   : > { %v2467_v57 = vmul.f32 %v9375_v36, %v2463_v25 }
 0x650   : > { %v2448_v10 = vpop.trf.xlu0 }
 0x651   : > { %v2471_v46 = vadd.f32 %v2467_v57, %v2463_v25  ;;  %v2464_v39 = vmul.f32 %v2448_v10, %v2051_v53  ;;  %v384_v25 = vld [vmem:[%s10463_s1 + $0x658] sm:$0xff]  ;;  %v385_v53 = vld [vmem:[%s10463_s1 + $0x660] sm:$0xff]  ;;  %v386_v10 = vld [vmem:[%s10463_s1 + $0x668] sm:$0xff] }
 0x652   : > { %v7634_v57 = vpack.c.bf16 %v384_v25, %v383_v3  ;;  %v10738_v25 = vld [vmem:[#allocation53_spill] sm:$0xff] }
 0x653   : > { %v2468_v56 = vmul.f32 %v9373_v22, %v2464_v39  ;;  %2475 = vxpose.xlu1.b32.start [1/4] (short) %v2471_v46, 128  ;;  %v10734_v22 = vmov 0   ;;  %v7637_v46 = vpack.c.bf16 %v386_v10, %v385_v53 }
 0x654   : > { %v2449_v63 = vpop.trf.xlu0 }
 0x655   : > { %v2472_v23 = vadd.f32 %v2468_v56, %v2464_v39  ;;  %v2465_v16 = vmul.f32 %v2449_v63, %v2052_v40  ;;  %v387_v39 = vld [vmem:[%s10463_s1 + $0x670] sm:$0xff]  ;;  %v388_v56 = vld [vmem:[%s10463_s1 + $0x678] sm:$0xff]  ;;  %v389_v63 = vld [vmem:[%s10463_s1 + $0x680] sm:$0xff] }
 0x656   : > { %v7640_v40 = vpack.c.bf16 %v388_v56, %v387_v39 }
 0x657   : > { %v2469_v37 = vmul.f32 %v9381_v30, %v2465_v16  ;;  %2476 = vxpose.xlu1.b32.cont [2/4] (short) %v2472_v23, 128  ;;  %v380_v30 = vld [vmem:[%s10463_s1 + $0x638] sm:$0xff]  ;;  %v390_v23 = vld [vmem:[%s10463_s1 + $0x688] sm:$0xff] }
 0x658   : > { %v2450_v13 = vpop.trf.xlu0  ;;  %v7628_v54 = vpack.c.bf16 %v380_v30, %v379_v28 }
 0x659   : > { %v2473_v36 = vadd.f32 %v2469_v37, %v2465_v16  ;;  %v2466_v48 = vmul.f32 %v2450_v13, %v2053_v33  ;;  %v7643_v16 = vpack.c.bf16 %v390_v23, %v389_v63  ;;  %v391_v37 = vld [vmem:[%s10463_s1 + $0x690] sm:$0xff]  ;;  %v392_v33 = vld [vmem:[%s10463_s1 + $0x698] sm:$0xff] }
 0x65a   : > { %7629 = vmatpush3.bf16.msra.mxu1 %v7628_v54  ;;  %v7646_v13 = vpack.c.bf16 %v392_v33, %v391_v37 }
 0x65b   : > { %v2470_v34 = vmul.f32 %v9379_v42, %v2466_v48  ;;  %2477 = vxpose.xlu1.b32.cont [3/4] (short) %v2473_v36, 128  ;;  %v382_v42 = vld [vmem:[%s10463_s1 + $0x648] sm:$0xff]  ;;  %7630 = vmatprep.subr.bf16.mxu1 %v10731_v14  ;;  %v393_v36 = vld [vmem:[%s10463_s1 + $0x6a0] sm:$0xff] }
 0x65c   : > { %v7631_v5 = vpack.c.bf16 %v382_v42, %v381_v50 }
 0x65d   : > { %v2474_v9 = vadd.f32 %v2470_v34, %v2466_v48  ;;  %v394_v48 = vld [vmem:[%s10463_s1 + $0x6a8] sm:$0xff] }
 0x65e   : > { %7632 = vmatpush3.bf16.msra.mxu1 %v7631_v5  ;;  %v7649_v34 = vpack.c.bf16 %v394_v48, %v393_v36  ;;  %v10736_v5 = vld [vmem:[#allocation49_spill] sm:$0xff] }
 0x65f   : > { %2478 = vxpose.xlu1.b32.end [4/4] (short) %v2474_v9, 128  ;;  %7633 = vmatprep.subr.bf16.mxu1 %v10731_v14 }
 0x662   : > { %7635 = vmatpush3.bf16.msra.mxu1 %v7634_v57 }
 0x663   : > { %7636 = vmatprep.subr.bf16.mxu1 %v10731_v14 }
 0x666   : > { %7638 = vmatpush3.bf16.msra.mxu1 %v7637_v46 }
 0x667   : > { %7639 = vmatprep.subr.bf16.mxu1 %v10731_v14 }
 0x66a   : > { %7641 = vmatpush3.bf16.msra.mxu1 %v7640_v40 }
 0x66b   : > { %7642 = vmatprep.subr.bf16.mxu1 %v10731_v14 }
 0x66e   : > { %7644 = vmatpush3.bf16.msra.mxu1 %v7643_v16  ;;  %v7659_v16 = vpack.c.bf16 %v9292_v4, %v9261_v45 }
 0x66f   : > { %7645 = vmatprep.subr.bf16.mxu1 %v10731_v14 }
 0x672   : > { %7647 = vmatpush3.bf16.msra.mxu1 %v7646_v13 }
 0x673   : > { %7648 = vmatprep.subr.bf16.mxu1 %v10731_v14 }
 0x676   : > { %7650 = vmatpush3.bf16.msra.mxu1 %v7649_v34 }
 0x677   : > { %7660 = vmatprep.subr.bf16.mxu1 %v7659_v16 }
 0x67d   : > { %7939 = vset.pattern.permute.xlu1 %v10734_v22 }
 0x6ad   : > { %2056 = vperm.xlu1 %7939, %v9389_v51  }
 0x6d3   : > { %v2491_v9 = vpop.trf.xlu1 }
 0x6d4   : > { %7095 = vmatprep.mubr.msk.f32.mxu0 %vm1823_vm6, %v2491_v9 }
 0x6d7   : > { %v2492_v28 = vpop.trf.xlu1 }
 0x6d8   : > { %7096 = vmatmul.mubr.msk.f32.vlgmr.msra.gmra.mrb[56].mxu0 %vm1823_vm6, %v2492_v28 }
 0x6d9   : > { %7670 = vmatpush3.bf16.xpose.msra.mxu0 %v8348_v12 }
 0x6da   : > { %7672 = vmatprep.subr.bf16.mxu0 %v8354_v19 }
 0x6db   : > { %v2493_v51 = vpop.trf.xlu1 }
 0x6dc   : > { %7098 = vmatprep.mubr.msk.f32.mxu0 %vm1823_vm6, %v2493_v51 }
 0x6df   : > { %v2494_v30 = vpop.trf.xlu1 }
 0x6e0   : > { %7099 = vmatmul.mubr.msk.f32.gmra.mrb[58].mxu0 %vm1823_vm6, %v2494_v30  ;;  %v1925_v30 = vsub.f32 1.0, %v9333_v62 }
 0x6e1   : > { %7674 = vmatpush3.bf16.xpose.msra.mxu0 %v8375_v32 }
 0x6e2   : > { %7676 = vmatprep.subr.bf16.mxu0 %v8386_v27 }
 0x6e3   : > { %v2495_v50 = vpop.trf.xlu1 }
 0x6e4   : > { %7101 = vmatprep.mubr.msk.f32.mxu0 %vm1823_vm6, %v2495_v50 }
 0x6e7   : > { %v2496_v54 = vpop.trf.xlu1 }
 0x6e8   : > { %7102 = vmatmul.mubr.msk.f32.gmra.mrb[60].mxu0 %vm1823_vm6, %v2496_v54 }
 0x6e9   : > { %7678 = vmatpush3.bf16.xpose.msra.mxu0 %v8407_v2 }
 0x6ea   : > { %7680 = vmatprep.subr.bf16.mxu0 %v8412_v60 }
 0x6eb   : > { %v2497_v12 = vpop.trf.xlu1 }
 0x6ec   : > { %7104 = vmatprep.mubr.msk.f32.mxu0 %vm1823_vm6, %v2497_v12 }
 0x6ef   : > { %v2498_v19 = vpop.trf.xlu1 }
 0x6f0   : > { %7105 = vmatmul.mubr.msk.f32.gmra.mrb[62].mxu0 %vm1823_vm6, %v2498_v19  ;;  %v1926_v19 = vsub.f32 1.0, %v9331_v29 }
 0x6f1   : > { %7682 = vmatpush3.bf16.xpose.msra.mxu0 %v8436_v26  ;;  %v10735_v26 = vld [vmem:[#allocation47_spill] sm:$0xff] }
 0x6f2   : > { %7684 = vmatprep.subr.bf16.mxu0 %v8474_v58 }
 0x6f3   : > { %v2499_v27 = vpop.trf.xlu1 }
 0x6f4   : > { %7107 = vmatprep.mubr.msk.f32.mxu0 %vm1823_vm6, %v2499_v27 }
 0x6f7   : > { %v2500_v32 = vpop.trf.xlu1 }
 0x6f8   : > { %7108 = vmatmul.mubr.msk.f32.gmra.mrb[64].mxu0 %vm1823_vm6, %v2500_v32 }
 0x6f9   : > { %7686 = vmatpush3.bf16.xpose.msra.mxu0 %v8492_v38  ;;  %v10737_v38 = vld [vmem:[#allocation51_spill] sm:$0xff] }
 0x6fa   : > { %7688 = vmatprep.subr.bf16.mxu0 %v8505_v52 }
 0x6fb   : > { %v2501_v2 = vpop.trf.xlu1 }
 0x6fc   : > { %7110 = vmatprep.mubr.msk.f32.mxu0 %vm1823_vm6, %v2501_v2 }
 0x6ff   : > { %v2502_v60 = vpop.trf.xlu1 }
 0x700   : > { %7111 = vmatmul.mubr.msk.f32.gmra.mrb[66].mxu0 %vm1823_vm6, %v2502_v60 }
 0x701   : > { %7690 = vmatpush3.bf16.xpose.msra.mxu0 %v8530_v7  ;;  %v10739_v7 = vld [vmem:[#allocation56_spill] sm:$0xff] }
 0x702   : > { %7692 = vmatprep.subr.bf16.mxu0 %v10735_v26  ;;  %v1927_v26 = vsub.f32 1.0, %v9345_v43 }
 0x703   : > { %v2503_v58 = vpop.trf.xlu1 }
 0x704   : > { %7113 = vmatprep.mubr.msk.f32.mxu0 %vm1823_vm6, %v2503_v58  ;;  %v7663_v58 = vpack.c.bf16 %v9307_v11, %v9297_v55 }
 0x707   : > { %v2504_v42 = vpop.trf.xlu1 }
 0x708   : > { %7114 = vmatmul.mubr.msk.f32.gmra.mrb[68].mxu0 %vm1823_vm6, %v2504_v42 }
 0x709   : > { %7694 = vmatpush3.bf16.xpose.msra.mxu0 %v10736_v5 }
 0x70a   : > { %7696 = vmatprep.subr.bf16.mxu0 %v10737_v38 }
 0x70b   : > { %v2505_v52 = vpop.trf.xlu1 }
 0x70c   : > { %7116 = vmatprep.mubr.msk.f32.mxu0 %vm1823_vm6, %v2505_v52  ;;  %v1928_v52 = vsub.f32 1.0, %v9343_v44 }
 0x70f   : > { %v2506_v3 = vpop.trf.xlu1 }
 0x710   : > { %7117 = vmatmul.mubr.msk.f32.gmra.mrb[70].mxu0 %vm1823_vm6, %v2506_v3  ;;  %v10740_v3 = vld [vmem:[#allocation39_spill] sm:$0xff] }
 0x711   : > { %7698 = vmatpush3.bf16.xpose.msra.mxu0 %v10738_v25 }
 0x712   : > { %7732 = vmatprep.subr.bf16.mxu0 %v10739_v7 }
 0x72c   : > { %v2057_v57 = vpop.permute.xlu1 %2056 }
 0x72d   : > { %v2058_v53 = vrot.slane %v2057_v57, 1 }
 0x72f   : > { %v2129_v10 = vadd.f32 %v9413_v41, %v2058_v53 }
 0x731   : > { %7059 = vmatmul.mubr.f32.vlgmr.msra.gmra.mrb[40].mxu1 %v2129_v10  ;;  %v10742_v10 = vld [vmem:[#allocation41_spill] sm:$0xff] }
 0x732   : > { %7662 = vmatpush3.bf16.msra.mxu1 %v7659_v16  ;;  %v10746_v16 = vld [vmem:[#allocation45_spill] sm:$0xff] }
 0x733   : > { %7664 = vmatprep.subr.bf16.mxu1 %v7663_v58 }
 0x736   : > { %7666 = vmatpush3.bf16.msra.mxu1 %v7663_v58 }
 0x737   : > { %7700 = vmatprep.subr.bf16.mxu1 %v10740_v3 }
 0x7ab   : > { %v7097_v46 = vpop.f32.mrb[56].mxu0 }
 0x7ac   : > { %v2621_v39 = vpop.f32.mrb[57].mxu0 }
 0x7ad   : > { %2700 = vxpose.xlu0.b32.start [1/16] (narrow) %v2621_v39, 32 }
 0x7b1   : > { %2701 = vxpose.xlu0.b32.cont [2/16] (narrow) %v7097_v46, 32 }
 0x7b3   : > { %v7100_v56 = vpop.f32.mrb[58].mxu0 }
 0x7b4   : > { %v2631_v40 = vpop.f32.mrb[59].mxu0 }
 0x7b5   : > { %2702 = vxpose.xlu0.b32.cont [3/16] (narrow) %v2631_v40, 32 }
 0x7b9   : > { %2703 = vxpose.xlu0.b32.cont [4/16] (narrow) %v7100_v56, 32  ;;  %v10744_v56 = vld [vmem:[#allocation43_spill] sm:$0xff] }
 0x7bb   : > { %v7103_v63 = vpop.f32.mrb[60].mxu0 }
 0x7bc   : > { %v2641_v23 = vpop.f32.mrb[61].mxu0 }
 0x7bd   : > { %2704 = vxpose.xlu0.b32.cont [5/16] (narrow) %v2641_v23, 32  ;;  %v10745_v23 = vld [vmem:[#allocation44_spill] sm:$0xff] }
 0x7c1   : > { %2705 = vxpose.xlu0.b32.cont [6/16] (narrow) %v7103_v63, 32 }
 0x7c3   : > { %v7106_v37 = vpop.f32.mrb[62].mxu0 }
 0x7c4   : > { %v2651_v41 = vpop.f32.mrb[63].mxu0 }
 0x7c5   : > { %2706 = vxpose.xlu0.b32.cont [7/16] (narrow) %v2651_v41, 32 }
 0x7c9   : > { %2707 = vxpose.xlu0.b32.cont [8/16] (narrow) %v7106_v37, 32 }
 0x7cb   : > { %v7109_v33 = vpop.f32.mrb[64].mxu0 }
 0x7cc   : > { %v2661_v13 = vpop.f32.mrb[65].mxu0 }
 0x7cd   : > { %2708 = vxpose.xlu0.b32.cont [9/16] (narrow) %v2661_v13, 32  ;;  %v10748_v13 = vld [vmem:[#allocation48_spill] sm:$0xff] }
 0x7d1   : > { %2709 = vxpose.xlu0.b32.cont [10/16] (narrow) %v7109_v33, 32  ;;  %v10747_v33 = vld [vmem:[#allocation46_spill] sm:$0xff] }
 0x7d3   : > { %v7112_v36 = vpop.f32.mrb[66].mxu0 }
 0x7d4   : > { %v2671_v48 = vpop.f32.mrb[67].mxu0 }
 0x7d5   : > { %2710 = vxpose.xlu0.b32.cont [11/16] (narrow) %v2671_v48, 32 }
 0x7d9   : > { %2711 = vxpose.xlu0.b32.cont [12/16] (narrow) %v7112_v36, 32 }
 0x7db   : > { %v7115_v34 = vpop.f32.mrb[68].mxu0 }
 0x7dc   : > { %v2681_v9 = vpop.f32.mrb[69].mxu0 }
 0x7dd   : > { %2712 = vxpose.xlu0.b32.cont [13/16] (narrow) %v2681_v9, 32  ;;  %v10750_v9 = vld [vmem:[#allocation52_spill] sm:$0xff] }
 0x7e1   : > { %2713 = vxpose.xlu0.b32.cont [14/16] (narrow) %v7115_v34, 32  ;;  %v10749_v34 = vld [vmem:[#allocation50_spill] sm:$0xff] }
 0x7e3   : > { %v7118_v45 = vpop.f32.mrb[70].mxu0 }
 0x7e4   : > { %v2691_v4 = vpop.f32.mrb[71].mxu0 }
 0x7e5   : > { %2714 = vxpose.xlu0.b32.cont [15/16] (narrow) %v2691_v4, 32 }
 0x7e9   : > { %2715 = vxpose.xlu0.b32.end [16/16] (narrow) %v7118_v45, 32 }
 0x804   : > { %v2198_v28 = vpop.f32.mrb[40].mxu1 }
 0x805   : > { %5887 = vst [vmem:[%s177_s20] sm:$0x1] %v2198_v28  ;;  %v7060_v51 = vpop.f32.mrb[41].mxu1  ;;  %v10751_v28 = vld [vmem:[#allocation54_spill] sm:$0xff] }
 0x806   : > { %v10752_v51 = vld [vmem:[#allocation55_spill] sm:$0xff] }
 0x82d   : > { %v2716_v50 = vpop.trf.xlu0 }
 0x82e   : > { %v2732_v54 = vmul.f32 %v2716_v50, %v1925_v30 }
 0x830   : > { %v2736_v12 = vmul.f32 %v9333_v62, %v2732_v54 }
 0x831   : > { %v2717_v27 = vpop.trf.xlu0 }
 0x832   : > { %v2740_v32 = vadd.f32 %v2736_v12, %v2732_v54  ;;  %v2733_v2 = vmul.f32 %v2717_v27, %v1926_v19  ;;  %v10753_v54 = vld [vmem:[#allocation57_spill] sm:$0xff]  ;;  %v10754_v12 = vld [vmem:[#allocation58_spill] sm:$0xff] }
 0x834   : > { %v2737_v60 = vmul.f32 %v9331_v29, %v2733_v2  ;;  %2744 = vxpose.xlu0.b32.start [1/4] (short) %v2740_v32, 128  ;;  %v10755_v32 = vld [vmem:[#allocation59_spill] sm:$0xff] }
 0x835   : > { %v2718_v42 = vpop.trf.xlu0 }
 0x836   : > { %v2741_v5 = vadd.f32 %v2737_v60, %v2733_v2  ;;  %v2734_v38 = vmul.f32 %v2718_v42, %v1927_v26  ;;  %v10756_v2 = vld [vmem:[#allocation60_spill] sm:$0xff] }
 0x838   : > { %v2738_v62 = vmul.f32 %v9345_v43, %v2734_v38  ;;  %2745 = vxpose.xlu0.b32.cont [2/4] (short) %v2741_v5, 128  ;;  %v10741_v43 = vld [vmem:[#allocation40_spill] sm:$0xff] }
 0x839   : > { %v2719_v25 = vpop.trf.xlu0 }
 0x83a   : > { %v2742_v29 = vadd.f32 %v2738_v62, %v2734_v38  ;;  %v2735_v7 = vmul.f32 %v2719_v25, %v1928_v52 }
 0x83c   : > { %v2739_v57 = vmul.f32 %v9343_v44, %v2735_v7  ;;  %2746 = vxpose.xlu0.b32.cont [3/4] (short) %v2742_v29, 128  ;;  %v10743_v44 = vld [vmem:[#allocation42_spill] sm:$0xff] }
 0x83e   : > { %v2743_v53 = vadd.f32 %v2739_v57, %v2735_v7 }
 0x840   : > { %2747 = vxpose.xlu0.b32.end [4/4] (short) %v2743_v53, 128 }
 0x8b4   : > { %v2760_v55 = vpop.trf.xlu0 }
 0x8b5   : > { %7127 = vmatprep.mubr.msk.f32.mxu1 %vm1823_vm6, %v2760_v55 }
 0x8b8   : > { %v2761_v11 = vpop.trf.xlu0 }
 0x8b9   : > { %7128 = vmatmul.mubr.msk.f32.vlgmr.msra.gmra.mrb[42].mxu1 %vm1823_vm6, %v2761_v11 }
 0x8ba   : > { %7702 = vmatpush3.bf16.xpose.msra.mxu1 %v10741_v43 }
 0x8bb   : > { %7704 = vmatprep.subr.bf16.mxu1 %v10742_v10  ;;  %v10757_v10 = vld [vmem:[#allocation71_spill] sm:$0xff] }
 0x8bc   : > { %v2762_v46 = vpop.trf.xlu0 }
 0x8bd   : > { %7130 = vmatprep.mubr.msk.f32.mxu1 %vm1823_vm6, %v2762_v46 }
 0x8c0   : > { %v2763_v39 = vpop.trf.xlu0 }
 0x8c1   : > { %7131 = vmatmul.mubr.msk.f32.gmra.mrb[44].mxu1 %vm1823_vm6, %v2763_v39  ;;  %v10758_v39 = vld [vmem:[#allocation72_spill] sm:$0xff] }
 0x8c2   : > { %7706 = vmatpush3.bf16.xpose.msra.mxu1 %v10743_v44 }
 0x8c3   : > { %7708 = vmatprep.subr.bf16.mxu1 %v10744_v56  ;;  %v10759_v56 = vld [vmem:[#allocation79_spill] sm:$0xff] }
 0x8c4   : > { %v2764_v40 = vpop.trf.xlu0 }
 0x8c5   : > { %7133 = vmatprep.mubr.msk.f32.mxu1 %vm1823_vm6, %v2764_v40 }
 0x8c8   : > { %v2765_v63 = vpop.trf.xlu0 }
 0x8c9   : > { %7134 = vmatmul.mubr.msk.f32.gmra.mrb[46].mxu1 %vm1823_vm6, %v2765_v63  ;;  %v10763_v63 = vld [vmem:[#allocation91_spill] sm:$0xff] }
 0x8ca   : > { %7710 = vmatpush3.bf16.xpose.msra.mxu1 %v10745_v23  ;;  %v10765_v23 = vld [vmem:[#allocation93_spill] sm:$0xff] }
 0x8cb   : > { %7712 = vmatprep.subr.bf16.mxu1 %v10746_v16 }
 0x8cc   : > { %v2766_v37 = vpop.trf.xlu0 }
 0x8cd   : > { %7136 = vmatprep.mubr.msk.f32.mxu1 %vm1823_vm6, %v2766_v37 }
 0x8d0   : > { %v2767_v41 = vpop.trf.xlu0 }
 0x8d1   : > { %7137 = vmatmul.mubr.msk.f32.gmra.mrb[48].mxu1 %vm1823_vm6, %v2767_v41 }
 0x8d2   : > { %7714 = vmatpush3.bf16.xpose.msra.mxu1 %v10747_v33  ;;  %v9626_v33 = vld [vmem:[%s10463_s1 + $0x410] sm:$0xff] }
 0x8d3   : > { %7716 = vmatprep.subr.bf16.mxu1 %v10748_v13 }
 0x8d4   : > { %v2768_v36 = vpop.trf.xlu0 }
 0x8d5   : > { %7139 = vmatprep.mubr.msk.f32.mxu1 %vm1823_vm6, %v2768_v36 }
 0x8d8   : > { %v2769_v48 = vpop.trf.xlu0 }
 0x8d9   : > { %7140 = vmatmul.mubr.msk.f32.gmra.mrb[50].mxu1 %vm1823_vm6, %v2769_v48 }
 0x8da   : > { %7718 = vmatpush3.bf16.xpose.msra.mxu1 %v10749_v34 }
 0x8db   : > { %7720 = vmatprep.subr.bf16.mxu1 %v10750_v9 }
 0x8dc   : > { %v2770_v45 = vpop.trf.xlu0 }
 0x8dd   : > { %7142 = vmatprep.mubr.msk.f32.mxu1 %vm1823_vm6, %v2770_v45 }
 0x8e0   : > { %v2771_v4 = vpop.trf.xlu0 }
 0x8e1   : > { %7143 = vmatmul.mubr.msk.f32.gmra.mrb[52].mxu1 %vm1823_vm6, %v2771_v4  ;;  %v9643_v4 = vld [vmem:[%s10463_s1 + $0x418] sm:$0xff] }
 0x8e2   : > { %7722 = vmatpush3.bf16.xpose.msra.mxu1 %v10751_v28 }
 0x8e3   : > { %7724 = vmatprep.subr.bf16.mxu1 %v10752_v51 }
 0x8e4   : > { %v2772_v30 = vpop.trf.xlu0 }
 0x8e5   : > { %7145 = vmatprep.mubr.msk.f32.mxu1 %vm1823_vm6, %v2772_v30 }
 0x8e8   : > { %v2773_v50 = vpop.trf.xlu0 }
 0x8e9   : > { %7146 = vmatmul.mubr.msk.f32.gmra.mrb[54].mxu1 %vm1823_vm6, %v2773_v50 }
 0x8ea   : > { %7726 = vmatpush3.bf16.xpose.msra.mxu1 %v10753_v54 }
 0x8eb   : > { %7728 = vmatprep.subr.bf16.mxu1 %v10754_v12 }
 0x8ec   : > { %v2774_v19 = vpop.trf.xlu0 }
 0x8ed   : > { %7148 = vmatprep.mubr.msk.f32.mxu1 %vm1823_vm6, %v2774_v19  ;;  %v10771_v19 = vld [vmem:[#allocation64_spill] sm:$0xff] }
 0x8f0   : > { %v2775_v27 = vpop.trf.xlu0 }
 0x8f1   : > { %7149 = vmatmul.mubr.msk.f32.gmra.mrb[56].mxu1 %vm1823_vm6, %v2775_v27 }
 0x8f2   : > { %7730 = vmatpush3.bf16.xpose.msra.mxu1 %v10755_v32  ;;  %v10772_v32 = vld [vmem:[#allocation73_spill] sm:$0xff] }
 0x8f3   : > { %7764 = vmatprep.subr.bf16.mxu1 %v10756_v2 }
 0x98c   : > { %v7129_v60 = vpop.f32.mrb[42].mxu1 }
 0x98d   : > { %v2890_v26 = vpop.f32.mrb[43].mxu1 }
 0x98e   : > { %2969 = vxpose.xlu0.b32.start [1/16] (narrow) %v2890_v26, 32 }
 0x992   : > { %2970 = vxpose.xlu0.b32.cont [2/16] (narrow) %v7129_v60, 32  ;;  %v10773_v60 = vld [vmem:[#allocation69_spill] sm:$0xff] }
 0x994   : > { %v7132_v58 = vpop.f32.mrb[44].mxu1 }
 0x995   : > { %v2900_v42 = vpop.f32.mrb[45].mxu1 }
 0x996   : > { %2971 = vxpose.xlu0.b32.cont [3/16] (narrow) %v2900_v42, 32 }
 0x99a   : > { %2972 = vxpose.xlu0.b32.cont [4/16] (narrow) %v7132_v58, 32  ;;  %v10774_v58 = vld [vmem:[#allocation80_spill] sm:$0xff] }
 0x99c   : > { %v7135_v5 = vpop.f32.mrb[46].mxu1 }
 0x99d   : > { %v2910_v38 = vpop.f32.mrb[47].mxu1 }
 0x99e   : > { %2973 = vxpose.xlu0.b32.cont [5/16] (narrow) %v2910_v38, 32 }
 0x9a2   : > { %2974 = vxpose.xlu0.b32.cont [6/16] (narrow) %v7135_v5, 32  ;;  %v10775_v5 = vld [vmem:[#allocation68_spill] sm:$0xff] }
 0x9a4   : > { %v7138_v62 = vpop.f32.mrb[48].mxu1 }
 0x9a5   : > { %v2920_v52 = vpop.f32.mrb[49].mxu1 }
 0x9a6   : > { %2975 = vxpose.xlu0.b32.cont [7/16] (narrow) %v2920_v52, 32 }
 0x9aa   : > { %2976 = vxpose.xlu0.b32.cont [8/16] (narrow) %v7138_v62, 32  ;;  %v10776_v62 = vld [vmem:[#allocation81_spill] sm:$0xff] }
 0x9ac   : > { %v7141_v3 = vpop.f32.mrb[50].mxu1 }
 0x9ad   : > { %v2930_v25 = vpop.f32.mrb[51].mxu1 }
 0x9ae   : > { %2977 = vxpose.xlu0.b32.cont [9/16] (narrow) %v2930_v25, 32 }
 0x9b2   : > { %2978 = vxpose.xlu0.b32.cont [10/16] (narrow) %v7141_v3, 32  ;;  %v10777_v3 = vld [vmem:[#allocation66_spill] sm:$0xff] }
 0x9b4   : > { %v7144_v29 = vpop.f32.mrb[52].mxu1 }
 0x9b5   : > { %v2940_v7 = vpop.f32.mrb[53].mxu1 }
 0x9b6   : > { %2979 = vxpose.xlu0.b32.cont [11/16] (narrow) %v2940_v7, 32 }
 0x9ba   : > { %2980 = vxpose.xlu0.b32.cont [12/16] (narrow) %v7144_v29, 32  ;;  %v10778_v29 = vld [vmem:[#allocation78_spill] sm:$0xff] }
 0x9bc   : > { %v7147_v57 = vpop.f32.mrb[54].mxu1 }
 0x9bd   : > { %v2950_v53 = vpop.f32.mrb[55].mxu1 }
 0x9be   : > { %2981 = vxpose.xlu0.b32.cont [13/16] (narrow) %v2950_v53, 32 }
 0x9c2   : > { %2982 = vxpose.xlu0.b32.cont [14/16] (narrow) %v7147_v57, 32 }
 0x9c4   : > { %v7150_v55 = vpop.f32.mrb[56].mxu1 }
 0x9c5   : > { %v2960_v11 = vpop.f32.mrb[57].mxu1 }
 0x9c6   : > { %2983 = vxpose.xlu0.b32.cont [15/16] (narrow) %v2960_v11, 32 }
 0x9ca   : > { %2984 = vxpose.xlu0.b32.end [16/16] (narrow) %v7150_v55, 32 }
 0xa0e   : > { %v2985_v43 = vpop.trf.xlu0 }
 0xa0f   : > { %6554 = vmatprep.mubr.f32.mxu0 %v2985_v43  ;;  %6594 = vmatprep.mubr.f32.mxu1 %v2985_v43 }
 0xa10   : > { %6555 = vmatmul.mubr.f32.vlgmr.msra.gmra.mrb[72].mxu0 %v2985_v43  ;;  %6595 = vmatmul.mubr.f32.vlgmr.msra.gmra.mrb[58].mxu1 %v2985_v43 }
 0xa11   : > { %7734 = vmatpush3.bf16.xpose.msra.mxu0 %v10757_v10  ;;  %7766 = vmatpush3.bf16.xpose.msra.mxu1 %v8868_v8  ;;  %v10760_v8 = vld [vmem:[#allocation82_spill] sm:$0xff] }
 0xa12   : > { %v2986_v46 = vpop.trf.xlu0  ;;  %7736 = vmatprep.subr.bf16.mxu0 %v10758_v39  ;;  %7768 = vmatprep.subr.bf16.mxu1 %v8915_v1  ;;  %v10761_v1 = vld [vmem:[#allocation94_spill] sm:$0xff] }
 0xa13   : > { %6556 = vmatprep.mubr.f32.mxu0 %v2986_v46  ;;  %6596 = vmatprep.mubr.f32.mxu1 %v2986_v46 }
 0xa14   : > { %6557 = vmatmul.mubr.f32.gmra.mrb[74].mxu0 %v2986_v46  ;;  %6597 = vmatmul.mubr.f32.gmra.mrb[60].mxu1 %v2986_v46 }
 0xa16   : > { %v2987_v44 = vpop.trf.xlu0 }
 0xa17   : > { %6558 = vmatprep.mubr.f32.mxu0 %v2987_v44  ;;  %6598 = vmatprep.mubr.f32.mxu1 %v2987_v44 }
 0xa18   : > { %6559 = vmatmul.mubr.f32.gmra.mrb[76].mxu0 %v2987_v44  ;;  %6599 = vmatmul.mubr.f32.gmra.mrb[62].mxu1 %v2987_v44 }
 0xa19   : > { %7738 = vmatpush3.bf16.xpose.msra.mxu0 %v10759_v56  ;;  %7770 = vmatpush3.bf16.xpose.msra.mxu1 %v8919_v61  ;;  %v10762_v61 = vld [vmem:[#allocation87_spill] sm:$0xff] }
 0xa1a   : > { %v2988_v40 = vpop.trf.xlu0  ;;  %7740 = vmatprep.subr.bf16.mxu0 %v10760_v8  ;;  %7772 = vmatprep.subr.bf16.mxu1 %v8966_v47  ;;  %v10764_v47 = vld [vmem:[#allocation92_spill] sm:$0xff] }
 0xa1b   : > { %6560 = vmatprep.mubr.f32.mxu0 %v2988_v40  ;;  %6600 = vmatprep.mubr.f32.mxu1 %v2988_v40 }
 0xa1c   : > { %6561 = vmatmul.mubr.f32.gmra.mrb[78].mxu0 %v2988_v40  ;;  %6601 = vmatmul.mubr.f32.gmra.mrb[64].mxu1 %v2988_v40 }
 0xa1d   : > { %6634 = vmatprep.mubr.f32.mxu0 %v2985_v43  ;;  %6674 = vmatprep.mubr.f32.mxu1 %v2985_v43 }
 0xa21   : > { %7742 = vmatpush3.bf16.xpose.msra.mxu0 %v8866_v20  ;;  %7774 = vmatpush3.bf16.xpose.msra.mxu1 %v8990_v21  ;;  %v10766_v20 = vld [vmem:[#allocation97_spill] sm:$0xff] }
 0xa22   : > { %7744 = vmatprep.subr.bf16.mxu0 %v8870_v59  ;;  %7776 = vmatprep.subr.bf16.mxu1 %v10761_v1  ;;  %v10767_v59 = vld [vmem:[#allocation98_spill] sm:$0xff] }
 0xa29   : > { %7746 = vmatpush3.bf16.xpose.msra.mxu0 %v10762_v61  ;;  %7778 = vmatpush3.bf16.xpose.msra.mxu1 %v9040_v24  ;;  %v8002_v24 = vld [vmem:[%s10463_s1 + $0x498] sm:$0xff]  ;;  %v10779_v61 = vld [vmem:[#allocation74_spill] sm:$0xff] }
 0xa2a   : > { %7748 = vmatprep.subr.bf16.mxu0 %v10763_v63  ;;  %7780 = vmatprep.subr.bf16.mxu1 %v9052_v17  ;;  %v10768_v17 = vld [vmem:[#allocation100_spill] sm:$0xff] }
 0xa31   : > { %7750 = vmatpush3.bf16.xpose.msra.mxu0 %v10764_v47  ;;  %7782 = vmatpush3.bf16.xpose.msra.mxu1 %v9084_v31  ;;  %v10769_v31 = vld [vmem:[#allocation103_spill] sm:$0xff]  ;;  %v10780_v47 = vld [vmem:[#allocation86_spill] sm:$0xff] }
 0xa32   : > { %7752 = vmatprep.subr.bf16.mxu0 %v10765_v23  ;;  %7784 = vmatprep.subr.bf16.mxu1 %v9097_v6  ;;  %v8001_v6 = vld [vmem:[%s10463_s1 + $0x490] sm:$0xff] }
 0xa33   : > { %v9601_v21 = vpack.c.bf16 %v8002_v24, %v8001_v6 }
 0xa39   : > { %7754 = vmatpush3.bf16.xpose.msra.mxu0 %v10766_v20  ;;  %7786 = vmatpush3.bf16.xpose.msra.mxu1 %v9127_v18  ;;  %v8004_v18 = vld [vmem:[%s10463_s1 + $0x4a8] sm:$0xff]  ;;  %v10781_v20 = vld [vmem:[#allocation70_spill] sm:$0xff] }
 0xa3a   : > { %7756 = vmatprep.subr.bf16.mxu0 %v9050_v0  ;;  %7788 = vmatprep.subr.bf16.mxu1 %v9140_v35  ;;  %v10770_v35 = vld [vmem:[#allocation112_spill] sm:$0xff]  ;;  %v8003_v0 = vld [vmem:[%s10463_s1 + $0x4a0] sm:$0xff] }
 0xa41   : > { %7758 = vmatpush3.bf16.xpose.msra.mxu0 %v10767_v59  ;;  %7790 = vmatpush3.bf16.xpose.msra.mxu1 %v9159_v15  ;;  %v9613_v15 = vpack.c.bf16 %v8004_v18, %v8003_v0  ;;  %v9701_v18 = vld [vmem:[%s10463_s1 + $0x428] sm:$0xff] }
 0xa42   : > { %7760 = vmatprep.subr.bf16.mxu0 %v10768_v17  ;;  %7792 = vmatprep.subr.bf16.mxu1 %v9161_v49  ;;  %v10782_v17 = vld [vmem:[#allocation85_spill] sm:$0xff] }
 0xa49   : > { %7762 = vmatpush3.bf16.xpose.msra.mxu0 %v10769_v31  ;;  %7794 = vmatpush3.bf16.xpose.msra.mxu1 %v10770_v35 }
 0xa4a   : > { %7804 = vmatprep.subr.bf16.mxu1 %v9601_v21  ;;  %7796 = vmatprep.subr.bf16.mxu0 %v9601_v21 }
 0xa50   : > { %6635 = vmatmul.mubr.f32.vlgmr.msra.gmra.mrb[80].mxu0 %v2985_v43  ;;  %6675 = vmatmul.mubr.f32.vlgmr.msra.gmra.mrb[66].mxu1 %v2985_v43  ;;  %v9676_v43 = vld [vmem:[%s10463_s1 + $0x420] sm:$0xff] }
 0xa51   : > { %6636 = vmatprep.mubr.f32.mxu0 %v2986_v46  ;;  %6676 = vmatprep.mubr.f32.mxu1 %v2986_v46 }
 0xa52   : > { %7806 = vmatpush3.bf16.msra.mxu1 %v9601_v21  ;;  %7798 = vmatpush3.bf16.msra.mxu0 %v9601_v21 }
 0xa53   : > { %7808 = vmatprep.subr.bf16.mxu1 %v9613_v15  ;;  %7800 = vmatprep.subr.bf16.mxu0 %v9613_v15 }
 0xa54   : > { %6637 = vmatmul.mubr.f32.gmra.mrb[82].mxu0 %v2986_v46  ;;  %6677 = vmatmul.mubr.f32.gmra.mrb[68].mxu1 %v2986_v46 }
 0xa55   : > { %6638 = vmatprep.mubr.f32.mxu0 %v2987_v44  ;;  %6678 = vmatprep.mubr.f32.mxu1 %v2987_v44 }
 0xa56   : > { %7810 = vmatpush3.bf16.msra.mxu1 %v9613_v15  ;;  %7802 = vmatpush3.bf16.msra.mxu0 %v9613_v15 }
 0xa57   : > { %7820 = vmatprep.subr.bf16.mxu1 %v9601_v21  ;;  %7812 = vmatprep.subr.bf16.mxu0 %v9601_v21 }
 0xa58   : > { %6639 = vmatmul.mubr.f32.gmra.mrb[84].mxu0 %v2987_v44  ;;  %6679 = vmatmul.mubr.f32.gmra.mrb[70].mxu1 %v2987_v44 }
 0xa59   : > { %6640 = vmatprep.mubr.f32.mxu0 %v2988_v40  ;;  %6680 = vmatprep.mubr.f32.mxu1 %v2988_v40 }
 0xa5c   : > { %6641 = vmatmul.mubr.f32.gmra.mrb[86].mxu0 %v2988_v40  ;;  %6681 = vmatmul.mubr.f32.gmra.mrb[72].mxu1 %v2988_v40 }
 0xae3   : > { %v3067_v49 = vpop.f32.mrb[72].mxu0  ;;  %v3156_v16 = vpop.f32.mrb[58].mxu1 }
 0xae4   : > { %v3069_v37 = vpop.f32.mrb[73].mxu0  ;;  %v3158_v41 = vpop.f32.mrb[59].mxu1  ;;  %v9629_v13 = vmul.f32 %v9626_v33, %v3067_v49  ;;  %v9632_v36 = vmul.f32 %v9626_v33, %v3156_v16 }
 0xae5   : > { %v9635_v48 = vmul.f32 %v9626_v33, %v3069_v37  ;;  %v9638_v34 = vmul.f32 %v9626_v33, %v3158_v41 }
 0xae6   : > { %v5442_v27 = vmul.f32 %v9629_v13, %v10771_v19  ;;  %v4847_v2 = vmul.f32 %v9632_v36, %v10772_v32  ;;  %v10783_v19 = vld [vmem:[#allocation83_spill] sm:$0xff]  ;;  %v10784_v32 = vld [vmem:[#allocation89_spill] sm:$0xff] }
 0xae7   : > { %v3073_v9 = vpop.f32.mrb[74].mxu0  ;;  %v3162_v45 = vpop.f32.mrb[60].mxu1  ;;  %v5145_v38 = vmul.f32 %v9635_v48, %v10775_v5  ;;  %v4549_v52 = vmul.f32 %v9638_v34, %v10776_v62 }
 0xae8   : > { %v9646_v28 = vmul.f32 %v9643_v4, %v3073_v9  ;;  %v9649_v51 = vmul.f32 %v9643_v4, %v3162_v45  ;;  %v3075_v30 = vpop.f32.mrb[75].mxu0  ;;  %v3164_v50 = vpop.f32.mrb[61].mxu1 }
 0xae9   : > { %v9652_v54 = vmul.f32 %v9643_v4, %v3075_v30  ;;  %v9655_v12 = vmul.f32 %v9643_v4, %v3164_v50 }
 0xaea   : > { %v5443_v26 = vmul.f32 %v9646_v28, %v10773_v60  ;;  %v4848_v42 = vmul.f32 %v9649_v51, %v10774_v58  ;;  %v10785_v60 = vld [vmem:[#allocation75_spill] sm:$0xff]  ;;  %v10786_v58 = vld [vmem:[#allocation88_spill] sm:$0xff] }
 0xaeb   : > { %v5146_v25 = vmul.f32 %v9652_v54, %v10777_v3  ;;  %v4550_v7 = vmul.f32 %v9655_v12, %v10778_v29  ;;  %v3079_v57 = vpop.f32.mrb[76].mxu0  ;;  %v3168_v53 = vpop.f32.mrb[62].mxu1 }
 0xaec   : > { %v5446_v55 = vadd.f32 %v5443_v26, %v5442_v27  ;;  %v4851_v11 = vadd.f32 %v4848_v42, %v4847_v2  ;;  %v9679_v10 = vmul.f32 %v9676_v43, %v3079_v57  ;;  %v9682_v46 = vmul.f32 %v9676_v43, %v3168_v53  ;;  %v3081_v39 = vpop.f32.mrb[77].mxu0  ;;  %v3170_v44 = vpop.f32.mrb[63].mxu1 }
 0xaed   : > { %v5149_v56 = vadd.f32 %v5146_v25, %v5145_v38  ;;  %v4553_v40 = vadd.f32 %v4550_v7, %v4549_v52  ;;  %v9685_v8 = vmul.f32 %v9676_v43, %v3081_v39  ;;  %v9688_v1 = vmul.f32 %v9676_v43, %v3170_v44  ;;  %v10788_v39 = vld [vmem:[#allocation110_spill] sm:$0xff] }
 0xaee   : > { %v5444_v63 = vmul.f32 %v9679_v10, %v10779_v61  ;;  %v4849_v23 = vmul.f32 %v9682_v46, %v10780_v47 }
 0xaef   : > { %v5147_v59 = vmul.f32 %v9685_v8, %v10781_v20  ;;  %v4551_v6 = vmul.f32 %v9688_v1, %v10782_v17  ;;  %v3085_v24 = vpop.f32.mrb[78].mxu0  ;;  %v3174_v31 = vpop.f32.mrb[64].mxu1 }
 0xaf0   : > { %v5447_v35 = vadd.f32 %v5446_v55, %v5444_v63  ;;  %v4852_v0 = vadd.f32 %v4851_v11, %v4849_v23  ;;  %v9704_v49 = vmul.f32 %v9701_v18, %v3085_v24  ;;  %v9707_v16 = vmul.f32 %v9701_v18, %v3174_v31  ;;  %v3087_v37 = vpop.f32.mrb[79].mxu0  ;;  %v3176_v41 = vpop.f32.mrb[65].mxu1  ;;  %v10787_v55 = vld [vmem:[#allocation102_spill] sm:$0xff]  ;;  %v10789_v24 = vld [vmem:[#allocation99_spill] sm:$0xff] }
 0xaf1   : > { %v5150_v9 = vadd.f32 %v5149_v56, %v5147_v59  ;;  %v4554_v45 = vadd.f32 %v4553_v40, %v4551_v6  ;;  %v9710_v30 = vmul.f32 %v9701_v18, %v3087_v37  ;;  %v9713_v50 = vmul.f32 %v9701_v18, %v3176_v41  ;;  %v10791_v41 = vld [vmem:[#allocation104_spill] sm:$0xff] }
 0xaf2   : > { %v5445_v27 = vmul.f32 %v9704_v49, %v10783_v19  ;;  %v4850_v2 = vmul.f32 %v9707_v16, %v10784_v32  ;;  %v10792_v19 = vld [vmem:[#allocation113_spill] sm:$0xff] }
 0xaf3   : > { %v5148_v26 = vmul.f32 %v9710_v30, %v10785_v60  ;;  %v4552_v42 = vmul.f32 %v9713_v50, %v10786_v58 }
 0xaf4   : > { %v9723_v5 = vadd.f32 %v5447_v35, %v5445_v27  ;;  %v9725_v38 = vadd.f32 %v4852_v0, %v4850_v2  ;;  %v10790_v35 = vld [vmem:[#allocation107_spill] sm:$0xff]  ;;  %v10793_v2 = vld [vmem:[#allocation90_spill] sm:$0xff] }
 0xaf5   : > { %v9727_v62 = vadd.f32 %v5150_v9, %v5148_v26  ;;  %v4555_v52 = vadd.f32 %v4554_v45, %v4552_v42  ;;  %v10794_v26 = vld [vmem:[#allocation96_spill] sm:$0xff]  ;;  %v10795_v42 = vld [vmem:[#allocation109_spill] sm:$0xff] }
 0xaf6   : > { %v4854_v47 = vrot.slane %v9725_v38, 4 }
 0xaf7   : > { %v4556_v23 = vrot.slane %v4555_v52, 4 }
 0xb23   : > { %v3245_v3 = vpop.f32.mrb[80].mxu0  ;;  %v3334_v25 = vpop.f32.mrb[66].mxu1 }
 0xb24   : > { %v4247_v29 = vmul.f32 %v9626_v33, %v3245_v3  ;;  %v3651_v7 = vmul.f32 %v9626_v33, %v3334_v25  ;;  %v3247_v57 = vpop.f32.mrb[81].mxu0  ;;  %v3336_v53 = vpop.f32.mrb[67].mxu1  ;;  %v10796_v25 = vld [vmem:[#allocation101_spill] sm:$0xff] }
 0xb25   : > { %v9734_v56 = vmul.f32 %v9626_v33, %v3247_v57  ;;  %v9737_v40 = vmul.f32 %v9626_v33, %v3336_v53 }
 0xb26   : > { %v4264_v11 = vmul.f32 %v4247_v29, %v10787_v55  ;;  %v3668_v44 = vmul.f32 %v3651_v7, %v10788_v39  ;;  %v4251_v31 = vmul.f32 %v4247_v29, %v10789_v24  ;;  %v3655_v0 = vmul.f32 %v3651_v7, %v10790_v35  ;;  %v10797_v24 = vld [vmem:[#allocation106_spill] sm:$0xff] }
 0xb27   : > { %v3251_v61 = vpop.f32.mrb[82].mxu0  ;;  %v3340_v63 = vpop.f32.mrb[68].mxu1  ;;  %v3953_v60 = vmul.f32 %v9734_v56, %v10793_v2  ;;  %v3361_v58 = vmul.f32 %v9737_v40, %v10794_v26 }
 0xb28   : > { %v4248_v20 = vmul.f32 %v9643_v4, %v3251_v61  ;;  %v3652_v59 = vmul.f32 %v9643_v4, %v3340_v63  ;;  %3676 = vxpose.xlu1.b32.start [1/4] (short) %v3668_v44, 128  ;;  %v3342_v17 = vpop.f32.mrb[69].mxu1  ;;  %4272 = vxpose.xlu0.b32.start [1/4] (short) %v4264_v11, 128  ;;  %v3253_v6 = vpop.f32.mrb[83].mxu0 }
 0xb29   : > { %v9745_v33 = vmul.f32 %v9643_v4, %v3342_v17  ;;  %v9748_v37 = vmul.f32 %v9643_v4, %v3253_v6 }
 0xb2a   : > { %v4252_v9 = vmul.f32 %v4248_v20, %v10791_v41  ;;  %v4265_v45 = vmul.f32 %v4248_v20, %v10787_v55  ;;  %v3656_v27 = vmul.f32 %v3652_v59, %v10792_v19  ;;  %v3669_v32 = vmul.f32 %v3652_v59, %v10788_v39 }
 0xb2b   : > { %v3362_v3 = vmul.f32 %v9745_v33, %v10795_v42  ;;  %v3954_v4 = vmul.f32 %v9748_v37, %v10796_v25  ;;  %v3257_v29 = vpop.f32.mrb[84].mxu0  ;;  %v3346_v7 = vpop.f32.mrb[70].mxu1  ;;  %v5152_v19 = vrot.slane %v9727_v62, 4 }
 0xb2c   : > { %v4255_v57 = vadd.f32 %v4252_v9, %v4251_v31  ;;  %v3659_v53 = vadd.f32 %v3656_v27, %v3655_v0  ;;  %v4249_v11 = vmul.f32 %v9676_v43, %v3257_v29  ;;  %v3653_v44 = vmul.f32 %v9676_v43, %v3346_v7  ;;  %3677 = vxpose.xlu1.b32.cont [2/4] (short) %v3669_v32, 128  ;;  %v3348_v61 = vpop.f32.mrb[71].mxu1  ;;  %v3259_v63 = vpop.f32.mrb[85].mxu0  ;;  %v10798_v0 = vld [vmem:[#allocation115_spill] sm:$0xff]  ;;  %v10799_v32 = vld [vmem:[#allocation114_spill] sm:$0xff] }
 0xb2d   : > { %v3365_v20 = vadd.f32 %v3362_v3, %v3361_v58  ;;  %v3957_v59 = vadd.f32 %v3954_v4, %v3953_v60  ;;  %v9765_v17 = vmul.f32 %v9676_v43, %v3348_v61  ;;  %4273 = vxpose.xlu0.b32.cont [2/4] (short) %v4265_v45, 128  ;;  %v9768_v6 = vmul.f32 %v9676_v43, %v3259_v63  ;;  %v10800_v60 = vld [vmem:[#allocation105_spill] sm:$0xff] }
 0xb2e   : > { %v4253_v35 = vmul.f32 %v4249_v11, %v10797_v24  ;;  %v4266_v31 = vmul.f32 %v4249_v11, %v10787_v55  ;;  %v3657_v41 = vmul.f32 %v3653_v44, %v10798_v0  ;;  %v3670_v9 = vmul.f32 %v3653_v44, %v10788_v39  ;;  %v10801_v44 = vld [vmem:[#allocation111_spill] sm:$0xff] }
 0xb2f   : > { %v4557_v27 = vadd.f32 %v4556_v23, %v4555_v52  ;;  %v3363_v2 = vmul.f32 %v9765_v17, %v10799_v32  ;;  %v3955_v45 = vmul.f32 %v9768_v6, %v10800_v60  ;;  %v3263_v26 = vpop.f32.mrb[86].mxu0  ;;  %v3352_v43 = vpop.f32.mrb[72].mxu1 }
 0xb30   : > { %v4256_v58 = vadd.f32 %v4255_v57, %v4253_v35  ;;  %v3660_v42 = vadd.f32 %v3659_v53, %v3657_v41  ;;  %v4250_v3 = vmul.f32 %v9701_v18, %v3263_v26  ;;  %v3654_v25 = vmul.f32 %v9701_v18, %v3352_v43  ;;  %3678 = vxpose.xlu1.b32.cont [3/4] (short) %v3670_v9, 128  ;;  %v3354_v4 = vpop.f32.mrb[73].mxu1  ;;  %v3265_v29 = vpop.f32.mrb[87].mxu0  ;;  %v10802_v53 = vld [vmem:[#allocation117_spill] sm:$0xff]  ;;  %v10803_v35 = vld [vmem:[#allocation116_spill] sm:$0xff] }
 0xb31   : > { %v3366_v7 = vadd.f32 %v3365_v20, %v3363_v2  ;;  %v3958_v11 = vadd.f32 %v3957_v59, %v3955_v45  ;;  %v9782_v52 = vmul.f32 %v9701_v18, %v3354_v4  ;;  %4274 = vxpose.xlu0.b32.cont [3/4] (short) %v4266_v31, 128  ;;  %v9785_v23 = vmul.f32 %v9701_v18, %v3265_v29  ;;  %v10804_v20 = vld [vmem:[#allocation108_spill] sm:$0xff] }
 0xb32   : > { %v4254_v61 = vmul.f32 %v4250_v3, %v10801_v44  ;;  %v4267_v57 = vmul.f32 %v4250_v3, %v10787_v55  ;;  %v3658_v63 = vmul.f32 %v3654_v25, %v10802_v53  ;;  %v3671_v24 = vmul.f32 %v3654_v25, %v10788_v39 }
 0xb33   : > { %v3364_v0 = vmul.f32 %v9782_v52, %v10803_v35  ;;  %v3956_v59 = vmul.f32 %v9785_v23, %v10804_v20  ;;  %v4855_v41 = vadd.f32 %v4854_v47, %v9725_v38  ;;  %v5153_v55 = vadd.f32 %v5152_v19, %v9727_v62 }
 0xb34   : > { %v4257_v31 = vadd.f32 %v4256_v58, %v4254_v61  ;;  %v3661_v9 = vadd.f32 %v3660_v42, %v3658_v63  ;;  %3679 = vxpose.xlu1.b32.end [4/4] (short) %v3671_v24, 128  ;;  %v4558_v2 = vrot.slane %v4557_v27, 2  ;;  %v5449_v39 = vrot.slane %v9723_v5, 4 }
 0xb35   : > { %v3367_v18 = vadd.f32 %v3366_v7, %v3364_v0  ;;  %v3959_v32 = vadd.f32 %v3958_v11, %v3956_v59  ;;  %4275 = vxpose.xlu0.b32.end [4/4] (short) %v4267_v57, 128  ;;  %v4856_v3 = vrot.slane %v4855_v41, 2  ;;  %v5154_v47 = vrot.slane %v5153_v55, 2 }
 0xb36   : > { %v4258_v60 = vrot.slane %v4257_v31, 4  ;;  %v3662_v45 = vrot.slane %v3661_v9, 4  ;;  %v4559_v58 = vadd.f32 %v4558_v2, %v4557_v27  ;;  %v5450_v11 = vadd.f32 %v5449_v39, %v9723_v5 }
 0xb37   : > { %v3368_v26 = vrot.slane %v3367_v18, 4  ;;  %v3960_v43 = vrot.slane %v3959_v32, 4  ;;  %v4857_v19 = vadd.f32 %v4856_v3, %v4855_v41  ;;  %v5155_v24 = vadd.f32 %v5154_v47, %v5153_v55 }
 0xb38   : > { %v4259_v25 = vadd.f32 %v4258_v60, %v4257_v31  ;;  %v3663_v4 = vadd.f32 %v3662_v45, %v3661_v9  ;;  %v4560_v35 = vrot.slane %v4559_v58, 1  ;;  %v5451_v59 = vrot.slane %v5450_v11, 2 }
 0xb39   : > { %v3369_v29 = vadd.f32 %v3368_v26, %v3367_v18  ;;  %v3961_v38 = vadd.f32 %v3960_v43, %v3959_v32  ;;  %v4858_v9 = vrot.slane %v4857_v19, 1  ;;  %v5156_v2 = vrot.slane %v5155_v24, 1 }
 0xb3a   : > { %v4260_v42 = vrot.slane %v4259_v25, 2  ;;  %v3664_v7 = vrot.slane %v3663_v4, 2  ;;  %v4561_v60 = vadd.f32 %v4560_v35, %v4559_v58  ;;  %v5452_v55 = vadd.f32 %v5451_v59, %v5450_v11 }
 0xb3b   : > { %v3370_v44 = vrot.slane %v3369_v29, 2  ;;  %v3962_v62 = vrot.slane %v3961_v38, 2  ;;  %v4859_v3 = vadd.f32 %v4858_v9, %v4857_v19  ;;  %v5157_v47 = vadd.f32 %v5156_v2, %v5155_v24 }
 0xb3c   : > { %v4261_v61 = vadd.f32 %v4260_v42, %v4259_v25  ;;  %v3665_v57 = vadd.f32 %v3664_v7, %v3663_v4  ;;  %v4567_v58 = vsel %vm4566_vm12, 0.0, %v4561_v60  ;;  %v5453_v7 = vrot.slane %v5452_v55, 1 }
 0xb3d   : > { %v3371_v53 = vadd.f32 %v3370_v44, %v3369_v29  ;;  %v3963_v63 = vadd.f32 %v3962_v62, %v3961_v38  ;;  %v10805_v38 = vld [vmem:[#allocation62_spill] sm:$0xff]  ;;  %v10806_v44 = vmov 1.0  }
 0xb3e   : > { %v4262_v0 = vrot.slane %v4261_v61, 1  ;;  %v3666_v20 = vrot.slane %v3665_v57, 1  ;;  %vm5977_vm14 = vcmp.eq.f32.partialorder %v10805_v38, 1.0  ;;  %v5454_v35 = vadd.f32 %v5453_v7, %v5452_v55  ;;  %v10813_v7 = vld [vmem:[#allocation84_spill] sm:$0xff] }
 0xb3f   : > { %v3372_v31 = vrot.slane %v3371_v53, 1  ;;  %v3964_v27 = vrot.slane %v3963_v63, 1  ;;  %v516_v62 = vsel %vm5977_vm14, 2.0, %v10806_v44 }
 0xb40   : > { %v4263_v18 = vadd.f32 %v4262_v0, %v4261_v61  ;;  %v3667_v5 = vadd.f32 %v3666_v20, %v3665_v57  ;;  %v4865_v61 = vsel %vm4864_vm15, 0.0, %v4859_v3  ;;  %v4568_v57 = vsel %vm4268_vm13, %v4567_v58, 0.0  ;;  %v10810_v3 = vld [vmem:[#allocation95_spill] sm:$0xff] }
 0xb41   : > { %v3373_v32 = vadd.f32 %v3372_v31, %v3371_v53  ;;  %v3965_v41 = vadd.f32 %v3964_v27, %v3963_v63  ;;  %v5162_v53 = vsel %vm2283_vm7, 0.0, %v5157_v47  ;;  %7993 = vrcp.f32 %v516_v62  ;;  %v10807_v27 = vld [vmem:[#allocation63_spill] sm:$0xff] }
 0xb42   : > { %v3673_v45 = vsel %vm3672_vm10, 0.0, %v3667_v5  ;;  %v4269_v25 = vsel %vm4268_vm13, 0.0, %v4263_v18  ;;  %v4866_v24 = vsel %vm4566_vm12, %v4865_v61, 0.0  ;;  %v5163_v20 = vsel %vm4864_vm15, %v5162_v53, 0.0 }
 0xb43   : > { %v3674_v39 = vsel %vm3378_vm11, %v3673_v45, 0.0  ;;  %v3379_v26 = vsel %vm3378_vm11, 0.0, %v3373_v32  ;;  %v3971_v43 = vsel %vm3970_vm9, 0.0, %v3965_v41  ;;  %v4270_v11 = vsel %vm3970_vm9, %v4269_v25, 0.0  ;;  %v10808_v32 = vld [vmem:[#allocation61_spill] sm:$0xff] }
 0xb44   : > { %v3675_v4 = vadd.f32 %v3674_v39, %v3379_v26  ;;  %v3972_v29 = vsel %vm3672_vm10, %v3971_v43, 0.0  ;;  %v5459_v31 = vsel %vm2283_vm7, %v5454_v35, 0.0  ;;  %v522_v9 = vmul.f32 2.0, %v10807_v27 }
 0xb45   : > { %vm513_vm1 = vcmp.eq.f32.partialorder %v10808_v32, %v10805_v38  ;;  %v10809_v45 = vmov 0.0   ;;  %v3374_v25 = vmul.f32 %v9737_v40, %v10810_v3  ;;  %v3375_v47 = vmul.f32 %v9745_v33, %v10810_v3  ;;  %v10812_v33 = vld [vmem:[#allocation77_spill] sm:$0xff] }
 0xb46   : > { %v3973_v42 = vadd.f32 %v3972_v29, %v3675_v4  ;;  %v514_v55 = vsel %vm513_vm1, 1.0, %v10809_v45  ;;  %v10811_v4 = vld [vmem:[#allocation76_spill] sm:$0xff]  ;;  %v3376_v58 = vmul.f32 %v9765_v17, %v10810_v3  ;;  %v3967_v17 = vmul.f32 %v9748_v37, %v10813_v7 }
 0xb47   : > { %v4860_v29 = vmul.f32 %v9632_v36, %v10811_v4  ;;  %v3377_v36 = vmul.f32 %v9782_v52, %v10810_v3  ;;  %v4863_v40 = vmul.f32 %v9707_v16, %v10811_v4  ;;  %v4564_v16 = vmul.f32 %v9688_v1, %v10812_v33  ;;  %v10815_v3 = vld [vmem:[#allocation65_spill] sm:$0xff] }
 0xb48   : > { %v4271_v19 = vadd.f32 %v4270_v11, %v3973_v42  ;;  %v4862_v42 = vmul.f32 %v9682_v46, %v10811_v4  ;;  %v3966_v11 = vmul.f32 %v9734_v56, %v10813_v7  ;;  %v4563_v46 = vmul.f32 %v9655_v12, %v10812_v33 }
 0xb49   : > { %v4565_v12 = vmul.f32 %v9713_v50, %v10812_v33  ;;  %v3969_v37 = vmul.f32 %v9785_v23, %v10813_v7 }
 0xb4a   : > { %v4569_v63 = vadd.f32 %v4568_v57, %v4271_v19 }
 0xb4b   : > { %v7994_v2 = vpop.eup %7993 }
 0xb4c   : > { %v4867_v0 = vadd.f32 %v4866_v24, %v4569_v63  ;;  %v518_v39 = vmul.f32 %v7994_v2, %v514_v55 }
 0xb4e   : > { %v5164_v59 = vadd.f32 %v5163_v20, %v4867_v0 }
 0xb50   : > { %v5460_v18 = vadd.f32 %v5459_v31, %v5164_v59 }
 0xb52   : > { %v5733_v5 = vmul.f32 %v5460_v18, %v522_v9 }
 0xb54   : > { %v5734_v41 = vsub.f32 0.0, %v5733_v5 }
 0xb56   : > { %v5735_v60 = vmul.f32 %v5734_v41, %v10805_v38  ;;  %v4861_v38 = vmul.f32 %v9649_v51, %v10811_v4  ;;  %v4562_v51 = vmul.f32 %v9638_v34, %v10812_v33  ;;  %v3968_v34 = vmul.f32 %v9768_v6, %v10813_v7 }
 0xb58   : > { %v5736_v26 = vadd.f32 %v5735_v60, %v5735_v60 }
 0xb5a   : > { %v9820_v43 = vmul.f32 %v5736_v26, %v518_v39  ;;  %v10814_v39 = vld [vmem:[#allocation67_spill] sm:$0xff] }
 0xb5b   : > { %v5158_v26 = vmul.f32 %v9635_v48, %v10814_v39  ;;  %v5457_v48 = vmul.f32 %v9679_v10, %v10815_v3 }
 0xb65   : > { %3380 = vxpose.xlu1.b32.start [1/4] (short) %v3374_v25, 128  ;;  %v5455_v25 = vmul.f32 %v9629_v13, %v10815_v3  ;;  %v5160_v13 = vmul.f32 %v9685_v8, %v10814_v39  ;;  %v5458_v8 = vmul.f32 %v9704_v49, %v10815_v3 }
 0xb66   : > { %4868 = vxpose.xlu0.b32.start [1/4] (short) %v4860_v29, 128 }
 0xb69   : > { %3381 = vxpose.xlu1.b32.cont [2/4] (short) %v3375_v47, 128  ;;  %v5159_v47 = vmul.f32 %v9652_v54, %v10814_v39 }
 0xb6a   : > { %4869 = vxpose.xlu0.b32.cont [2/4] (short) %v4861_v38, 128  ;;  %v5456_v38 = vmul.f32 %v9646_v28, %v10815_v3  ;;  %v5161_v28 = vmul.f32 %v9710_v30, %v10814_v39 }
 0xb6d   : > { %3382 = vxpose.xlu1.b32.cont [3/4] (short) %v3376_v58, 128 }
 0xb6e   : > { %4870 = vxpose.xlu0.b32.cont [3/4] (short) %v4862_v42, 128 }
 0xb71   : > { %3383 = vxpose.xlu1.b32.end [4/4] (short) %v3377_v36, 128 }
 0xb72   : > { %4871 = vxpose.xlu0.b32.end [4/4] (short) %v4863_v40, 128 }
 0xba2   : > { %4570 = vxpose.xlu1.b32.start [1/4] (short) %v4562_v51, 128 }
 0xba3   : > { %3974 = vxpose.xlu0.b32.start [1/4] (short) %v3966_v11, 128 }
 0xba6   : > { %4571 = vxpose.xlu1.b32.cont [2/4] (short) %v4563_v46, 128 }
 0xba7   : > { %3975 = vxpose.xlu0.b32.cont [2/4] (short) %v3967_v17, 128 }
 0xba8   : > { %v3692_v52 = vpop.trf.xlu1 }
 0xba9   : > { %v9850_v44 = vpop.trf.xlu0  ;;  %7191 = vmatprep.mubr.msk.f32.mxu1 %vm1823_vm6, %v3692_v52 }
 0xbaa   : > { %4572 = vxpose.xlu1.b32.cont [3/4] (short) %v4564_v16, 128 }
 0xbab   : > { %3976 = vxpose.xlu0.b32.cont [3/4] (short) %v3968_v34, 128 }
 0xbac   : > { %v3693_v56 = vpop.trf.xlu1 }
 0xbad   : > { %v9857_v62 = vpop.trf.xlu0  ;;  %7192 = vmatmul.mubr.msk.f32.vlgmr.msra.gmra.mrb[74].mxu1 %vm1823_vm6, %v3693_v56 }
 0xbae   : > { %4573 = vxpose.xlu1.b32.end [4/4] (short) %v4565_v12, 128  ;;  %7822 = vmatpush3.bf16.msra.mxu1 %v9601_v21 }
 0xbaf   : > { %3977 = vxpose.xlu0.b32.end [4/4] (short) %v3969_v37, 128  ;;  %7824 = vmatprep.subr.bf16.mxu1 %v9613_v15 }
 0xbb0   : > { %v3694_v1 = vpop.trf.xlu1 }
 0xbb1   : > { %v4290_v6 = vpop.trf.xlu0  ;;  %7194 = vmatprep.mubr.msk.f32.mxu1 %vm1823_vm6, %v3694_v1 }
 0xbb2   : > { %7826 = vmatpush3.bf16.msra.mxu1 %v9613_v15 }
 0xbb3   : > { %7836 = vmatprep.subr.bf16.mxu1 %v9601_v21 }
 0xbb4   : > { %v3695_v50 = vpop.trf.xlu1 }
 0xbb5   : > { %v9865_v23 = vpop.trf.xlu0  ;;  %7195 = vmatmul.mubr.msk.f32.gmra.mrb[76].mxu1 %vm1823_vm6, %v3695_v50 }
 0xbb8   : > { %v3696_v61 = vpop.trf.xlu1 }
 0xbb9   : > { %v9868_v19 = vpop.trf.xlu0  ;;  %7197 = vmatprep.mubr.msk.f32.mxu1 %vm1823_vm6, %v3696_v61 }
 0xbbc   : > { %v3697_v57 = vpop.trf.xlu1 }
 0xbbd   : > { %v9871_v53 = vpop.trf.xlu0  ;;  %7198 = vmatmul.mubr.msk.f32.gmra.mrb[78].mxu1 %vm1823_vm6, %v3697_v57 }
 0xbc0   : > { %v3698_v63 = vpop.trf.xlu1 }
 0xbc1   : > { %v9874_v35 = vpop.trf.xlu0  ;;  %7200 = vmatprep.mubr.msk.f32.mxu1 %vm1823_vm6, %v3698_v63 }
 0xbc4   : > { %v3699_v24 = vpop.trf.xlu1 }
 0xbc5   : > { %v9877_v0 = vpop.trf.xlu0  ;;  %7201 = vmatmul.mubr.msk.f32.gmra.mrb[80].mxu1 %vm1823_vm6, %v3699_v24 }
 0xbc8   : > { %v3700_v20 = vpop.trf.xlu1 }
 0xbc9   : > { %v9880_v59 = vpop.trf.xlu0  ;;  %7203 = vmatprep.mubr.msk.f32.mxu1 %vm1823_vm6, %v3700_v20 }
 0xbcc   : > { %v3701_v31 = vpop.trf.xlu1 }
 0xbcd   : > { %v9883_v27 = vpop.trf.xlu0  ;;  %7204 = vmatmul.mubr.msk.f32.gmra.mrb[82].mxu1 %vm1823_vm6, %v3701_v31 }
 0xbd0   : > { %v3702_v9 = vpop.trf.xlu1 }
 0xbd1   : > { %v9886_v18 = vpop.trf.xlu0  ;;  %7206 = vmatprep.mubr.msk.f32.mxu1 %vm1823_vm6, %v3702_v9 }
 0xbd4   : > { %v3703_v5 = vpop.trf.xlu1 }
 0xbd5   : > { %v9889_v32 = vpop.trf.xlu0  ;;  %7207 = vmatmul.mubr.msk.f32.gmra.mrb[84].mxu1 %vm1823_vm6, %v3703_v5 }
 0xbd8   : > { %v3704_v41 = vpop.trf.xlu1 }
 0xbd9   : > { %v9892_v2 = vpop.trf.xlu0  ;;  %7209 = vmatprep.mubr.msk.f32.mxu1 %vm1823_vm6, %v3704_v41 }
 0xbdc   : > { %v3705_v60 = vpop.trf.xlu1 }
 0xbdd   : > { %v9895_v55 = vpop.trf.xlu0  ;;  %7210 = vmatmul.mubr.msk.f32.gmra.mrb[86].mxu1 %vm1823_vm6, %v3705_v60 }
 0xbe0   : > { %v3706_v4 = vpop.trf.xlu1  ;;  %5165 = vxpose.xlu1.b32.start [1/4] (short) %v5158_v26, 128 }
 0xbe1   : > { %v4302_v29 = vpop.trf.xlu0  ;;  %5461 = vxpose.xlu0.b32.start [1/4] (short) %v5455_v25, 128  ;;  %7212 = vmatprep.mubr.msk.f32.mxu1 %vm1823_vm6, %v3706_v4 }
 0xbe4   : > { %v3707_v58 = vpop.trf.xlu1  ;;  %5166 = vxpose.xlu1.b32.cont [2/4] (short) %v5159_v47, 128 }
 0xbe5   : > { %v4303_v42 = vpop.trf.xlu0  ;;  %5462 = vxpose.xlu0.b32.cont [2/4] (short) %v5456_v38, 128  ;;  %7213 = vmatmul.mubr.msk.f32.gmra.mrb[88].mxu1 %vm1823_vm6, %v3707_v58 }
 0xbe6   : > { %7255 = vmatprep.mubr.msk.f32.mxu1 %vm1823_vm6, %v9850_v44 }
 0xbe8   : > { %5167 = vxpose.xlu1.b32.cont [3/4] (short) %v5160_v13, 128  ;;  %v3396_v54 = vpop.trf.xlu1 }
 0xbe9   : > { %v4884_v36 = vpop.trf.xlu0  ;;  %5463 = vxpose.xlu0.b32.cont [3/4] (short) %v5457_v48, 128  ;;  %7256 = vmatmul.mubr.msk.f32.vlgmr.msra.gmra.mrb[90].mxu1 %vm1823_vm6, %v9857_v62 }
 0xbea   : > { %7258 = vmatprep.mubr.msk.f32.mxu1 %vm1823_vm6, %v4290_v6  ;;  %7159 = vmatprep.mubr.msk.f32.mxu0 %vm1823_vm6, %v3396_v54 }
 0xbeb   : > { %7838 = vmatpush3.bf16.msra.mxu1 %v9601_v21 }
 0xbec   : > { %v3397_v10 = vpop.trf.xlu1  ;;  %5168 = vxpose.xlu1.b32.end [4/4] (short) %v5161_v28, 128  ;;  %7840 = vmatprep.subr.bf16.mxu1 %v9613_v15 }
 0xbed   : > { %v4885_v40 = vpop.trf.xlu0  ;;  %5464 = vxpose.xlu0.b32.end [4/4] (short) %v5458_v8, 128  ;;  %7160 = vmatmul.mubr.msk.f32.vlgmr.msra.gmra.mrb[88].mxu0 %vm1823_vm6, %v3397_v10 }
 0xbee   : > { %7259 = vmatmul.mubr.msk.f32.gmra.mrb[92].mxu1 %vm1823_vm6, %v9865_v23  ;;  %7814 = vmatpush3.bf16.msra.mxu0 %v9601_v21 }
 0xbef   : > { %7261 = vmatprep.mubr.msk.f32.mxu1 %vm1823_vm6, %v9868_v19  ;;  %7842 = vmatpush3.bf16.msra.mxu1 %v9613_v15 }
 0xbf0   : > { %v3398_v49 = vpop.trf.xlu1  ;;  %7816 = vmatprep.subr.bf16.mxu0 %v9613_v15  ;;  %7852 = vmatprep.subr.bf16.mxu1 %v9601_v21 }
 0xbf1   : > { %v4886_v30 = vpop.trf.xlu0  ;;  %7162 = vmatprep.mubr.msk.f32.mxu0 %vm1823_vm6, %v3398_v49 }
 0xbf2   : > { %7262 = vmatmul.mubr.msk.f32.gmra.mrb[94].mxu1 %vm1823_vm6, %v9871_v53  ;;  %7818 = vmatpush3.bf16.msra.mxu0 %v9613_v15 }
 0xbf3   : > { %7264 = vmatprep.mubr.msk.f32.mxu1 %vm1823_vm6, %v9874_v35  ;;  %7828 = vmatprep.subr.bf16.mxu0 %v9601_v21 }
 0xbf4   : > { %v3399_v33 = vpop.trf.xlu1 }
 0xbf5   : > { %v4887_v51 = vpop.trf.xlu0  ;;  %7163 = vmatmul.mubr.msk.f32.gmra.mrb[90].mxu0 %vm1823_vm6, %v3399_v33 }
 0xbf6   : > { %7265 = vmatmul.mubr.msk.f32.gmra.mrb[96].mxu1 %vm1823_vm6, %v9877_v0 }
 0xbf7   : > { %7267 = vmatprep.mubr.msk.f32.mxu1 %vm1823_vm6, %v9880_v59 }
 0xbf8   : > { %v3400_v7 = vpop.trf.xlu1 }
 0xbf9   : > { %v4888_v11 = vpop.trf.xlu0  ;;  %7165 = vmatprep.mubr.msk.f32.mxu0 %vm1823_vm6, %v3400_v7 }
 0xbfa   : > { %7268 = vmatmul.mubr.msk.f32.gmra.mrb[98].mxu1 %vm1823_vm6, %v9883_v27 }
 0xbfb   : > { %7270 = vmatprep.mubr.msk.f32.mxu1 %vm1823_vm6, %v9886_v18 }
 0xbfc   : > { %v3401_v46 = vpop.trf.xlu1 }
 0xbfd   : > { %v4889_v17 = vpop.trf.xlu0  ;;  %7166 = vmatmul.mubr.msk.f32.gmra.mrb[92].mxu0 %vm1823_vm6, %v3401_v46 }
 0xbfe   : > { %7271 = vmatmul.mubr.msk.f32.gmra.mrb[100].mxu1 %vm1823_vm6, %v9889_v32 }
 0xbff   : > { %7273 = vmatprep.mubr.msk.f32.mxu1 %vm1823_vm6, %v9892_v2 }
 0xc00   : > { %v3402_v16 = vpop.trf.xlu1 }
 0xc01   : > { %v4890_v52 = vpop.trf.xlu0  ;;  %7168 = vmatprep.mubr.msk.f32.mxu0 %vm1823_vm6, %v3402_v16 }
 0xc02   : > { %7274 = vmatmul.mubr.msk.f32.gmra.mrb[102].mxu1 %vm1823_vm6, %v9895_v55 }
 0xc03   : > { %7276 = vmatprep.mubr.msk.f32.mxu1 %vm1823_vm6, %v4302_v29 }
 0xc04   : > { %v3403_v34 = vpop.trf.xlu1 }
 0xc05   : > { %v4891_v44 = vpop.trf.xlu0  ;;  %7169 = vmatmul.mubr.msk.f32.gmra.mrb[94].mxu0 %vm1823_vm6, %v3403_v34 }
 0xc06   : > { %7277 = vmatmul.mubr.msk.f32.gmra.mrb[104].mxu1 %vm1823_vm6, %v4303_v42 }
 0xc07   : > { %7319 = vmatprep.mubr.msk.f32.mxu1 %vm1823_vm6, %v4884_v36 }
 0xc08   : > { %v3404_v12 = vpop.trf.xlu1 }
 0xc09   : > { %v4892_v56 = vpop.trf.xlu0  ;;  %7171 = vmatprep.mubr.msk.f32.mxu0 %vm1823_vm6, %v3404_v12 }
 0xc0a   : > { %7320 = vmatmul.mubr.msk.f32.vlgmr.msra.gmra.mrb[106].mxu1 %vm1823_vm6, %v4885_v40 }
 0xc0b   : > { %7322 = vmatprep.mubr.msk.f32.mxu1 %vm1823_vm6, %v4886_v30  ;;  %7854 = vmatpush3.bf16.msra.mxu1 %v9601_v21 }
 0xc0c   : > { %v3405_v37 = vpop.trf.xlu1  ;;  %7856 = vmatprep.subr.bf16.mxu1 %v9613_v15 }
 0xc0d   : > { %v4893_v62 = vpop.trf.xlu0  ;;  %7172 = vmatmul.mubr.msk.f32.gmra.mrb[96].mxu0 %vm1823_vm6, %v3405_v37 }
 0xc0e   : > { %7323 = vmatmul.mubr.msk.f32.gmra.mrb[108].mxu1 %vm1823_vm6, %v4887_v51 }
 0xc0f   : > { %7325 = vmatprep.mubr.msk.f32.mxu1 %vm1823_vm6, %v4888_v11  ;;  %7858 = vmatpush3.bf16.msra.mxu1 %v9613_v15 }
 0xc10   : > { %v3406_v1 = vpop.trf.xlu1  ;;  %7891 = vmatprep.subr.bf16.mxu1 %v10731_v14 }
 0xc11   : > { %v4894_v6 = vpop.trf.xlu0  ;;  %7174 = vmatprep.mubr.msk.f32.mxu0 %vm1823_vm6, %v3406_v1 }
 0xc12   : > { %7326 = vmatmul.mubr.msk.f32.gmra.mrb[110].mxu1 %vm1823_vm6, %v4889_v17 }
 0xc13   : > { %7328 = vmatprep.mubr.msk.f32.mxu1 %vm1823_vm6, %v4890_v52 }
 0xc14   : > { %v3407_v50 = vpop.trf.xlu1 }
 0xc15   : > { %v4895_v23 = vpop.trf.xlu0  ;;  %7175 = vmatmul.mubr.msk.f32.gmra.mrb[98].mxu0 %vm1823_vm6, %v3407_v50 }
 0xc16   : > { %7329 = vmatmul.mubr.msk.f32.gmra.mrb[112].mxu1 %vm1823_vm6, %v4891_v44 }
 0xc17   : > { %7331 = vmatprep.mubr.msk.f32.mxu1 %vm1823_vm6, %v4892_v56 }
 0xc18   : > { %v3408_v61 = vpop.trf.xlu1 }
 0xc19   : > { %v4896_v19 = vpop.trf.xlu0  ;;  %7177 = vmatprep.mubr.msk.f32.mxu0 %vm1823_vm6, %v3408_v61 }
 0xc1a   : > { %7332 = vmatmul.mubr.msk.f32.gmra.mrb[114].mxu1 %vm1823_vm6, %v4893_v62 }
 0xc1b   : > { %7334 = vmatprep.mubr.msk.f32.mxu1 %vm1823_vm6, %v4894_v6 }
 0xc1c   : > { %v3409_v57 = vpop.trf.xlu1 }
 0xc1d   : > { %v4897_v53 = vpop.trf.xlu0  ;;  %7178 = vmatmul.mubr.msk.f32.gmra.mrb[100].mxu0 %vm1823_vm6, %v3409_v57 }
 0xc1e   : > { %7335 = vmatmul.mubr.msk.f32.gmra.mrb[116].mxu1 %vm1823_vm6, %v4895_v23 }
 0xc1f   : > { %7337 = vmatprep.mubr.msk.f32.mxu1 %vm1823_vm6, %v4896_v19 }
 0xc20   : > { %v3410_v63 = vpop.trf.xlu1 }
 0xc21   : > { %v4898_v35 = vpop.trf.xlu0  ;;  %7180 = vmatprep.mubr.msk.f32.mxu0 %vm1823_vm6, %v3410_v63 }
 0xc22   : > { %7338 = vmatmul.mubr.msk.f32.gmra.mrb[118].mxu1 %vm1823_vm6, %v4897_v53 }
 0xc23   : > { %7340 = vmatprep.mubr.msk.f32.mxu1 %vm1823_vm6, %v4898_v35 }
 0xc24   : > { %v3411_v24 = vpop.trf.xlu1 }
 0xc25   : > { %v4899_v0 = vpop.trf.xlu0  ;;  %7181 = vmatmul.mubr.msk.f32.gmra.mrb[102].mxu0 %vm1823_vm6, %v3411_v24 }
 0xc26   : > { %7341 = vmatmul.mubr.msk.f32.gmra.mrb[120].mxu1 %vm1823_vm6, %v4899_v0 }
 0xc28   : > { %v4586_v20 = vpop.trf.xlu1 }
 0xc29   : > { %v3990_v59 = vpop.trf.xlu0 }
 0xc2a   : > { %7223 = vmatprep.mubr.msk.f32.mxu0 %vm1823_vm6, %v3990_v59 }
 0xc2c   : > { %v4587_v31 = vpop.trf.xlu1 }
 0xc2d   : > { %v3991_v27 = vpop.trf.xlu0 }
 0xc2e   : > { %7224 = vmatmul.mubr.msk.f32.vlgmr.msra.gmra.mrb[104].mxu0 %vm1823_vm6, %v3991_v27 }
 0xc2f   : > { %7830 = vmatpush3.bf16.msra.mxu0 %v9601_v21 }
 0xc30   : > { %7832 = vmatprep.subr.bf16.mxu0 %v9613_v15  ;;  %v4588_v9 = vpop.trf.xlu1 }
 0xc31   : > { %v3992_v18 = vpop.trf.xlu0 }
 0xc32   : > { %7226 = vmatprep.mubr.msk.f32.mxu0 %vm1823_vm6, %v3992_v18 }
 0xc33   : > { %7834 = vmatpush3.bf16.msra.mxu0 %v9613_v15 }
 0xc34   : > { %v4589_v5 = vpop.trf.xlu1  ;;  %7844 = vmatprep.subr.bf16.mxu0 %v9601_v21 }
 0xc35   : > { %v3993_v32 = vpop.trf.xlu0 }
 0xc36   : > { %7227 = vmatmul.mubr.msk.f32.gmra.mrb[106].mxu0 %vm1823_vm6, %v3993_v32 }
 0xc38   : > { %v4590_v41 = vpop.trf.xlu1 }
 0xc39   : > { %v3994_v2 = vpop.trf.xlu0 }
 0xc3a   : > { %7229 = vmatprep.mubr.msk.f32.mxu0 %vm1823_vm6, %v3994_v2 }
 0xc3c   : > { %v4591_v60 = vpop.trf.xlu1 }
 0xc3d   : > { %v3995_v55 = vpop.trf.xlu0 }
 0xc3e   : > { %7230 = vmatmul.mubr.msk.f32.gmra.mrb[108].mxu0 %vm1823_vm6, %v3995_v55 }
 0xc40   : > { %v4592_v39 = vpop.trf.xlu1 }
 0xc41   : > { %v3996_v26 = vpop.trf.xlu0 }
 0xc42   : > { %7232 = vmatprep.mubr.msk.f32.mxu0 %vm1823_vm6, %v3996_v26 }
 0xc44   : > { %v4593_v3 = vpop.trf.xlu1 }
 0xc45   : > { %v3997_v25 = vpop.trf.xlu0 }
 0xc46   : > { %7233 = vmatmul.mubr.msk.f32.gmra.mrb[110].mxu0 %vm1823_vm6, %v3997_v25 }
 0xc48   : > { %v4594_v4 = vpop.trf.xlu1 }
 0xc49   : > { %v3998_v29 = vpop.trf.xlu0 }
 0xc4a   : > { %7235 = vmatprep.mubr.msk.f32.mxu0 %vm1823_vm6, %v3998_v29 }
 0xc4c   : > { %v4595_v47 = vpop.trf.xlu1 }
 0xc4d   : > { %v3999_v38 = vpop.trf.xlu0 }
 0xc4e   : > { %7236 = vmatmul.mubr.msk.f32.gmra.mrb[112].mxu0 %vm1823_vm6, %v3999_v38 }
 0xc50   : > { %v4596_v58 = vpop.trf.xlu1 }
 0xc51   : > { %v4000_v42 = vpop.trf.xlu0 }
 0xc52   : > { %7238 = vmatprep.mubr.msk.f32.mxu0 %vm1823_vm6, %v4000_v42 }
 0xc54   : > { %v4597_v13 = vpop.trf.xlu1 }
 0xc55   : > { %v4001_v48 = vpop.trf.xlu0 }
 0xc56   : > { %7239 = vmatmul.mubr.msk.f32.gmra.mrb[114].mxu0 %vm1823_vm6, %v4001_v48 }
 0xc58   : > { %v4598_v54 = vpop.trf.xlu1 }
 0xc59   : > { %v4002_v36 = vpop.trf.xlu0 }
 0xc5a   : > { %7241 = vmatprep.mubr.msk.f32.mxu0 %vm1823_vm6, %v4002_v36 }
 0xc5c   : > { %v4599_v28 = vpop.trf.xlu1 }
 0xc5d   : > { %v4003_v8 = vpop.trf.xlu0 }
 0xc5e   : > { %7242 = vmatmul.mubr.msk.f32.gmra.mrb[116].mxu0 %vm1823_vm6, %v4003_v8 }
 0xc60   : > { %v4600_v10 = vpop.trf.xlu1 }
 0xc61   : > { %v4004_v40 = vpop.trf.xlu0 }
 0xc62   : > { %7244 = vmatprep.mubr.msk.f32.mxu0 %vm1823_vm6, %v4004_v40 }
 0xc64   : > { %v4601_v49 = vpop.trf.xlu1 }
 0xc65   : > { %v4005_v30 = vpop.trf.xlu0 }
 0xc66   : > { %7245 = vmatmul.mubr.msk.f32.gmra.mrb[118].mxu0 %vm1823_vm6, %v4005_v30 }
 0xc67   : > { %7287 = vmatprep.mubr.msk.f32.mxu0 %vm1823_vm6, %v4586_v20 }
 0xc68   : > { %v5181_v33 = vpop.trf.xlu1 }
 0xc69   : > { %v5477_v51 = vpop.trf.xlu0 }
 0xc6a   : > { %7288 = vmatmul.mubr.msk.f32.vlgmr.msra.gmra.mrb[120].mxu0 %vm1823_vm6, %v4587_v31  ;;  %7383 = vmatprep.mubr.msk.f32.mxu1 %vm1823_vm6, %v5477_v51 }
 0xc6b   : > { %7290 = vmatprep.mubr.msk.f32.mxu0 %vm1823_vm6, %v4588_v9  ;;  %7846 = vmatpush3.bf16.msra.mxu0 %v9601_v21 }
 0xc6c   : > { %7848 = vmatprep.subr.bf16.mxu0 %v9613_v15  ;;  %v5182_v7 = vpop.trf.xlu1 }
 0xc6d   : > { %v5478_v11 = vpop.trf.xlu0 }
 0xc6e   : > { %7291 = vmatmul.mubr.msk.f32.gmra.mrb[122].mxu0 %vm1823_vm6, %v4589_v5  ;;  %7384 = vmatmul.mubr.msk.f32.vlgmr.msra.gmra.mrb[122].mxu1 %vm1823_vm6, %v5478_v11 }
 0xc6f   : > { %7293 = vmatprep.mubr.msk.f32.mxu0 %vm1823_vm6, %v4590_v41  ;;  %7850 = vmatpush3.bf16.msra.mxu0 %v9613_v15 }
 0xc70   : > { %v5183_v46 = vpop.trf.xlu1 }
 0xc71   : > { %v5479_v17 = vpop.trf.xlu0 }
 0xc72   : > { %7294 = vmatmul.mubr.msk.f32.gmra.mrb[124].mxu0 %vm1823_vm6, %v4591_v60  ;;  %7386 = vmatprep.mubr.msk.f32.mxu1 %vm1823_vm6, %v5479_v17 }
 0xc73   : > { %7296 = vmatprep.mubr.msk.f32.mxu0 %vm1823_vm6, %v4592_v39 }
 0xc74   : > { %v5184_v21 = vpop.trf.xlu1 }
 0xc75   : > { %v5480_v16 = vpop.trf.xlu0 }
 0xc76   : > { %7297 = vmatmul.mubr.msk.f32.gmra.mrb[126].mxu0 %vm1823_vm6, %v4593_v3  ;;  %7387 = vmatmul.mubr.msk.f32.gmra.mrb[124].mxu1 %vm1823_vm6, %v5480_v16 }
 0xc77   : > { %7299 = vmatprep.mubr.msk.f32.mxu0 %vm1823_vm6, %v4594_v4 }
 0xc78   : > { %v5185_v52 = vpop.trf.xlu1 }
 0xc79   : > { %v5481_v34 = vpop.trf.xlu0 }
 0xc7a   : > { %7300 = vmatmul.mubr.msk.f32.gmra.mrb[128].mxu0 %vm1823_vm6, %v4595_v47  ;;  %7389 = vmatprep.mubr.msk.f32.mxu1 %vm1823_vm6, %v5481_v34 }
 0xc7b   : > { %7302 = vmatprep.mubr.msk.f32.mxu0 %vm1823_vm6, %v4596_v58 }
 0xc7c   : > { %v5186_v15 = vpop.trf.xlu1 }
 0xc7d   : > { %v5482_v44 = vpop.trf.xlu0 }
 0xc7e   : > { %7303 = vmatmul.mubr.msk.f32.gmra.mrb[130].mxu0 %vm1823_vm6, %v4597_v13  ;;  %7390 = vmatmul.mubr.msk.f32.gmra.mrb[126].mxu1 %vm1823_vm6, %v5482_v44 }
 0xc7f   : > { %7305 = vmatprep.mubr.msk.f32.mxu0 %vm1823_vm6, %v4598_v54 }
 0xc80   : > { %v7193_v12 = vpop.f32.mrb[74].mxu1  ;;  %v5187_v56 = vpop.trf.xlu1 }
 0xc81   : > { %v3822_v37 = vpop.f32.mrb[75].mxu1  ;;  %v5483_v62 = vpop.trf.xlu0 }
 0xc82   : > { %3901 = vxpose.xlu1.b32.start [1/16] (narrow) %v3822_v37, 16  ;;  %7306 = vmatmul.mubr.msk.f32.gmra.mrb[132].mxu0 %vm1823_vm6, %v4599_v28 }
 0xc83   : > { %7308 = vmatprep.mubr.msk.f32.mxu0 %vm1823_vm6, %v4600_v10  ;;  %7392 = vmatprep.mubr.msk.f32.mxu1 %vm1823_vm6, %v5483_v62 }
 0xc84   : > { %v5188_v1 = vpop.trf.xlu1 }
 0xc85   : > { %v5484_v6 = vpop.trf.xlu0 }
 0xc86   : > { %3902 = vxpose.xlu1.b32.cont [2/16] (narrow) %v7193_v12, 16  ;;  %7309 = vmatmul.mubr.msk.f32.gmra.mrb[134].mxu0 %vm1823_vm6, %v4601_v49 }
 0xc87   : > { %7351 = vmatprep.mubr.msk.f32.mxu0 %vm1823_vm6, %v5181_v33  ;;  %7393 = vmatmul.mubr.msk.f32.gmra.mrb[128].mxu1 %vm1823_vm6, %v5484_v6 }
 0xc88   : > { %v7196_v50 = vpop.f32.mrb[76].mxu1  ;;  %v5189_v23 = vpop.trf.xlu1 }
 0xc89   : > { %v3832_v61 = vpop.f32.mrb[77].mxu1  ;;  %v5485_v19 = vpop.trf.xlu0 }
 0xc8a   : > { %3903 = vxpose.xlu1.b32.cont [3/16] (narrow) %v3832_v61, 16  ;;  %7352 = vmatmul.mubr.msk.f32.vlgmr.msra.gmra.mrb[136].mxu0 %vm1823_vm6, %v5182_v7 }
 0xc8b   : > { %7354 = vmatprep.mubr.msk.f32.mxu0 %vm1823_vm6, %v5183_v46  ;;  %7395 = vmatprep.mubr.msk.f32.mxu1 %vm1823_vm6, %v5485_v19 }
 0xc8c   : > { %v5190_v57 = vpop.trf.xlu1 }
 0xc8d   : > { %v5486_v53 = vpop.trf.xlu0 }
 0xc8e   : > { %3904 = vxpose.xlu1.b32.cont [4/16] (narrow) %v7196_v50, 16  ;;  %7355 = vmatmul.mubr.msk.f32.gmra.mrb[138].mxu0 %vm1823_vm6, %v5184_v21 }
 0xc8f   : > { %7357 = vmatprep.mubr.msk.f32.mxu0 %vm1823_vm6, %v5185_v52  ;;  %7396 = vmatmul.mubr.msk.f32.gmra.mrb[130].mxu1 %vm1823_vm6, %v5486_v53 }
 0xc90   : > { %v7199_v63 = vpop.f32.mrb[78].mxu1  ;;  %v5191_v35 = vpop.trf.xlu1 }
 0xc91   : > { %v3842_v24 = vpop.f32.mrb[79].mxu1  ;;  %v5487_v0 = vpop.trf.xlu0 }
 0xc92   : > { %3905 = vxpose.xlu1.b32.cont [5/16] (narrow) %v3842_v24, 16  ;;  %7358 = vmatmul.mubr.msk.f32.gmra.mrb[140].mxu0 %vm1823_vm6, %v5186_v15 }
 0xc93   : > { %7360 = vmatprep.mubr.msk.f32.mxu0 %vm1823_vm6, %v5187_v56  ;;  %7398 = vmatprep.mubr.msk.f32.mxu1 %vm1823_vm6, %v5487_v0 }
 0xc94   : > { %v5192_v20 = vpop.trf.xlu1 }
 0xc95   : > { %v5488_v59 = vpop.trf.xlu0 }
 0xc96   : > { %3906 = vxpose.xlu1.b32.cont [6/16] (narrow) %v7199_v63, 16  ;;  %7361 = vmatmul.mubr.msk.f32.gmra.mrb[142].mxu0 %vm1823_vm6, %v5188_v1 }
 0xc97   : > { %7363 = vmatprep.mubr.msk.f32.mxu0 %vm1823_vm6, %v5189_v23  ;;  %7399 = vmatmul.mubr.msk.f32.gmra.mrb[132].mxu1 %vm1823_vm6, %v5488_v59 }
 0xc98   : > { %v7202_v31 = vpop.f32.mrb[80].mxu1  ;;  %v5193_v27 = vpop.trf.xlu1 }
 0xc99   : > { %v3852_v9 = vpop.f32.mrb[81].mxu1  ;;  %v5489_v18 = vpop.trf.xlu0 }
 0xc9a   : > { %3907 = vxpose.xlu1.b32.cont [7/16] (narrow) %v3852_v9, 16  ;;  %7364 = vmatmul.mubr.msk.f32.gmra.mrb[144].mxu0 %vm1823_vm6, %v5190_v57 }
 0xc9b   : > { %7366 = vmatprep.mubr.msk.f32.mxu0 %vm1823_vm6, %v5191_v35  ;;  %7401 = vmatprep.mubr.msk.f32.mxu1 %vm1823_vm6, %v5489_v18 }
 0xc9c   : > { %v5194_v5 = vpop.trf.xlu1 }
 0xc9d   : > { %v5490_v32 = vpop.trf.xlu0 }
 0xc9e   : > { %3908 = vxpose.xlu1.b32.cont [8/16] (narrow) %v7202_v31, 16  ;;  %7367 = vmatmul.mubr.msk.f32.gmra.mrb[146].mxu0 %vm1823_vm6, %v5192_v20 }
 0xc9f   : > { %7369 = vmatprep.mubr.msk.f32.mxu0 %vm1823_vm6, %v5193_v27  ;;  %7402 = vmatmul.mubr.msk.f32.gmra.mrb[134].mxu1 %vm1823_vm6, %v5490_v32 }
 0xca0   : > { %v7205_v41 = vpop.f32.mrb[82].mxu1  ;;  %v5195_v2 = vpop.trf.xlu1 }
 0xca1   : > { %v3862_v60 = vpop.f32.mrb[83].mxu1  ;;  %v5491_v55 = vpop.trf.xlu0 }
 0xca2   : > { %3909 = vxpose.xlu1.b32.cont [9/16] (narrow) %v3862_v60, 16  ;;  %7370 = vmatmul.mubr.msk.f32.gmra.mrb[148].mxu0 %vm1823_vm6, %v5194_v5  ;;  %v10816_v60 = vld [vmem:[#allocation33_spill] sm:$0xff] }
 0xca3   : > { %7372 = vmatprep.mubr.msk.f32.mxu0 %vm1823_vm6, %v5195_v2  ;;  %7404 = vmatprep.mubr.msk.f32.mxu1 %vm1823_vm6, %v5491_v55 }
 0xca4   : > { %v5196_v39 = vpop.trf.xlu1 }
 0xca5   : > { %v5492_v26 = vpop.trf.xlu0 }
 0xca6   : > { %3910 = vxpose.xlu1.b32.cont [10/16] (narrow) %v7205_v41, 16  ;;  %7373 = vmatmul.mubr.msk.f32.gmra.mrb[150].mxu0 %vm1823_vm6, %v5196_v39 }
 0xca7   : > { %7405 = vmatmul.mubr.msk.f32.gmra.mrb[136].mxu1 %vm1823_vm6, %v5492_v26 }
 0xca8   : > { %v7208_v3 = vpop.f32.mrb[84].mxu1  ;;  %7439 = vmatprep.mubr.msk.f32.mxu1 %vm8018_vm0, %v10809_v45 }
 0xca9   : > { %v3872_v25 = vpop.f32.mrb[85].mxu1 }
 0xcaa   : > { %3911 = vxpose.xlu1.b32.cont [11/16] (narrow) %v3872_v25, 16 }
 0xcae   : > { %3912 = vxpose.xlu1.b32.cont [12/16] (narrow) %v7208_v3, 16  ;;  %v10817_v3 = vld [vmem:[#allocation34_spill] sm:$0xff] }
 0xcb0   : > { %v7211_v4 = vpop.f32.mrb[86].mxu1 }
 0xcb1   : > { %v3882_v29 = vpop.f32.mrb[87].mxu1 }
 0xcb2   : > { %3913 = vxpose.xlu1.b32.cont [13/16] (narrow) %v3882_v29, 16 }
 0xcb6   : > { %3914 = vxpose.xlu1.b32.cont [14/16] (narrow) %v7211_v4, 16  ;;  %v10818_v4 = vld [vmem:[#allocation17_spill] sm:$0xff] }
 0xcb7   : > { %v1249_v29 = vmul.f32 2.0, %v10818_v4 }
 0xcb8   : > { %v7214_v47 = vpop.f32.mrb[88].mxu1 }
 0xcb9   : > { %v3892_v38 = vpop.f32.mrb[89].mxu1 }
 0xcba   : > { %3915 = vxpose.xlu1.b32.cont [15/16] (narrow) %v3892_v38, 16 }
 0xcbc   : > { %v10062_v58 = vpop.f32.mrb[90].mxu1 }
 0xcbd   : > { %v10064_v42 = vpop.f32.mrb[91].mxu1 }
 0xcbe   : > { %3916 = vxpose.xlu1.b32.end [16/16] (narrow) %v7214_v47, 16  ;;  %v10819_v47 = vld [vmem:[#allocation18_spill] sm:$0xff] }
 0xcbf   : > { %v1250_v38 = vmul.f32 2.0, %v10819_v47 }
 0xcc0   : > { %v7161_v13 = vpop.f32.mrb[88].mxu0 }
 0xcc1   : > { %v10066_v48 = vpop.f32.mrb[92].mxu1  ;;  %v3526_v54 = vpop.f32.mrb[89].mxu0 }
 0xcc2   : > { %v10068_v45 = vpop.f32.mrb[93].mxu1  ;;  %3605 = vxpose.xlu0.b32.start [1/16] (narrow) %v3526_v54, 16 }
 0xcc5   : > { %v10070_v36 = vpop.f32.mrb[94].mxu1 }
 0xcc6   : > { %v10072_v28 = vpop.f32.mrb[95].mxu1  ;;  %3606 = vxpose.xlu0.b32.cont [2/16] (narrow) %v7161_v13, 16 }
 0xcc8   : > { %v7164_v8 = vpop.f32.mrb[90].mxu0 }
 0xcc9   : > { %v10074_v10 = vpop.f32.mrb[96].mxu1  ;;  %v3536_v40 = vpop.f32.mrb[91].mxu0 }
 0xcca   : > { %v10076_v49 = vpop.f32.mrb[97].mxu1  ;;  %3607 = vxpose.xlu0.b32.cont [3/16] (narrow) %v3536_v40, 16 }
 0xccd   : > { %v10078_v30 = vpop.f32.mrb[98].mxu1 }
 0xcce   : > { %v10080_v33 = vpop.f32.mrb[99].mxu1  ;;  %3608 = vxpose.xlu0.b32.cont [4/16] (narrow) %v7164_v8, 16 }
 0xcd0   : > { %v7167_v51 = vpop.f32.mrb[92].mxu0 }
 0xcd1   : > { %v10082_v7 = vpop.f32.mrb[100].mxu1  ;;  %v3546_v11 = vpop.f32.mrb[93].mxu0 }
 0xcd2   : > { %v10084_v46 = vpop.f32.mrb[101].mxu1  ;;  %3609 = vxpose.xlu0.b32.cont [5/16] (narrow) %v3546_v11, 16 }
 0xcd5   : > { %v10086_v17 = vpop.f32.mrb[102].mxu1 }
 0xcd6   : > { %v10088_v21 = vpop.f32.mrb[103].mxu1  ;;  %3610 = vxpose.xlu0.b32.cont [6/16] (narrow) %v7167_v51, 16 }
 0xcd8   : > { %v7170_v16 = vpop.f32.mrb[94].mxu0 }
 0xcd9   : > { %v10090_v52 = vpop.f32.mrb[104].mxu1  ;;  %v3556_v34 = vpop.f32.mrb[95].mxu0 }
 0xcda   : > { %v10092_v15 = vpop.f32.mrb[105].mxu1  ;;  %3611 = vxpose.xlu0.b32.cont [7/16] (narrow) %v3556_v34, 16 }
 0xcdd   : > { %v10094_v44 = vpop.f32.mrb[106].mxu1 }
 0xcde   : > { %v10096_v12 = vpop.f32.mrb[107].mxu1  ;;  %3612 = vxpose.xlu0.b32.cont [8/16] (narrow) %v7170_v16, 16 }
 0xce0   : > { %v7173_v56 = vpop.f32.mrb[96].mxu0 }
 0xce1   : > { %v10098_v37 = vpop.f32.mrb[108].mxu1  ;;  %v3566_v62 = vpop.f32.mrb[97].mxu0 }
 0xce2   : > { %v10100_v1 = vpop.f32.mrb[109].mxu1  ;;  %3613 = vxpose.xlu0.b32.cont [9/16] (narrow) %v3566_v62, 16 }
 0xce5   : > { %v10102_v6 = vpop.f32.mrb[110].mxu1 }
 0xce6   : > { %v10104_v50 = vpop.f32.mrb[111].mxu1  ;;  %3614 = vxpose.xlu0.b32.cont [10/16] (narrow) %v7173_v56, 16 }
 0xce8   : > { %v7176_v23 = vpop.f32.mrb[98].mxu0 }
 0xce9   : > { %v10106_v61 = vpop.f32.mrb[112].mxu1  ;;  %v3576_v19 = vpop.f32.mrb[99].mxu0 }
 0xcea   : > { %v10108_v57 = vpop.f32.mrb[113].mxu1  ;;  %3615 = vxpose.xlu0.b32.cont [11/16] (narrow) %v3576_v19, 16 }
 0xced   : > { %v10110_v53 = vpop.f32.mrb[114].mxu1 }
 0xcee   : > { %v10112_v63 = vpop.f32.mrb[115].mxu1  ;;  %3616 = vxpose.xlu0.b32.cont [12/16] (narrow) %v7176_v23, 16 }
 0xcf0   : > { %v7179_v35 = vpop.f32.mrb[100].mxu0 }
 0xcf1   : > { %v10114_v24 = vpop.f32.mrb[116].mxu1  ;;  %v3586_v0 = vpop.f32.mrb[101].mxu0 }
 0xcf2   : > { %v10116_v20 = vpop.f32.mrb[117].mxu1  ;;  %3617 = vxpose.xlu0.b32.cont [13/16] (narrow) %v3586_v0, 16 }
 0xcf5   : > { %v10118_v59 = vpop.f32.mrb[118].mxu1 }
 0xcf6   : > { %3618 = vxpose.xlu0.b32.cont [14/16] (narrow) %v7179_v35, 16  ;;  %v10120_v31 = vpop.f32.mrb[119].mxu1 }
 0xcf8   : > { %v7182_v27 = vpop.f32.mrb[102].mxu0 }
 0xcf9   : > { %v3596_v9 = vpop.f32.mrb[103].mxu0  ;;  %v10122_v18 = vpop.f32.mrb[120].mxu1 }
 0xcfa   : > { %3619 = vxpose.xlu0.b32.cont [15/16] (narrow) %v3596_v9, 16  ;;  %v10124_v5 = vpop.f32.mrb[121].mxu1 }
 0xcfe   : > { %3620 = vxpose.xlu0.b32.end [16/16] (narrow) %v7182_v27, 16 }
 0xd01   : > { %v7225_v32 = vpop.f32.mrb[104].mxu0 }
 0xd02   : > { %v4120_v41 = vpop.f32.mrb[105].mxu0  ;;  %v3917_v2 = vpop.trf.xlu1  ;;  %4497 = vxpose.xlu0.b32.start [1/16] (narrow) %v10064_v42, 16 }
 0xd03   : > { %v3933_v55 = vmul.f32 %v10816_v60, %v3917_v2  ;;  %4199 = vxpose.xlu1.b32.start [1/16] (narrow) %v4120_v41, 16  ;;  %v10821_v41 = vld [vmem:[#allocation38_spill] sm:$0xff] }
 0xd05   : > { %v3935_v26 = vmul.f32 -4.5, %v3933_v55  ;;  %v10822_v55 = vld [vmem:[#allocation23_spill] sm:$0xff] }
 0xd06   : > { %v3918_v39 = vpop.trf.xlu1  ;;  %4498 = vxpose.xlu0.b32.cont [2/16] (narrow) %v10062_v58, 16 }
 0xd07   : > { %v3934_v25 = vmul.f32 %v10817_v3, %v3918_v39  ;;  %4200 = vxpose.xlu1.b32.cont [2/16] (narrow) %v7225_v32, 16  ;;  %v3937_v42 = vmul.f32 %v3935_v26, %v1249_v29  ;;  %v10823_v39 = vld [vmem:[#allocation25_spill] sm:$0xff] }
 0xd08   : > { %v1363_v26 = vmul.f32 2.0, %v10823_v39 }
 0xd09   : > { %v3936_v13 = vmul.f32 -4.5, %v3934_v25  ;;  %v7228_v54 = vpop.f32.mrb[106].mxu0 }
 0xd0a   : > { %v4130_v8 = vpop.f32.mrb[107].mxu0  ;;  %4499 = vxpose.xlu0.b32.cont [3/16] (narrow) %v10068_v45, 16 }
 0xd0b   : > { %v3938_v40 = vmul.f32 %v3936_v13, %v1250_v38  ;;  %4201 = vxpose.xlu1.b32.cont [3/16] (narrow) %v4130_v8, 16 }
 0xd0d   : > { %v3939_v51 = vadd.f32 %v3938_v40, %v3937_v42 }
 0xd0e   : > { %4500 = vxpose.xlu0.b32.cont [4/16] (narrow) %v10066_v48, 16 }
 0xd0f   : > { %4202 = vxpose.xlu1.b32.cont [4/16] (narrow) %v7228_v54, 16 }
 0xd11   : > { %v7231_v58 = vpop.f32.mrb[108].mxu0 }
 0xd12   : > { %v4140_v11 = vpop.f32.mrb[109].mxu0  ;;  %4501 = vxpose.xlu0.b32.cont [5/16] (narrow) %v10072_v28, 16 }
 0xd13   : > { %4203 = vxpose.xlu1.b32.cont [5/16] (narrow) %v4140_v11, 16 }
 0xd16   : > { %4502 = vxpose.xlu0.b32.cont [6/16] (narrow) %v10070_v36, 16 }
 0xd17   : > { %4204 = vxpose.xlu1.b32.cont [6/16] (narrow) %v7231_v58, 16 }
 0xd19   : > { %v7234_v16 = vpop.f32.mrb[110].mxu0 }
 0xd1a   : > { %v4150_v34 = vpop.f32.mrb[111].mxu0  ;;  %4503 = vxpose.xlu0.b32.cont [7/16] (narrow) %v10076_v49, 16 }
 0xd1b   : > { %4205 = vxpose.xlu1.b32.cont [7/16] (narrow) %v4150_v34, 16 }
 0xd1e   : > { %4504 = vxpose.xlu0.b32.cont [8/16] (narrow) %v10074_v10, 16 }
 0xd1f   : > { %4206 = vxpose.xlu1.b32.cont [8/16] (narrow) %v7234_v16, 16 }
 0xd21   : > { %v7237_v45 = vpop.f32.mrb[112].mxu0 }
 0xd22   : > { %v4160_v56 = vpop.f32.mrb[113].mxu0  ;;  %4505 = vxpose.xlu0.b32.cont [9/16] (narrow) %v10080_v33, 16 }
 0xd23   : > { %4207 = vxpose.xlu1.b32.cont [9/16] (narrow) %v4160_v56, 16 }
 0xd26   : > { %4506 = vxpose.xlu0.b32.cont [10/16] (narrow) %v10078_v30, 16 }
 0xd27   : > { %4208 = vxpose.xlu1.b32.cont [10/16] (narrow) %v7237_v45, 16 }
 0xd29   : > { %v7240_v48 = vpop.f32.mrb[114].mxu0 }
 0xd2a   : > { %v4170_v28 = vpop.f32.mrb[115].mxu0  ;;  %4507 = vxpose.xlu0.b32.cont [11/16] (narrow) %v10084_v46, 16 }
 0xd2b   : > { %4209 = vxpose.xlu1.b32.cont [11/16] (narrow) %v4170_v28, 16 }
 0xd2e   : > { %4508 = vxpose.xlu0.b32.cont [12/16] (narrow) %v10082_v7, 16  ;;  %v3940_v7 = vrot.slane %v3939_v51, 4 }
 0xd2f   : > { %4210 = vxpose.xlu1.b32.cont [12/16] (narrow) %v7240_v48, 16 }
 0xd31   : > { %v7243_v36 = vpop.f32.mrb[116].mxu0 }
 0xd32   : > { %v4180_v49 = vpop.f32.mrb[117].mxu0  ;;  %4509 = vxpose.xlu0.b32.cont [13/16] (narrow) %v10088_v21, 16 }
 0xd33   : > { %4211 = vxpose.xlu1.b32.cont [13/16] (narrow) %v4180_v49, 16 }
 0xd36   : > { %4510 = vxpose.xlu0.b32.cont [14/16] (narrow) %v10086_v17, 16  ;;  %v10820_v17 = vld [vmem:[#allocation37_spill] sm:$0xff] }
 0xd37   : > { %4212 = vxpose.xlu1.b32.cont [14/16] (narrow) %v7243_v36, 16 }
 0xd39   : > { %v7246_v10 = vpop.f32.mrb[118].mxu0 }
 0xd3a   : > { %v4190_v33 = vpop.f32.mrb[119].mxu0  ;;  %4511 = vxpose.xlu0.b32.cont [15/16] (narrow) %v10092_v15, 16  ;;  %v3941_v15 = vadd.f32 %v3940_v7, %v3939_v51 }
 0xd3b   : > { %4213 = vxpose.xlu1.b32.cont [15/16] (narrow) %v4190_v33, 16 }
 0xd3c   : > { %v3942_v60 = vrot.slane %v3941_v15, 2 }
 0xd3d   : > { %v7289_v30 = vpop.f32.mrb[120].mxu0 }
 0xd3e   : > { %4512 = vxpose.xlu0.b32.end [16/16] (narrow) %v10090_v52, 16  ;;  %v4716_v46 = vpop.f32.mrb[121].mxu0  ;;  %v3943_v13 = vadd.f32 %v3942_v60, %v3941_v15 }
 0xd3f   : > { %4214 = vxpose.xlu1.b32.end [16/16] (narrow) %v7246_v10, 16 }
 0xd40   : > { %v3944_v51 = vrot.slane %v3943_v13, 1 }
 0xd41   : > { %v7292_v62 = vpop.f32.mrb[122].mxu0  ;;  %v10146_v23 = vpop.f32.mrb[122].mxu1 }
 0xd42   : > { %5093 = vxpose.xlu0.b32.start [1/16] (narrow) %v10096_v12, 16  ;;  %v3621_v21 = vpop.trf.xlu0  ;;  %v4726_v19 = vpop.f32.mrb[123].mxu0  ;;  %v1362_v12 = vmul.f32 2.0, %v10822_v55  ;;  %v3945_v56 = vadd.f32 %v3944_v51, %v3943_v13 }
 0xd43   : > { %v3637_v35 = vmul.f32 %v10820_v17, %v3621_v21  ;;  %4795 = vxpose.xlu1.b32.start [1/16] (narrow) %v4716_v46, 16  ;;  %v10150_v0 = vpop.f32.mrb[123].mxu1 }
 0xd44   : > { %v3946_v49 = vsel %vm3672_vm10, 0.0, %v3945_v56 }
 0xd45   : > { %v7295_v27 = vpop.f32.mrb[124].mxu0  ;;  %v3639_v32 = vmul.f32 -4.5, %v3637_v35  ;;  %v3947_v46 = vsel %vm3378_vm11, %v3946_v49, 0.0 }
 0xd46   : > { %5094 = vxpose.xlu0.b32.cont [2/16] (narrow) %v10094_v44, 16  ;;  %v3622_v52 = vpop.trf.xlu0  ;;  %v4736_v9 = vpop.f32.mrb[125].mxu0 }
 0xd47   : > { %v3638_v2 = vmul.f32 %v10821_v41, %v3622_v52  ;;  %4796 = vxpose.xlu1.b32.cont [2/16] (narrow) %v7289_v30, 16  ;;  %v3641_v44 = vmul.f32 %v3639_v32, %v1362_v12 }
 0xd49   : > { %v3640_v3 = vmul.f32 -4.5, %v3638_v2  ;;  %v7298_v25 = vpop.f32.mrb[126].mxu0  ;;  %v10156_v4 = vpop.f32.mrb[124].mxu1 }
 0xd4a   : > { %5095 = vxpose.xlu0.b32.cont [3/16] (narrow) %v10100_v1, 16  ;;  %v4746_v29 = vpop.f32.mrb[127].mxu0  ;;  %v10159_v47 = vpop.f32.mrb[125].mxu1 }
 0xd4b   : > { %v3642_v38 = vmul.f32 %v3640_v3, %v1363_v26  ;;  %4797 = vxpose.xlu1.b32.cont [3/16] (narrow) %v4726_v19, 16 }
 0xd4d   : > { %v3643_v54 = vadd.f32 %v3642_v38, %v3641_v44  ;;  %v7301_v8 = vpop.f32.mrb[128].mxu0  ;;  %v10825_v38 = vld [vmem:[#allocation35_spill] sm:$0xff] }
 0xd4e   : > { %5096 = vxpose.xlu0.b32.cont [4/16] (narrow) %v10098_v37, 16  ;;  %v4756_v42 = vpop.f32.mrb[129].mxu0 }
 0xd4f   : > { %v3644_v40 = vrot.slane %v3643_v54, 4  ;;  %4798 = vxpose.xlu1.b32.cont [4/16] (narrow) %v7292_v62, 16 }
 0xd51   : > { %v3645_v58 = vadd.f32 %v3644_v40, %v3643_v54  ;;  %v7304_v11 = vpop.f32.mrb[130].mxu0  ;;  %v10162_v16 = vpop.f32.mrb[126].mxu1 }
 0xd52   : > { %5097 = vxpose.xlu0.b32.cont [5/16] (narrow) %v10104_v50, 16  ;;  %v4766_v1 = vpop.f32.mrb[131].mxu0  ;;  %v10165_v34 = vpop.f32.mrb[127].mxu1 }
 0xd53   : > { %v3646_v45 = vrot.slane %v3645_v58, 2  ;;  %4799 = vxpose.xlu1.b32.cont [5/16] (narrow) %v4736_v9, 16 }
 0xd55   : > { %v3647_v48 = vadd.f32 %v3646_v45, %v3645_v58  ;;  %v7307_v28 = vpop.f32.mrb[132].mxu0 }
 0xd56   : > { %5098 = vxpose.xlu0.b32.cont [6/16] (narrow) %v10102_v6, 16  ;;  %v4776_v37 = vpop.f32.mrb[133].mxu0 }
 0xd57   : > { %v3648_v36 = vrot.slane %v3647_v48, 1  ;;  %4800 = vxpose.xlu1.b32.cont [6/16] (narrow) %v7295_v27, 16 }
 0xd59   : > { %v3649_v10 = vadd.f32 %v3648_v36, %v3647_v48  ;;  %v7310_v33 = vpop.f32.mrb[134].mxu0  ;;  %v10830_v48 = vld [vmem:[#allocation19_spill] sm:$0xff] }
 0xd5a   : > { %5099 = vxpose.xlu0.b32.cont [7/16] (narrow) %v10108_v57, 16  ;;  %v4786_v50 = vpop.f32.mrb[135].mxu0  ;;  %v10170_v30 = vpop.f32.mrb[128].mxu1 }
 0xd5b   : > { %v3650_v7 = vsel %vm3378_vm11, 0.0, %v3649_v10  ;;  %4801 = vxpose.xlu1.b32.cont [7/16] (narrow) %v4746_v29, 16  ;;  %v10174_v62 = vpop.f32.mrb[129].mxu1 }
 0xd5c   : > { %v10176_v6 = vadd.f32 %v3947_v46, %v3650_v7 }
 0xd5d   : > { %v7353_v21 = vpop.f32.mrb[136].mxu0 }
 0xd5e   : > { %5100 = vxpose.xlu0.b32.cont [8/16] (narrow) %v10106_v61, 16  ;;  %v5311_v19 = vpop.f32.mrb[137].mxu0 }
 0xd5f   : > { %4802 = vxpose.xlu1.b32.cont [8/16] (narrow) %v7298_v25, 16  ;;  %v10824_v25 = vld [vmem:[#allocation29_spill] sm:$0xff] }
 0xd61   : > { %v10179_v17 = vpop.f32.mrb[138].mxu0 }
 0xd62   : > { %5101 = vxpose.xlu0.b32.cont [9/16] (narrow) %v10112_v63, 16  ;;  %v5321_v57 = vpop.f32.mrb[139].mxu0  ;;  %v10182_v35 = vpop.f32.mrb[130].mxu1 }
 0xd63   : > { %4803 = vxpose.xlu1.b32.cont [9/16] (narrow) %v4756_v42, 16  ;;  %v10184_v15 = vpop.f32.mrb[131].mxu1 }
 0xd65   : > { %v10186_v27 = vpop.f32.mrb[140].mxu0 }
 0xd66   : > { %5102 = vxpose.xlu0.b32.cont [10/16] (narrow) %v10110_v53, 16  ;;  %v10189_v52 = vpop.f32.mrb[141].mxu0 }
 0xd67   : > { %4804 = vxpose.xlu1.b32.cont [10/16] (narrow) %v7301_v8, 16  ;;  %v10826_v8 = vld [vmem:[#allocation30_spill] sm:$0xff] }
 0xd69   : > { %v10191_v61 = vpop.f32.mrb[142].mxu0 }
 0xd6a   : > { %5103 = vxpose.xlu0.b32.cont [11/16] (narrow) %v10116_v20, 16  ;;  %v10194_v9 = vpop.f32.mrb[143].mxu0  ;;  %v10196_v63 = vpop.f32.mrb[132].mxu1 }
 0xd6b   : > { %4805 = vxpose.xlu1.b32.cont [11/16] (narrow) %v4766_v1, 16  ;;  %v10198_v32 = vpop.f32.mrb[133].mxu1  ;;  %v10829_v1 = vld [vmem:[#allocation14_spill] sm:$0xff] }
 0xd6c   : > { %v1024_v45 = vmul.f32 2.0, %v10829_v1  ;;  %v366_v1 = vld [vmem:[%s10463_s1 + $0x5c8] sm:$0xff] }
 0xd6d   : > { %v10200_v41 = vpop.f32.mrb[144].mxu0 }
 0xd6e   : > { %5104 = vxpose.xlu0.b32.cont [12/16] (narrow) %v10114_v24, 16  ;;  %v10203_v2 = vpop.f32.mrb[145].mxu0 }
 0xd6f   : > { %4806 = vxpose.xlu1.b32.cont [12/16] (narrow) %v7304_v11, 16  ;;  %v10828_v11 = vld [vmem:[#allocation13_spill] sm:$0xff] }
 0xd71   : > { %v10205_v53 = vpop.f32.mrb[146].mxu0 }
 0xd72   : > { %5105 = vxpose.xlu0.b32.cont [13/16] (narrow) %v10120_v31, 16  ;;  %v10208_v60 = vpop.f32.mrb[147].mxu0  ;;  %v10210_v20 = vpop.f32.mrb[134].mxu1 }
 0xd73   : > { %4807 = vxpose.xlu1.b32.cont [13/16] (narrow) %v4776_v37, 16  ;;  %v10212_v55 = vpop.f32.mrb[135].mxu1  ;;  %v10831_v37 = vld [vmem:[#allocation20_spill] sm:$0xff] }
 0xd74   : > { %v1137_v36 = vmul.f32 2.0, %v10831_v37  ;;  %v352_v37 = vld [vmem:[%s10463_s1 + $0x558] sm:$0xff] }
 0xd75   : > { %v10214_v12 = vpop.f32.mrb[148].mxu0 }
 0xd76   : > { %5106 = vxpose.xlu0.b32.cont [14/16] (narrow) %v10118_v59, 16  ;;  %v10217_v39 = vpop.f32.mrb[149].mxu0 }
 0xd77   : > { %4808 = vxpose.xlu1.b32.cont [14/16] (narrow) %v7307_v28, 16  ;;  %v1136_v28 = vmul.f32 2.0, %v10830_v48 }
 0xd79   : > { %v10219_v24 = vpop.f32.mrb[150].mxu0 }
 0xd7a   : > { %5107 = vxpose.xlu0.b32.cont [15/16] (narrow) %v10124_v5, 16  ;;  %v10222_v26 = vpop.f32.mrb[136].mxu1  ;;  %v10224_v31 = vpop.f32.mrb[151].mxu0 }
 0xd7b   : > { %4809 = vxpose.xlu1.b32.cont [15/16] (narrow) %v4786_v50, 16  ;;  %v10226_v3 = vpop.f32.mrb[137].mxu1 }
 0xd7e   : > { %5108 = vxpose.xlu0.b32.end [16/16] (narrow) %v10122_v18, 16  ;;  %v10827_v18 = vld [vmem:[#allocation36_spill] sm:$0xff] }
 0xd7f   : > { %4810 = vxpose.xlu1.b32.end [16/16] (narrow) %v7310_v33, 16 }
 0xd82   : > { %5686 = vxpose.xlu0.b32.start [1/16] (narrow) %v10150_v0, 16  ;;  %v4513_v59 = vpop.trf.xlu0  ;;  %v1023_v0 = vmul.f32 2.0, %v10828_v11  ;;  %v365_v11 = vld [vmem:[%s10463_s1 + $0x5c0] sm:$0xff] }
 0xd83   : > { %v4529_v29 = vmul.f32 %v10824_v25, %v4513_v59  ;;  %v4215_v44 = vpop.trf.xlu1  ;;  %5390 = vxpose.xlu1.b32.start [1/16] (narrow) %v5311_v19, 16  ;;  %v7895_v48 = vpack.c.bf16 %v366_v1, %v365_v11  ;;  %v377_v11 = vld [vmem:[%s10463_s1 + $0x620] sm:$0xff] }
 0xd84   : > { %v4231_v13 = vmul.f32 %v10825_v38, %v4215_v44 }
 0xd85   : > { %v4531_v54 = vmul.f32 -4.5, %v4529_v29 }
 0xd86   : > { %5687 = vxpose.xlu0.b32.cont [2/16] (narrow) %v10146_v23, 16  ;;  %v4514_v5 = vpop.trf.xlu0  ;;  %v4233_v51 = vmul.f32 -4.5, %v4231_v13 }
 0xd87   : > { %v4530_v42 = vmul.f32 %v10826_v8, %v4514_v5  ;;  %v4216_v40 = vpop.trf.xlu1  ;;  %5391 = vxpose.xlu1.b32.cont [2/16] (narrow) %v7353_v21, 16  ;;  %v4533_v23 = vmul.f32 %v4531_v54, %v1023_v0 }
 0xd88   : > { %v4232_v58 = vmul.f32 %v10827_v18, %v4216_v40  ;;  %v4235_v33 = vmul.f32 %v4233_v51, %v1136_v28  ;;  %v351_v28 = vld [vmem:[%s10463_s1 + $0x550] sm:$0xff] }
 0xd89   : > { %v4532_v56 = vmul.f32 -4.5, %v4530_v42  ;;  %v332_v42 = vld [vmem:[%s10463_s1 + $0x4b8] sm:$0xff] }
 0xd8a   : > { %v4234_v49 = vmul.f32 -4.5, %v4232_v58  ;;  %5688 = vxpose.xlu0.b32.cont [3/16] (narrow) %v10159_v47, 16  ;;  %v350_v58 = vld [vmem:[%s10463_s1 + $0x548] sm:$0xff] }
 0xd8b   : > { %v4534_v10 = vmul.f32 %v4532_v56, %v1024_v45  ;;  %5392 = vxpose.xlu1.b32.cont [3/16] (narrow) %v5321_v57, 16  ;;  %v333_v45 = vld [vmem:[%s10463_s1 + $0x4c0] sm:$0xff]  ;;  %v334_v56 = vld [vmem:[%s10463_s1 + $0x4c8] sm:$0xff] }
 0xd8c   : > { %v4236_v50 = vmul.f32 %v4234_v49, %v1137_v36  ;;  %v7865_v36 = vpack.c.bf16 %v334_v56, %v333_v45  ;;  %v367_v49 = vld [vmem:[%s10463_s1 + $0x5d0] sm:$0xff] }
 0xd8d   : > { %v4535_v46 = vadd.f32 %v4534_v10, %v4533_v23  ;;  %v7867_v23 = vpack.c.bf16 %v352_v37, %v351_v28  ;;  %v335_v10 = vld [vmem:[%s10463_s1 + $0x4d0] sm:$0xff] }
 0xd8e   : > { %v4237_v7 = vadd.f32 %v4236_v50, %v4235_v33  ;;  %5689 = vxpose.xlu0.b32.cont [4/16] (narrow) %v10156_v4, 16  ;;  %v353_v33 = vld [vmem:[%s10463_s1 + $0x560] sm:$0xff]  ;;  %v354_v50 = vld [vmem:[%s10463_s1 + $0x568] sm:$0xff]  ;;  %v10832_v28 = vld [vmem:[#allocation24_spill] sm:$0xff] }
 0xd8f   : > { %v4536_v21 = vrot.slane %v4535_v46, 4  ;;  %5393 = vxpose.xlu1.b32.cont [4/16] (narrow) %v10179_v17, 16 }
 0xd90   : > { %v4238_v19 = vrot.slane %v4237_v7, 4 }
 0xd91   : > { %v4537_v59 = vadd.f32 %v4536_v21, %v4535_v46  ;;  %v369_v21 = vld [vmem:[%s10463_s1 + $0x5e0] sm:$0xff] }
 0xd92   : > { %v4239_v25 = vadd.f32 %v4238_v19, %v4237_v7  ;;  %5690 = vxpose.xlu0.b32.cont [5/16] (narrow) %v10165_v34, 16  ;;  %v370_v19 = vld [vmem:[%s10463_s1 + $0x5e8] sm:$0xff] }
 0xd93   : > { %v4538_v29 = vrot.slane %v4537_v59, 2  ;;  %5394 = vxpose.xlu1.b32.cont [5/16] (narrow) %v10189_v52, 16 }
 0xd94   : > { %v4240_v47 = vrot.slane %v4239_v25, 2 }
 0xd95   : > { %v4539_v44 = vadd.f32 %v4538_v29, %v4537_v59  ;;  %v7871_v59 = vpack.c.bf16 %v354_v50, %v353_v33  ;;  %v356_v29 = vld [vmem:[%s10463_s1 + $0x578] sm:$0xff] }
 0xd96   : > { %v4241_v57 = vadd.f32 %v4240_v47, %v4239_v25  ;;  %5691 = vxpose.xlu0.b32.cont [6/16] (narrow) %v10162_v16, 16  ;;  %v347_v16 = vld [vmem:[%s10463_s1 + $0x530] sm:$0xff]  ;;  %v7901_v47 = vpack.c.bf16 %v370_v19, %v369_v21  ;;  %v10838_v19 = vld [vmem:[#allocation15_spill] sm:$0xff] }
 0xd97   : > { %v4540_v38 = vrot.slane %v4539_v44, 1  ;;  %5395 = vxpose.xlu1.b32.cont [6/16] (narrow) %v10186_v27, 16  ;;  %v363_v27 = vld [vmem:[%s10463_s1 + $0x5b0] sm:$0xff] }
 0xd98   : > { %v4242_v4 = vrot.slane %v4241_v57, 1  ;;  %v355_v25 = vld [vmem:[%s10463_s1 + $0x570] sm:$0xff] }
 0xd99   : > { %v4541_v13 = vadd.f32 %v4540_v38, %v4539_v44  ;;  %v372_v38 = vld [vmem:[%s10463_s1 + $0x5f8] sm:$0xff] }
 0xd9a   : > { %v4243_v5 = vadd.f32 %v4242_v4, %v4241_v57  ;;  %5692 = vxpose.xlu0.b32.cont [7/16] (narrow) %v10174_v62, 16  ;;  %v348_v62 = vld [vmem:[%s10463_s1 + $0x538] sm:$0xff]  ;;  %v371_v57 = vld [vmem:[%s10463_s1 + $0x5f0] sm:$0xff]  ;;  %v7875_v4 = vpack.c.bf16 %v356_v29, %v355_v25 }
 0xd9b   : > { %5396 = vxpose.xlu1.b32.cont [7/16] (narrow) %v10194_v9, 16  ;;  %v4542_v34 = vsel %vm4268_vm13, 0.0, %v4541_v13  ;;  %v7859_v8 = vpack.c.bf16 %v348_v62, %v347_v16  ;;  %v357_v13 = vld [vmem:[%s10463_s1 + $0x580] sm:$0xff]  ;;  %v359_v62 = vld [vmem:[%s10463_s1 + $0x590] sm:$0xff] }
 0xd9c   : > { %v4244_v17 = vsel %vm3970_vm9, 0.0, %v4243_v5  ;;  %v4543_v9 = vsel %vm3970_vm9, %v4542_v34, 0.0  ;;  %v358_v5 = vld [vmem:[%s10463_s1 + $0x588] sm:$0xff]  ;;  %v7904_v34 = vpack.c.bf16 %v372_v38, %v371_v57 }
 0xd9d   : > { %v4245_v52 = vsel %vm3672_vm10, %v4244_v17, 0.0  ;;  %7860 = vmatprep.subr.bf16.mxu0 %v7859_v8  ;;  %v7879_v16 = vpack.c.bf16 %v358_v5, %v357_v13 }
 0xd9e   : > { %v4246_v54 = vadd.f32 %v4245_v52, %v10176_v6  ;;  %5693 = vxpose.xlu0.b32.cont [8/16] (narrow) %v10170_v30, 16  ;;  %v364_v30 = vld [vmem:[%s10463_s1 + $0x5b8] sm:$0xff]  ;;  %v331_v6 = vld [vmem:[%s10463_s1 + $0x4b0] sm:$0xff]  ;;  %v373_v52 = vld [vmem:[%s10463_s1 + $0x600] sm:$0xff] }
 0xd9f   : > { %5397 = vxpose.xlu1.b32.cont [8/16] (narrow) %v10191_v61, 16  ;;  %v7892_v51 = vpack.c.bf16 %v364_v30, %v363_v27  ;;  %v7861_v18 = vpack.c.bf16 %v332_v42, %v331_v6  ;;  %v349_v61 = vld [vmem:[%s10463_s1 + $0x540] sm:$0xff]  ;;  %v360_v27 = vld [vmem:[%s10463_s1 + $0x598] sm:$0xff]  ;;  %v375_v30 = vld [vmem:[%s10463_s1 + $0x610] sm:$0xff] }
 0xda0   : > { %v10273_v40 = vadd.f32 %v4543_v9, %v4246_v54  ;;  %v7863_v0 = vpack.c.bf16 %v350_v58, %v349_v61  ;;  %v374_v54 = vld [vmem:[%s10463_s1 + $0x608] sm:$0xff]  ;;  %v376_v6 = vld [vmem:[%s10463_s1 + $0x618] sm:$0xff]  ;;  %v7883_v42 = vpack.c.bf16 %v360_v27, %v359_v62 }
 0xda1   : > { %7893 = vmatpush3.bf16.msra.mxu1 %v7892_v51  ;;  %7862 = vmatpush3.bf16.msra.mxu0 %v7861_v18  ;;  %v7907_v9 = vpack.c.bf16 %v374_v54, %v373_v52  ;;  %v361_v51 = vld [vmem:[%s10463_s1 + $0x5a0] sm:$0xff]  ;;  %v362_v18 = vld [vmem:[%s10463_s1 + $0x5a8] sm:$0xff]  ;;  %v7910_v61 = vpack.c.bf16 %v376_v6, %v375_v30 }
 0xda2   : > { %5694 = vxpose.xlu0.b32.cont [9/16] (narrow) %v10184_v15, 16  ;;  %v368_v15 = vld [vmem:[%s10463_s1 + $0x5d8] sm:$0xff]  ;;  %7894 = vmatprep.subr.bf16.mxu1 %v10731_v14  ;;  %v7887_v1 = vpack.c.bf16 %v362_v18, %v361_v51 }
 0xda3   : > { %5398 = vxpose.xlu1.b32.cont [9/16] (narrow) %v10203_v2, 16  ;;  %7864 = vmatprep.subr.bf16.mxu0 %v7863_v0  ;;  %v336_v2 = vld [vmem:[%s10463_s1 + $0x4d8] sm:$0xff]  ;;  %v7898_v46 = vpack.c.bf16 %v368_v15, %v367_v49  ;;  %v378_v0 = vld [vmem:[%s10463_s1 + $0x628] sm:$0xff] }
 0xda4   : > { %v7869_v7 = vpack.c.bf16 %v336_v2, %v335_v10  ;;  %v7913_v45 = vpack.c.bf16 %v378_v0, %v377_v11 }
 0xda5   : > { %7896 = vmatpush3.bf16.msra.mxu1 %v7895_v48  ;;  %7866 = vmatpush3.bf16.msra.mxu0 %v7865_v36 }
 0xda6   : > { %5695 = vxpose.xlu0.b32.cont [10/16] (narrow) %v10182_v35, 16  ;;  %7897 = vmatprep.subr.bf16.mxu1 %v10731_v14  ;;  %v337_v35 = vld [vmem:[%s10463_s1 + $0x4e0] sm:$0xff] }
 0xda7   : > { %5399 = vxpose.xlu1.b32.cont [10/16] (narrow) %v10200_v41, 16  ;;  %7868 = vmatprep.subr.bf16.mxu0 %v7867_v23  ;;  %v338_v41 = vld [vmem:[%s10463_s1 + $0x4e8] sm:$0xff] }
 0xda8   : > { %v7873_v44 = vpack.c.bf16 %v338_v41, %v337_v35  ;;  %v10839_v35 = vld [vmem:[#allocation16_spill] sm:$0xff] }
 0xda9   : > { %7899 = vmatpush3.bf16.msra.mxu1 %v7898_v46  ;;  %7870 = vmatpush3.bf16.msra.mxu0 %v7869_v7  ;;  %v10836_v46 = vld [vmem:[#allocation9_spill] sm:$0xff]  ;;  %v10837_v7 = vld [vmem:[#allocation10_spill] sm:$0xff]  ;;  %v911_v41 = vmul.f32 2.0, %v10839_v35 }
 0xdaa   : > { %5696 = vxpose.xlu0.b32.cont [11/16] (narrow) %v10198_v32, 16  ;;  %7900 = vmatprep.subr.bf16.mxu1 %v10731_v14  ;;  %v339_v32 = vld [vmem:[%s10463_s1 + $0x4f0] sm:$0xff]  ;;  %v798_v21 = vmul.f32 2.0, %v10837_v7 }
 0xdab   : > { %5400 = vxpose.xlu1.b32.cont [11/16] (narrow) %v10208_v60, 16  ;;  %7872 = vmatprep.subr.bf16.mxu0 %v7871_v59  ;;  %v340_v60 = vld [vmem:[%s10463_s1 + $0x4f8] sm:$0xff]  ;;  %v910_v59 = vmul.f32 2.0, %v10838_v19 }
 0xdac   : > { %v7877_v17 = vpack.c.bf16 %v340_v60, %v339_v32 }
 0xdad   : > { %7902 = vmatpush3.bf16.msra.mxu1 %v7901_v47  ;;  %7874 = vmatpush3.bf16.msra.mxu0 %v7873_v44 }
 0xdae   : > { %5697 = vxpose.xlu0.b32.cont [12/16] (narrow) %v10196_v63, 16  ;;  %7903 = vmatprep.subr.bf16.mxu1 %v10731_v14  ;;  %v341_v63 = vld [vmem:[%s10463_s1 + $0x500] sm:$0xff] }
 0xdaf   : > { %5401 = vxpose.xlu1.b32.cont [12/16] (narrow) %v10205_v53, 16  ;;  %7876 = vmatprep.subr.bf16.mxu0 %v7875_v4  ;;  %v342_v53 = vld [vmem:[%s10463_s1 + $0x508] sm:$0xff] }
 0xdb0   : > { %v7881_v8 = vpack.c.bf16 %v342_v53, %v341_v63 }
 0xdb1   : > { %7905 = vmatpush3.bf16.msra.mxu1 %v7904_v34  ;;  %7878 = vmatpush3.bf16.msra.mxu0 %v7877_v17 }
 0xdb2   : > { %5698 = vxpose.xlu0.b32.cont [13/16] (narrow) %v10212_v55, 16  ;;  %7906 = vmatprep.subr.bf16.mxu1 %v10731_v14  ;;  %v343_v55 = vld [vmem:[%s10463_s1 + $0x510] sm:$0xff] }
 0xdb3   : > { %5402 = vxpose.xlu1.b32.cont [13/16] (narrow) %v10217_v39, 16  ;;  %7880 = vmatprep.subr.bf16.mxu0 %v7879_v16  ;;  %v344_v39 = vld [vmem:[%s10463_s1 + $0x518] sm:$0xff] }
 0xdb4   : > { %v7885_v58 = vpack.c.bf16 %v344_v39, %v343_v55  ;;  %v10840_v39 = vld [vmem:[#allocation21_spill] sm:$0xff] }
 0xdb5   : > { %7908 = vmatpush3.bf16.msra.mxu1 %v7907_v9  ;;  %7882 = vmatpush3.bf16.msra.mxu0 %v7881_v8 }
 0xdb6   : > { %5699 = vxpose.xlu0.b32.cont [14/16] (narrow) %v10210_v20, 16  ;;  %7909 = vmatprep.subr.bf16.mxu1 %v10731_v14  ;;  %v345_v20 = vld [vmem:[%s10463_s1 + $0x520] sm:$0xff] }
 0xdb7   : > { %5403 = vxpose.xlu1.b32.cont [14/16] (narrow) %v10214_v12, 16  ;;  %7884 = vmatprep.subr.bf16.mxu0 %v7883_v42  ;;  %v346_v12 = vld [vmem:[%s10463_s1 + $0x528] sm:$0xff] }
 0xdb8   : > { %v7889_v56 = vpack.c.bf16 %v346_v12, %v345_v20 }
 0xdb9   : > { %7911 = vmatpush3.bf16.msra.mxu1 %v7910_v61  ;;  %7886 = vmatpush3.bf16.msra.mxu0 %v7885_v58  ;;  %v10841_v61 = vld [vmem:[#allocation27_spill] sm:$0xff] }
 0xdba   : > { %5700 = vxpose.xlu0.b32.cont [15/16] (narrow) %v10226_v3, 16  ;;  %7912 = vmatprep.subr.bf16.mxu1 %v10731_v14  ;;  %v10833_v3 = vld [vmem:[#allocation31_spill] sm:$0xff]  ;;  %v10835_v14 = vld [vmem:[#allocation32_spill] sm:$0xff] }
 0xdbb   : > { %5404 = vxpose.xlu1.b32.cont [15/16] (narrow) %v10224_v31, 16  ;;  %7888 = vmatprep.subr.bf16.mxu0 %v7887_v1  ;;  %v10834_v31 = vld [vmem:[#allocation26_spill] sm:$0xff] }
 0xdbc   : > { %v10842_v1 = vld [vmem:[#allocation22_spill] sm:$0xff] }
 0xdbd   : > { %7914 = vmatpush3.bf16.msra.mxu1 %v7913_v45  ;;  %7890 = vmatpush3.bf16.msra.mxu0 %v7889_v56  ;;  %v10843_v56 = vld [vmem:[#allocation28_spill] sm:$0xff] }
 0xdbe   : > { %5701 = vxpose.xlu0.b32.end [16/16] (narrow) %v10222_v26, 16  ;;  %v797_v26 = vmul.f32 2.0, %v10836_v46 }
 0xdbf   : > { %5405 = vxpose.xlu1.b32.end [16/16] (narrow) %v10219_v24, 16 }
 0xdc2   : > { %v5109_v48 = vpop.trf.xlu0 }
 0xdc3   : > { %v5125_v37 = vmul.f32 %v10832_v28, %v5109_v48  ;;  %v4811_v36 = vpop.trf.xlu1 }
 0xdc4   : > { %v4827_v49 = vmul.f32 %v10833_v3, %v4811_v36 }
 0xdc5   : > { %v5127_v23 = vmul.f32 -4.5, %v5125_v37  ;;  %v10845_v37 = vld [vmem:[#allocation8_spill] sm:$0xff] }
 0xdc6   : > { %v5110_v15 = vpop.trf.xlu0  ;;  %v4829_v33 = vmul.f32 -4.5, %v4827_v49  ;;  %v542_v36 = vmul.f32 2.0, %v10845_v37 }
 0xdc7   : > { %v5126_v10 = vmul.f32 %v10834_v31, %v5110_v15  ;;  %v4812_v2 = vpop.trf.xlu1  ;;  %v5129_v29 = vmul.f32 %v5127_v23, %v797_v26  ;;  %v10847_v15 = vld [vmem:[#allocation12_spill] sm:$0xff] }
 0xdc8   : > { %v4828_v50 = vmul.f32 %v10835_v14, %v4812_v2  ;;  %v4831_v44 = vmul.f32 %v4829_v33, %v910_v59  ;;  %v685_v23 = vmul.f32 2.0, %v10847_v15 }
 0xdc9   : > { %v5128_v24 = vmul.f32 -4.5, %v5126_v10 }
 0xdca   : > { %v4830_v25 = vmul.f32 -4.5, %v4828_v50 }
 0xdcb   : > { %v5130_v47 = vmul.f32 %v5128_v24, %v798_v21 }
 0xdcc   : > { %v4832_v57 = vmul.f32 %v4830_v25, %v911_v41  ;;  %v10848_v41 = vld [vmem:[#allocation5_spill] sm:$0xff] }
 0xdcd   : > { %v5131_v38 = vadd.f32 %v5130_v47, %v5129_v29  ;;  %7995 = vrcp.f32 %v10848_v41 }
 0xdce   : > { %v4833_v4 = vadd.f32 %v4832_v57, %v4831_v44 }
 0xdcf   : > { %v5132_v32 = vrot.slane %v5131_v38, 4 }
 0xdd0   : > { %v4834_v60 = vrot.slane %v4833_v4, 4 }
 0xdd1   : > { %v5133_v13 = vadd.f32 %v5132_v32, %v5131_v38 }
 0xdd2   : > { %v4835_v5 = vadd.f32 %v4834_v60, %v4833_v4 }
 0xdd3   : > { %v5134_v34 = vrot.slane %v5133_v13, 2 }
 0xdd4   : > { %v4836_v17 = vrot.slane %v4835_v5, 2 }
 0xdd5   : > { %v5135_v52 = vadd.f32 %v5134_v34, %v5133_v13  ;;  %v5738_v34 = vmul.f32 0.2, %v9820_v43 }
 0xdd6   : > { %v4837_v54 = vadd.f32 %v4836_v17, %v4835_v5 }
 0xdd7   : > { %v5136_v16 = vrot.slane %v5135_v52, 1  ;;  %v7996_v60 = vpop.eup %7995 }
 0xdd8   : > { %v4838_v63 = vrot.slane %v4837_v54, 1  ;;  %v510_v17 = vmul.f32 0.5, %v7996_v60 }
 0xdd9   : > { %v5137_v53 = vadd.f32 %v5136_v16, %v5135_v52  ;;  %v10849_v16 = vld [vmem:[#allocation6_spill] sm:$0xff] }
 0xdda   : > { %v4839_v62 = vadd.f32 %v4838_v63, %v4837_v54 }
 0xddb   : > { %v5138_v27 = vsel %vm4864_vm15, 0.0, %v5137_v53  ;;  %v10850_v53 = vld [vmem:[#allocation3_spill] sm:$0xff] }
 0xddc   : > { %v4840_v9 = vsel %vm4566_vm12, 0.0, %v4839_v62  ;;  %v5139_v6 = vsel %vm4566_vm12, %v5138_v27, 0.0  ;;  %v10851_v27 = vld [vmem:[#allocation4_spill] sm:$0xff] }
 0xddd   : > { %v4841_v8 = vsel %vm4268_vm13, %v4840_v9, 0.0 }
 0xdde   : > { %v4842_v30 = vadd.f32 %v4841_v8, %v10273_v40  ;;  %v10844_v40 = vld [vmem:[#allocation7_spill] sm:$0xff]  ;;  %v10852_v8 = vld [vmem:[#allocation2_spill] sm:$0xff] }
 0xddf   : > { %v541_v28 = vmul.f32 2.0, %v10844_v40 }
 0xde0   : > { %v5140_v42 = vadd.f32 %v5139_v6, %v4842_v30 }
 0xde7   : > { %7940 = vset.pattern.permute.xlu0 %v10734_v22  ;;  %v10846_v22 = vld [vmem:[#allocation11_spill] sm:$0xff] }
 0xde8   : > { %v684_v49 = vmul.f32 2.0, %v10846_v22 }
 0xe02   : > { %v5702_v55 = vpop.trf.xlu0 }
 0xe03   : > { %v5718_v51 = vmul.f32 %v10840_v39, %v5702_v55  ;;  %v5406_v18 = vpop.trf.xlu1 }
 0xe04   : > { %v5422_v58 = vmul.f32 %v10841_v61, %v5406_v18 }
 0xe05   : > { %v5720_v0 = vmul.f32 -4.5, %v5718_v51 }
 0xe06   : > { %v5703_v11 = vpop.trf.xlu0  ;;  %v5424_v45 = vmul.f32 -4.5, %v5422_v58 }
 0xe07   : > { %v5719_v20 = vmul.f32 %v10842_v1, %v5703_v11  ;;  %v5407_v12 = vpop.trf.xlu1  ;;  %v5722_v10 = vmul.f32 %v5720_v0, %v541_v28 }
 0xe08   : > { %v5423_v48 = vmul.f32 %v10843_v56, %v5407_v12  ;;  %v5426_v33 = vmul.f32 %v5424_v45, %v684_v49 }
 0xe09   : > { %v5721_v3 = vmul.f32 -4.5, %v5719_v20 }
 0xe0a   : > { %v5425_v31 = vmul.f32 -4.5, %v5423_v48 }
 0xe0b   : > { %v5723_v2 = vmul.f32 %v5721_v3, %v542_v36 }
 0xe0c   : > { %v5427_v14 = vmul.f32 %v5425_v31, %v685_v23 }
 0xe0d   : > { %v5724_v50 = vadd.f32 %v5723_v2, %v5722_v10 }
 0xe0e   : > { %v5428_v46 = vadd.f32 %v5427_v14, %v5426_v33 }
 0xe0f   : > { %v5725_v26 = vrot.slane %v5724_v50, 4 }
 0xe10   : > { %v5429_v7 = vrot.slane %v5428_v46, 4 }
 0xe11   : > { %v5726_v21 = vadd.f32 %v5725_v26, %v5724_v50 }
 0xe12   : > { %v5430_v24 = vadd.f32 %v5429_v7, %v5428_v46 }
 0xe13   : > { %v5727_v19 = vrot.slane %v5726_v21, 2 }
 0xe14   : > { %v5431_v59 = vrot.slane %v5430_v24, 2 }
 0xe15   : > { %v5728_v35 = vadd.f32 %v5727_v19, %v5726_v21 }
 0xe16   : > { %v5432_v25 = vadd.f32 %v5431_v59, %v5430_v24 }
 0xe17   : > { %v5729_v29 = vrot.slane %v5728_v35, 1 }
 0xe18   : > { %v5433_v47 = vrot.slane %v5432_v25, 1 }
 0xe19   : > { %v5730_v57 = vadd.f32 %v5729_v29, %v5728_v35 }
 0xe1a   : > { %v5434_v44 = vadd.f32 %v5433_v47, %v5432_v25 }
 0xe1b   : > { %v5731_v13 = vsel %vm2283_vm7, %v5730_v57, 0.0 }
 0xe1c   : > { %v5435_v38 = vsel %vm2283_vm7, 0.0, %v5434_v44 }
 0xe1d   : > { %v5436_v4 = vsel %vm4864_vm15, %v5435_v38, 0.0 }
 0xe1e   : > { %v5437_v32 = vadd.f32 %v5436_v4, %v5140_v42 }
 0xe20   : > { %v5732_v5 = vadd.f32 %v5731_v13, %v5437_v32 }
 0xe22   : > { %v5739_v52 = vadd.f32 %v5738_v34, %v5732_v5 }
 0xe24   : > { %v5740_v54 = vmul.f32 %v5739_v52, %v510_v17 }
 0xe26   : > { %v5741_v63 = vmul.f32 %v5740_v54, %v10849_v16 }
 0xe28   : > { %v5743_v62 = vmul.f32 %v5741_v63, %v10850_v53  ;;  %v5744_v9 = vmul.f32 %v5741_v63, %v10851_v27  ;;  %v5742_v30 = vmul.f32 %v5741_v63, %v10852_v8 }
 0xe2a   : > { %5809 = vmatprep.mubr.f32.mxu0 %v5743_v62  ;;  %7440 = vmatmul.mubr.f32.vlgmr.msra.gmra.mrb[138].mxu1 %v5744_v9 }
 0xe2b   : > { %5810 = vmatmul.mubr.f32.vlgmr.msra.gmra.mrb[152].mxu0 %v5742_v30 }
 0xefd   : > { %v5881_v6 = vpop.f32.mrb[138].mxu1 }
 0xefe   : > { %v6874_v42 = vpop.f32.mrb[152].mxu0  ;;  %v7441_v55 = vpop.f32.mrb[139].mxu1 }
 0xeff   : > { %v6875_v39 = vpop.f32.mrb[153].mxu0 }
 0xf00   : > { %v6876_v43 = vadd.f32 %v6875_v39, %v6874_v42 }
 0xf02   : > { %v5882_v51 = vadd.f32 %v6876_v43, %v5881_v6 }
 0xf04   : > { %v5885_v18 = vmul.f32 -2.0, %v5882_v51 }
 0xf06   : > { %5886 = vst [vmem:[%s174_s9] sm:$0xff] %v5885_v18 }
 0xf07 PF: > { %s14_s12 = sadd.s32 1, %s8015_s12  }
 0xf08   : > { %p11_p4 = scmp.ge.s32.totalorder %s14_s12, 6  }
 0xf0a   :  { %13 = sbr.rel (!%p11_p4) target bundleno = 1 (0x1), region = 70 }

</bundles_post_ra>
